<compile_context>
chip_gen: v7x
topology: tpu7x:2x2x1
jax: 0.10.0
libtpu: 0.0.40
codegen_flags: <defaults>
</compile_context>

<pallas_src>
import functools

import numpy as np

import jax
import jax.numpy as jnp
from jax.experimental import pallas as pl
from jax.experimental.pallas import tpu as pltpu


# --------------------------------------------------------------------------
# Fused forward kernel (one grid step = one batch tile of `tile_b` images)
# --------------------------------------------------------------------------
def _net_kernel(x_ref, w1_ref, b1_ref, w2_ref, b2_ref,
                wf1_ref, fb1_ref, wf2_ref, fb2_ref,
                out_ref, acc1_ref, acc2_ref, *, tile_b):
    f32 = jnp.float32
    bf16 = jnp.bfloat16

    # ---- conv1 (1->10, k=5): banded matmuls, rows ordered (img_row, batch) ----
    # x_ref is [28*tile_b, 28]: row r*tile_b + b = pixel row r of image b.
    for kh in range(5):
        lhs = x_ref[kh * tile_b:(kh + 24) * tile_b, :]              # [24*tb, 28] bf16
        part = jnp.dot(lhs, w1_ref[kh], preferred_element_type=f32)  # [24*tb, 256]
        if kh == 0:
            acc1_ref[...] = part
        else:
            acc1_ref[...] += part

    # 2x2 max-pool (width = lane halves, height = adjacent tile_b row blocks),
    # bias + relu, all vectorized over the whole tile.
    wp = jnp.maximum(acc1_ref[:, :128], acc1_ref[:, 128:])          # [24*tb, 128]
    wp = wp.reshape(12, 2, tile_b, 128)
    hp = jnp.maximum(wp[:, 0], wp[:, 1]).reshape(12 * tile_b, 128)
    h1 = jnp.maximum(hp + b1_ref[...], 0.0).astype(bf16)            # [12*tb, 128]

    # ---- conv2 (10->20, k=5); conv2_drop is identity in eval mode ----
    for kh in range(5):
        lhs = h1[kh * tile_b:(kh + 8) * tile_b, :]                  # [8*tb, 128] bf16
        part = jnp.dot(lhs, w2_ref[kh], preferred_element_type=f32)  # [8*tb, 256]
        if kh == 0:
            acc2_ref[...] = part
        else:
            acc2_ref[...] += part

    wp2 = jnp.maximum(acc2_ref[:, :128], acc2_ref[:, 128:])         # [8*tb, 128]
    wp2 = wp2.reshape(4, 2, tile_b, 128)
    hp2 = jnp.maximum(wp2[:, 0], wp2[:, 1])                         # [4, tb, 128]
    h2 = jnp.maximum(hp2 + b2_ref[...], 0.0).astype(bf16)           # [4, tb, 128]

    # ---- fc1 (320->50), PyTorch (c,h,w)-flatten folded into the weight ----
    accf = jnp.dot(h2[0], wf1_ref[0], preferred_element_type=f32)
    for oh in range(1, 4):
        accf = accf + jnp.dot(h2[oh], wf1_ref[oh], preferred_element_type=f32)
    f1 = jnp.maximum(accf + fb1_ref[...], 0.0)                      # [tb, 50] f32
    # F.dropout is identity in eval mode.

    # ---- fc2 (50->10) + batched log_softmax, single store per grid step ----
    z = jnp.dot(f1, wf2_ref[...], preferred_element_type=f32) + fb2_ref[...]
    m = jnp.max(z, axis=-1, keepdims=True)
    s = z - m
    lse = jnp.log(jnp.sum(jnp.exp(s), axis=-1, keepdims=True))
    out_ref[...] = s - lse                                          # [tb, 10]


# --------------------------------------------------------------------------
# Trace-time weight preparation (banded conv matrices, folded flatten,
# parity halves merged along N and padded to 128-lane boundaries)
# --------------------------------------------------------------------------
def _parity_indicator(k, in_w, out_w, parity):
    """ind[kw, w, j] = 1  iff  w == 2*j + parity + kw."""
    ind = np.zeros((k, in_w, out_w), np.float32)
    for kw in range(k):
        for j in range(out_w):
            ind[kw, 2 * j + parity + kw, j] = 1.0
    return jnp.asarray(ind)


def _pad_lanes(w, n):
    return jnp.pad(w, [(0, 0)] * (w.ndim - 1) + [(0, n - w.shape[-1])])


def _prep_weights(params):
    w1, b1, w2, b2, fw1, fb1, fw2, fb2 = params
    f32, bf16 = jnp.float32, jnp.bfloat16

    ind1e = _parity_indicator(5, 28, 12, 0)
    ind1o = _parity_indicator(5, 28, 12, 1)
    ind2e = _parity_indicator(5, 12, 4, 0)
    ind2o = _parity_indicator(5, 12, 4, 1)

    # conv1: per-kh banded [28, 256] = [even (ow,c)=120 | 0 | odd 120 | 0]
    w1s = w1.reshape(10, 5, 5).astype(f32)
    w1e = jnp.einsum('ckv,vwj->kwjc', w1s, ind1e).reshape(5, 28, 120)
    w1o = jnp.einsum('ckv,vwj->kwjc', w1s, ind1o).reshape(5, 28, 120)
    w1b = jnp.concatenate([_pad_lanes(w1e, 128), _pad_lanes(w1o, 128)],
                          axis=-1).astype(bf16)                       # [5, 28, 256]
    b1p = _pad_lanes(jnp.tile(b1.astype(f32), 12).reshape(1, 120), 128)

    # conv2: per-kh banded [128, 256]; input rows (w_in,c_in)=120 zero-padded to
    # 128 (matches the zero pad lanes of h1); output halves padded 80 -> 128.
    w2f = w2.astype(f32)
    w2e = jnp.einsum('oikv,vwj->kwijo', w2f, ind2e).reshape(5, 120, 80)
    w2o = jnp.einsum('oikv,vwj->kwijo', w2f, ind2o).reshape(5, 120, 80)
    w2b = jnp.concatenate([_pad_lanes(w2e, 128), _pad_lanes(w2o, 128)], axis=-1)
    w2b = jnp.pad(w2b, ((0, 0), (0, 8), (0, 0))).astype(bf16)         # [5, 128, 256]
    b2p = _pad_lanes(jnp.tile(b2.astype(f32), 4).reshape(1, 80), 128)

    # fc1: fold the PyTorch NCHW (c,h,w) flatten so the (ow,c)-layout pooled
    # rows can be consumed per output-row oh; input rows padded 80 -> 128.
    wf1 = jnp.transpose(fw1.astype(f32).reshape(50, 20, 4, 4), (2, 3, 1, 0))
    wf1 = jnp.pad(wf1.reshape(4, 80, 50), ((0, 0), (0, 48), (0, 0))).astype(bf16)
    fb1r = fb1.astype(f32).reshape(1, 50)

    wf2 = fw2.astype(f32).T                                           # [50, 10]
    fb2r = fb2.astype(f32).reshape(1, 10)
    return (w1b, b1p, w2b, b2p, wf1, fb1r, wf2, fb2r)


# --------------------------------------------------------------------------
# Wrapper: one pallas_call for the whole network
# --------------------------------------------------------------------------
def net_forward(x_nchw, params, *, tile_b=16):
    assert tile_b % 8 == 0, "tile_b must be a multiple of 8"
    n = x_nchw.shape[0]
    x = x_nchw.reshape(n, 28, 28)                                     # c_in == 1
    pad = (-n) % tile_b
    if pad:
        x = jnp.pad(x, ((0, pad), (0, 0), (0, 0)))
    n_pad = n + pad
    n_tiles = n_pad // tile_b

    # Layout plumbing (wrapper-side): (tile, row, image-in-tile, col) so the
    # per-kh conv LHS is a contiguous sublane window, then flatten to 2D bf16.
    x = x.reshape(n_tiles, tile_b, 28, 28).transpose(0, 2, 1, 3)
    x = x.reshape(n_tiles * 28 * tile_b, 28).astype(jnp.bfloat16)

    (w1b, b1p, w2b, b2p, wf1, fb1r, wf2, fb2r) = _prep_weights(params)

    kernel = functools.partial(_net_kernel, tile_b=tile_b)
    out = pl.pallas_call(
        kernel,
        out_shape=jax.ShapeDtypeStruct((n_pad, 10), jnp.float32),
        grid_spec=pltpu.PrefetchScalarGridSpec(
            num_scalar_prefetch=0,
            grid=(n_tiles,),
            in_specs=[
                pl.BlockSpec((28 * tile_b, 28), lambda i: (i, 0)),    # x tile
                pl.BlockSpec((5, 28, 256), lambda i: (0, 0, 0)),      # conv1 banded
                pl.BlockSpec((1, 128), lambda i: (0, 0)),             # conv1 bias
                pl.BlockSpec((5, 128, 256), lambda i: (0, 0, 0)),     # conv2 banded
                pl.BlockSpec((1, 128), lambda i: (0, 0)),             # conv2 bias
                pl.BlockSpec((4, 128, 50), lambda i: (0, 0, 0)),      # fc1 w (folded)
                pl.BlockSpec((1, 50), lambda i: (0, 0)),              # fc1 b
                pl.BlockSpec((50, 10), lambda i: (0, 0)),             # fc2 w
                pl.BlockSpec((1, 10), lambda i: (0, 0)),              # fc2 b
            ],
            out_specs=pl.BlockSpec((tile_b, 10), lambda i: (i, 0)),
            scratch_shapes=[
                pltpu.VMEM((24 * tile_b, 256), jnp.float32),          # conv1 acc
                pltpu.VMEM((8 * tile_b, 256), jnp.float32),           # conv2 acc
            ],
        ),
        compiler_params=pltpu.CompilerParams(
            dimension_semantics=("parallel",),
        ),
    )(x, w1b, b1p, w2b, b2p, wf1, fb1r, wf2, fb2r)

    return out[:n]


# --------------------------------------------------------------------------
# Pure-JAX reference (f32) for a correctness sanity check
# --------------------------------------------------------------------------
def _pool2_relu(y):
    n, c, h, w = y.shape
    y = y.reshape(n, c, h // 2, 2, w // 2, 2).max(axis=(3, 5))
    return jnp.maximum(y, 0.0)


def net_forward_ref(x_nchw, params):
    w1, b1, w2, b2, fw1, fb1, fw2, fb2 = params
    dn = ('NCHW', 'OIHW', 'NCHW')
    x = x_nchw.astype(jnp.float32)
    y = jax.lax.conv_general_dilated(x, w1, (1, 1), 'VALID',
                                     dimension_numbers=dn)
    y = _pool2_relu(y + b1[None, :, None, None])
    y = jax.lax.conv_general_dilated(y, w2, (1, 1), 'VALID',
                                     dimension_numbers=dn)
    y = _pool2_relu(y + b2[None, :, None, None])
    y = y.reshape(y.shape[0], 320)
    y = jnp.maximum(y @ fw1.T + fb1, 0.0)
    z = y @ fw2.T + fb2
    return jax.nn.log_softmax(z, axis=1)


def init_params(key):
    ks = jax.random.split(key, 8)
    s = 0.1
    w1 = s * jax.random.normal(ks[0], (10, 1, 5, 5), jnp.float32)
    b1 = s * jax.random.normal(ks[1], (10,), jnp.float32)
    w2 = s * jax.random.normal(ks[2], (20, 10, 5, 5), jnp.float32)
    b2 = s * jax.random.normal(ks[3], (20,), jnp.float32)
    fw1 = s * jax.random.normal(ks[4], (50, 320), jnp.float32)
    fb1 = s * jax.random.normal(ks[5], (50,), jnp.float32)
    fw2 = s * jax.random.normal(ks[6], (10, 50), jnp.float32)
    fb2 = s * jax.random.normal(ks[7], (10,), jnp.float32)
    return (w1, b1, w2, b2, fw1, fb1, fw2, fb2)


if __name__ == "__main__":
    key = jax.random.PRNGKey(0)
    kx, kp = jax.random.split(key)
    # MNIST-shaped input (1x28x28 is required by the 320-dim flatten).
    # Batch 32 -> two grid tiles of 16, so both v7x TensorCores get work.
    x = jax.random.normal(kx, (32, 1, 28, 28), jnp.float32)
    params = init_params(kp)

    out = jax.block_until_ready(jax.jit(net_forward)(x, params))
    ref = jax.block_until_ready(jax.jit(net_forward_ref)(x, params))

    assert out.shape == (32, 10) and out.dtype == jnp.float32
    err = float(jnp.max(jnp.abs(out - ref)))
    # bf16 MXU inputs with f32 accumulation -> loose (intended) tolerance.
    assert jnp.allclose(out, ref, atol=5e-2, rtol=5e-2), err
    print("KERNEL_OK")
</pallas_src>

<mosaic_0001>
module attributes {stable_mosaic.version = 11 : i64} {
  func.func @_net_kernel(%arg0: i32, %arg1: memref<448x28xbf16, #tpu.memory_space<vmem>>, %arg2: memref<5x28x256xbf16, #tpu.memory_space<vmem>>, %arg3: memref<1x128xf32, #tpu.memory_space<vmem>>, %arg4: memref<5x128x256xbf16, #tpu.memory_space<vmem>>, %arg5: memref<1x128xf32, #tpu.memory_space<vmem>>, %arg6: memref<4x128x50xbf16, #tpu.memory_space<vmem>>, %arg7: memref<1x50xf32, #tpu.memory_space<vmem>>, %arg8: memref<50x10xf32, #tpu.memory_space<vmem>>, %arg9: memref<1x10xf32, #tpu.memory_space<vmem>>, %arg10: memref<16x10xf32, #tpu.memory_space<vmem>>, %arg11: memref<384x256xf32, #tpu.memory_space<vmem>>, %arg12: memref<128x256xf32, #tpu.memory_space<vmem>>) attributes {dimension_semantics = [#tpu.dimension_semantics<parallel>], iteration_bounds = array<i64: 2>, scalar_prefetch = 0 : i64, scratch_operands = 2 : i64, tpu.core_type = #tpu.core_type<tc>, window_params = [{transform_indices = @transform_0, window_bounds = array<i64: 448, 28>}, {pipeline_mode = #tpu.pipeline_mode<synchronous>, transform_indices = @transform_1, window_bounds = array<i64: 5, 28, 256>}, {pipeline_mode = #tpu.pipeline_mode<synchronous>, transform_indices = @transform_2, window_bounds = array<i64: 1, 128>}, {pipeline_mode = #tpu.pipeline_mode<synchronous>, transform_indices = @transform_3, window_bounds = array<i64: 5, 128, 256>}, {pipeline_mode = #tpu.pipeline_mode<synchronous>, transform_indices = @transform_4, window_bounds = array<i64: 1, 128>}, {pipeline_mode = #tpu.pipeline_mode<synchronous>, transform_indices = @transform_5, window_bounds = array<i64: 4, 128, 50>}, {pipeline_mode = #tpu.pipeline_mode<synchronous>, transform_indices = @transform_6, window_bounds = array<i64: 1, 50>}, {pipeline_mode = #tpu.pipeline_mode<synchronous>, transform_indices = @transform_7, window_bounds = array<i64: 50, 10>}, {pipeline_mode = #tpu.pipeline_mode<synchronous>, transform_indices = @transform_8, window_bounds = array<i64: 1, 10>}, {transform_indices = @transform_9, window_bounds = array<i64: 16, 10>}]} {
    %c0 = arith.constant 0 : index
    %c0_0 = arith.constant 0 : index
    %0 = vector.load %arg1[%c0, %c0_0] : memref<448x28xbf16, #tpu.memory_space<vmem>>, vector<384x28xbf16>
    %c0_1 = arith.constant 0 : index
    %c0_2 = arith.constant 0 : index
    %c0_3 = arith.constant 0 : index
    %1 = vector.load %arg2[%c0_1, %c0_2, %c0_3] : memref<5x28x256xbf16, #tpu.memory_space<vmem>>, vector<1x28x256xbf16>
    %2 = vector.shape_cast %1 : vector<1x28x256xbf16> to vector<28x256xbf16>
    %cst = arith.constant dense<0.000000e+00> : vector<384x256xf32>
    %3 = tpu.matmul %0, %2, %cst {dimension_numbers = #tpu.dot_dimension_numbers<[1], [0], [0], [1], [0, 0, 1, 1], [], []>} : vector<384x28xbf16>, vector<28x256xbf16>, vector<384x256xf32> -> vector<384x256xf32>
    %c0_4 = arith.constant 0 : index
    %c0_5 = arith.constant 0 : index
    %4 = vector.load %arg11[%c0_4, %c0_5] : memref<384x256xf32, #tpu.memory_space<vmem>>, vector<384x256xf32>
    tpu.vector_store %arg11[%c0_4, %c0_5], %3 {strides = array<i32>} : memref<384x256xf32, #tpu.memory_space<vmem>>, vector<384x256xf32>,
    %c16 = arith.constant 16 : index
    %c0_6 = arith.constant 0 : index
    %5 = vector.load %arg1[%c16, %c0_6] : memref<448x28xbf16, #tpu.memory_space<vmem>>, vector<384x28xbf16>
    %c1 = arith.constant 1 : index
    %c0_7 = arith.constant 0 : index
    %c0_8 = arith.constant 0 : index
    %6 = vector.load %arg2[%c1, %c0_7, %c0_8] : memref<5x28x256xbf16, #tpu.memory_space<vmem>>, vector<1x28x256xbf16>
    %7 = vector.shape_cast %6 : vector<1x28x256xbf16> to vector<28x256xbf16>
    %cst_9 = arith.constant dense<0.000000e+00> : vector<384x256xf32>
    %8 = tpu.matmul %5, %7, %cst_9 {dimension_numbers = #tpu.dot_dimension_numbers<[1], [0], [0], [1], [0, 0, 1, 1], [], []>} : vector<384x28xbf16>, vector<28x256xbf16>, vector<384x256xf32> -> vector<384x256xf32>
    %c0_10 = arith.constant 0 : index
    %c0_11 = arith.constant 0 : index
    %9 = vector.load %arg11[%c0_10, %c0_11] : memref<384x256xf32, #tpu.memory_space<vmem>>, vector<384x256xf32>
    %10 = arith.addf %9, %8 : vector<384x256xf32>
    %c0_12 = arith.constant 0 : index
    %c0_13 = arith.constant 0 : index
    %11 = vector.load %arg11[%c0_12, %c0_13] : memref<384x256xf32, #tpu.memory_space<vmem>>, vector<384x256xf32>
    tpu.vector_store %arg11[%c0_12, %c0_13], %10 {strides = array<i32>} : memref<384x256xf32, #tpu.memory_space<vmem>>, vector<384x256xf32>,
    %c32 = arith.constant 32 : index
    %c0_14 = arith.constant 0 : index
    %12 = vector.load %arg1[%c32, %c0_14] : memref<448x28xbf16, #tpu.memory_space<vmem>>, vector<384x28xbf16>
    %c2 = arith.constant 2 : index
    %c0_15 = arith.constant 0 : index
    %c0_16 = arith.constant 0 : index
    %13 = vector.load %arg2[%c2, %c0_15, %c0_16] : memref<5x28x256xbf16, #tpu.memory_space<vmem>>, vector<1x28x256xbf16>
    %14 = vector.shape_cast %13 : vector<1x28x256xbf16> to vector<28x256xbf16>
    %cst_17 = arith.constant dense<0.000000e+00> : vector<384x256xf32>
    %15 = tpu.matmul %12, %14, %cst_17 {dimension_numbers = #tpu.dot_dimension_numbers<[1], [0], [0], [1], [0, 0, 1, 1], [], []>} : vector<384x28xbf16>, vector<28x256xbf16>, vector<384x256xf32> -> vector<384x256xf32>
    %c0_18 = arith.constant 0 : index
    %c0_19 = arith.constant 0 : index
    %16 = vector.load %arg11[%c0_18, %c0_19] : memref<384x256xf32, #tpu.memory_space<vmem>>, vector<384x256xf32>
    %17 = arith.addf %16, %15 : vector<384x256xf32>
    %c0_20 = arith.constant 0 : index
    %c0_21 = arith.constant 0 : index
    %18 = vector.load %arg11[%c0_20, %c0_21] : memref<384x256xf32, #tpu.memory_space<vmem>>, vector<384x256xf32>
    tpu.vector_store %arg11[%c0_20, %c0_21], %17 {strides = array<i32>} : memref<384x256xf32, #tpu.memory_space<vmem>>, vector<384x256xf32>,
    %c48 = arith.constant 48 : index
    %c0_22 = arith.constant 0 : index
    %19 = vector.load %arg1[%c48, %c0_22] : memref<448x28xbf16, #tpu.memory_space<vmem>>, vector<384x28xbf16>
    %c3 = arith.constant 3 : index
    %c0_23 = arith.constant 0 : index
    %c0_24 = arith.constant 0 : index
    %20 = vector.load %arg2[%c3, %c0_23, %c0_24] : memref<5x28x256xbf16, #tpu.memory_space<vmem>>, vector<1x28x256xbf16>
    %21 = vector.shape_cast %20 : vector<1x28x256xbf16> to vector<28x256xbf16>
    %cst_25 = arith.constant dense<0.000000e+00> : vector<384x256xf32>
    %22 = tpu.matmul %19, %21, %cst_25 {dimension_numbers = #tpu.dot_dimension_numbers<[1], [0], [0], [1], [0, 0, 1, 1], [], []>} : vector<384x28xbf16>, vector<28x256xbf16>, vector<384x256xf32> -> vector<384x256xf32>
    %c0_26 = arith.constant 0 : index
    %c0_27 = arith.constant 0 : index
    %23 = vector.load %arg11[%c0_26, %c0_27] : memref<384x256xf32, #tpu.memory_space<vmem>>, vector<384x256xf32>
    %24 = arith.addf %23, %22 : vector<384x256xf32>
    %c0_28 = arith.constant 0 : index
    %c0_29 = arith.constant 0 : index
    %25 = vector.load %arg11[%c0_28, %c0_29] : memref<384x256xf32, #tpu.memory_space<vmem>>, vector<384x256xf32>
    tpu.vector_store %arg11[%c0_28, %c0_29], %24 {strides = array<i32>} : memref<384x256xf32, #tpu.memory_space<vmem>>, vector<384x256xf32>,
    %c64 = arith.constant 64 : index
    %c0_30 = arith.constant 0 : index
    %26 = vector.load %arg1[%c64, %c0_30] : memref<448x28xbf16, #tpu.memory_space<vmem>>, vector<384x28xbf16>
    %c4 = arith.constant 4 : index
    %c0_31 = arith.constant 0 : index
    %c0_32 = arith.constant 0 : index
    %27 = vector.load %arg2[%c4, %c0_31, %c0_32] : memref<5x28x256xbf16, #tpu.memory_space<vmem>>, vector<1x28x256xbf16>
    %28 = vector.shape_cast %27 : vector<1x28x256xbf16> to vector<28x256xbf16>
    %cst_33 = arith.constant dense<0.000000e+00> : vector<384x256xf32>
    %29 = tpu.matmul %26, %28, %cst_33 {dimension_numbers = #tpu.dot_dimension_numbers<[1], [0], [0], [1], [0, 0, 1, 1], [], []>} : vector<384x28xbf16>, vector<28x256xbf16>, vector<384x256xf32> -> vector<384x256xf32>
    %c0_34 = arith.constant 0 : index
    %c0_35 = arith.constant 0 : index
    %30 = vector.load %arg11[%c0_34, %c0_35] : memref<384x256xf32, #tpu.memory_space<vmem>>, vector<384x256xf32>
    %31 = arith.addf %30, %29 : vector<384x256xf32>
    %c0_36 = arith.constant 0 : index
    %c0_37 = arith.constant 0 : index
    %32 = vector.load %arg11[%c0_36, %c0_37] : memref<384x256xf32, #tpu.memory_space<vmem>>, vector<384x256xf32>
    tpu.vector_store %arg11[%c0_36, %c0_37], %31 {strides = array<i32>} : memref<384x256xf32, #tpu.memory_space<vmem>>, vector<384x256xf32>,
    %c0_38 = arith.constant 0 : index
    %c0_39 = arith.constant 0 : index
    %33 = vector.load %arg11[%c0_38, %c0_39] : memref<384x256xf32, #tpu.memory_space<vmem>>, vector<384x128xf32>
    %c0_40 = arith.constant 0 : index
    %c128 = arith.constant 128 : index
    %34 = vector.load %arg11[%c0_40, %c128] : memref<384x256xf32, #tpu.memory_space<vmem>>, vector<384x128xf32>
    %35 = arith.maximumf %33, %34 : vector<384x128xf32>
    %36 = vector.shape_cast %35 : vector<384x128xf32> to vector<12x2x16x128xf32>
    %37 = vector.extract_strided_slice %36 {offsets = [0, 0, 0, 0], sizes = [12, 1, 16, 128], strides = [1, 1, 1, 1]} : vector<12x2x16x128xf32> to vector<12x1x16x128xf32>
    %38 = vector.shape_cast %37 : vector<12x1x16x128xf32> to vector<12x16x128xf32>
    %39 = vector.extract_strided_slice %36 {offsets = [0, 1, 0, 0], sizes = [12, 1, 16, 128], strides = [1, 1, 1, 1]} : vector<12x2x16x128xf32> to vector<12x1x16x128xf32>
    %40 = vector.shape_cast %39 : vector<12x1x16x128xf32> to vector<12x16x128xf32>
    %41 = arith.maximumf %38, %40 : vector<12x16x128xf32>
    %42 = vector.shape_cast %41 : vector<12x16x128xf32> to vector<192x128xf32>
    %c0_41 = arith.constant 0 : index
    %c0_42 = arith.constant 0 : index
    %43 = vector.load %arg3[%c0_41, %c0_42] : memref<1x128xf32, #tpu.memory_space<vmem>>, vector<1x128xf32>
    %44 = vector.broadcast %43 : vector<1x128xf32> to vector<192x128xf32>
    %45 = arith.addf %42, %44 : vector<192x128xf32>
    %cst_43 = arith.constant 0.000000e+00 : f32
    %46 = vector.broadcast %cst_43 : f32 to vector<192x128xf32>
    %47 = arith.maximumf %45, %46 : vector<192x128xf32>
    %48 = arith.truncf %47 : vector<192x128xf32> to vector<192x128xbf16>
    %49 = vector.extract_strided_slice %48 {offsets = [0, 0], sizes = [128, 128], strides = [1, 1]} : vector<192x128xbf16> to vector<128x128xbf16>
    %c0_44 = arith.constant 0 : index
    %c0_45 = arith.constant 0 : index
    %c0_46 = arith.constant 0 : index
    %50 = vector.load %arg4[%c0_44, %c0_45, %c0_46] : memref<5x128x256xbf16, #tpu.memory_space<vmem>>, vector<1x128x256xbf16>
    %51 = vector.shape_cast %50 : vector<1x128x256xbf16> to vector<128x256xbf16>
    %cst_47 = arith.constant dense<0.000000e+00> : vector<128x256xf32>
    %52 = tpu.matmul %49, %51, %cst_47 {dimension_numbers = #tpu.dot_dimension_numbers<[1], [0], [0], [1], [0, 0, 1, 1], [], []>} : vector<128x128xbf16>, vector<128x256xbf16>, vector<128x256xf32> -> vector<128x256xf32>
    %c0_48 = arith.constant 0 : index
    %c0_49 = arith.constant 0 : index
    %53 = vector.load %arg12[%c0_48, %c0_49] : memref<128x256xf32, #tpu.memory_space<vmem>>, vector<128x256xf32>
    tpu.vector_store %arg12[%c0_48, %c0_49], %52 {strides = array<i32>} : memref<128x256xf32, #tpu.memory_space<vmem>>, vector<128x256xf32>,
    %54 = vector.extract_strided_slice %48 {offsets = [16, 0], sizes = [128, 128], strides = [1, 1]} : vector<192x128xbf16> to vector<128x128xbf16>
    %c1_50 = arith.constant 1 : index
    %c0_51 = arith.constant 0 : index
    %c0_52 = arith.constant 0 : index
    %55 = vector.load %arg4[%c1_50, %c0_51, %c0_52] : memref<5x128x256xbf16, #tpu.memory_space<vmem>>, vector<1x128x256xbf16>
    %56 = vector.shape_cast %55 : vector<1x128x256xbf16> to vector<128x256xbf16>
    %cst_53 = arith.constant dense<0.000000e+00> : vector<128x256xf32>
    %57 = tpu.matmul %54, %56, %cst_53 {dimension_numbers = #tpu.dot_dimension_numbers<[1], [0], [0], [1], [0, 0, 1, 1], [], []>} : vector<128x128xbf16>, vector<128x256xbf16>, vector<128x256xf32> -> vector<128x256xf32>
    %c0_54 = arith.constant 0 : index
    %c0_55 = arith.constant 0 : index
    %58 = vector.load %arg12[%c0_54, %c0_55] : memref<128x256xf32, #tpu.memory_space<vmem>>, vector<128x256xf32>
    %59 = arith.addf %58, %57 : vector<128x256xf32>
    %c0_56 = arith.constant 0 : index
    %c0_57 = arith.constant 0 : index
    %60 = vector.load %arg12[%c0_56, %c0_57] : memref<128x256xf32, #tpu.memory_space<vmem>>, vector<128x256xf32>
    tpu.vector_store %arg12[%c0_56, %c0_57], %59 {strides = array<i32>} : memref<128x256xf32, #tpu.memory_space<vmem>>, vector<128x256xf32>,
    %61 = vector.extract_strided_slice %48 {offsets = [32, 0], sizes = [128, 128], strides = [1, 1]} : vector<192x128xbf16> to vector<128x128xbf16>
    %c2_58 = arith.constant 2 : index
    %c0_59 = arith.constant 0 : index
    %c0_60 = arith.constant 0 : index
    %62 = vector.load %arg4[%c2_58, %c0_59, %c0_60] : memref<5x128x256xbf16, #tpu.memory_space<vmem>>, vector<1x128x256xbf16>
    %63 = vector.shape_cast %62 : vector<1x128x256xbf16> to vector<128x256xbf16>
    %cst_61 = arith.constant dense<0.000000e+00> : vector<128x256xf32>
    %64 = tpu.matmul %61, %63, %cst_61 {dimension_numbers = #tpu.dot_dimension_numbers<[1], [0], [0], [1], [0, 0, 1, 1], [], []>} : vector<128x128xbf16>, vector<128x256xbf16>, vector<128x256xf32> -> vector<128x256xf32>
    %c0_62 = arith.constant 0 : index
    %c0_63 = arith.constant 0 : index
    %65 = vector.load %arg12[%c0_62, %c0_63] : memref<128x256xf32, #tpu.memory_space<vmem>>, vector<128x256xf32>
    %66 = arith.addf %65, %64 : vector<128x256xf32>
    %c0_64 = arith.constant 0 : index
    %c0_65 = arith.constant 0 : index
    %67 = vector.load %arg12[%c0_64, %c0_65] : memref<128x256xf32, #tpu.memory_space<vmem>>, vector<128x256xf32>
    tpu.vector_store %arg12[%c0_64, %c0_65], %66 {strides = array<i32>} : memref<128x256xf32, #tpu.memory_space<vmem>>, vector<128x256xf32>,
    %68 = vector.extract_strided_slice %48 {offsets = [48, 0], sizes = [128, 128], strides = [1, 1]} : vector<192x128xbf16> to vector<128x128xbf16>
    %c3_66 = arith.constant 3 : index
    %c0_67 = arith.constant 0 : index
    %c0_68 = arith.constant 0 : index
    %69 = vector.load %arg4[%c3_66, %c0_67, %c0_68] : memref<5x128x256xbf16, #tpu.memory_space<vmem>>, vector<1x128x256xbf16>
    %70 = vector.shape_cast %69 : vector<1x128x256xbf16> to vector<128x256xbf16>
    %cst_69 = arith.constant dense<0.000000e+00> : vector<128x256xf32>
    %71 = tpu.matmul %68, %70, %cst_69 {dimension_numbers = #tpu.dot_dimension_numbers<[1], [0], [0], [1], [0, 0, 1, 1], [], []>} : vector<128x128xbf16>, vector<128x256xbf16>, vector<128x256xf32> -> vector<128x256xf32>
    %c0_70 = arith.constant 0 : index
    %c0_71 = arith.constant 0 : index
    %72 = vector.load %arg12[%c0_70, %c0_71] : memref<128x256xf32, #tpu.memory_space<vmem>>, vector<128x256xf32>
    %73 = arith.addf %72, %71 : vector<128x256xf32>
    %c0_72 = arith.constant 0 : index
    %c0_73 = arith.constant 0 : index
    %74 = vector.load %arg12[%c0_72, %c0_73] : memref<128x256xf32, #tpu.memory_space<vmem>>, vector<128x256xf32>
    tpu.vector_store %arg12[%c0_72, %c0_73], %73 {strides = array<i32>} : memref<128x256xf32, #tpu.memory_space<vmem>>, vector<128x256xf32>,
    %75 = vector.extract_strided_slice %48 {offsets = [64, 0], sizes = [128, 128], strides = [1, 1]} : vector<192x128xbf16> to vector<128x128xbf16>
    %c4_74 = arith.constant 4 : index
    %c0_75 = arith.constant 0 : index
    %c0_76 = arith.constant 0 : index
    %76 = vector.load %arg4[%c4_74, %c0_75, %c0_76] : memref<5x128x256xbf16, #tpu.memory_space<vmem>>, vector<1x128x256xbf16>
    %77 = vector.shape_cast %76 : vector<1x128x256xbf16> to vector<128x256xbf16>
    %cst_77 = arith.constant dense<0.000000e+00> : vector<128x256xf32>
    %78 = tpu.matmul %75, %77, %cst_77 {dimension_numbers = #tpu.dot_dimension_numbers<[1], [0], [0], [1], [0, 0, 1, 1], [], []>} : vector<128x128xbf16>, vector<128x256xbf16>, vector<128x256xf32> -> vector<128x256xf32>
    %c0_78 = arith.constant 0 : index
    %c0_79 = arith.constant 0 : index
    %79 = vector.load %arg12[%c0_78, %c0_79] : memref<128x256xf32, #tpu.memory_space<vmem>>, vector<128x256xf32>
    %80 = arith.addf %79, %78 : vector<128x256xf32>
    %c0_80 = arith.constant 0 : index
    %c0_81 = arith.constant 0 : index
    %81 = vector.load %arg12[%c0_80, %c0_81] : memref<128x256xf32, #tpu.memory_space<vmem>>, vector<128x256xf32>
    tpu.vector_store %arg12[%c0_80, %c0_81], %80 {strides = array<i32>} : memref<128x256xf32, #tpu.memory_space<vmem>>, vector<128x256xf32>,
    %c0_82 = arith.constant 0 : index
    %c0_83 = arith.constant 0 : index
    %82 = vector.load %arg12[%c0_82, %c0_83] : memref<128x256xf32, #tpu.memory_space<vmem>>, vector<128x128xf32>
    %c0_84 = arith.constant 0 : index
    %c128_85 = arith.constant 128 : index
    %83 = vector.load %arg12[%c0_84, %c128_85] : memref<128x256xf32, #tpu.memory_space<vmem>>, vector<128x128xf32>
    %84 = arith.maximumf %82, %83 : vector<128x128xf32>
    %85 = vector.shape_cast %84 : vector<128x128xf32> to vector<4x2x16x128xf32>
    %86 = vector.extract_strided_slice %85 {offsets = [0, 0, 0, 0], sizes = [4, 1, 16, 128], strides = [1, 1, 1, 1]} : vector<4x2x16x128xf32> to vector<4x1x16x128xf32>
    %87 = vector.shape_cast %86 : vector<4x1x16x128xf32> to vector<4x16x128xf32>
    %88 = vector.extract_strided_slice %85 {offsets = [0, 1, 0, 0], sizes = [4, 1, 16, 128], strides = [1, 1, 1, 1]} : vector<4x2x16x128xf32> to vector<4x1x16x128xf32>
    %89 = vector.shape_cast %88 : vector<4x1x16x128xf32> to vector<4x16x128xf32>
    %90 = arith.maximumf %87, %89 : vector<4x16x128xf32>
    %c0_86 = arith.constant 0 : index
    %c0_87 = arith.constant 0 : index
    %91 = vector.load %arg5[%c0_86, %c0_87] : memref<1x128xf32, #tpu.memory_space<vmem>>, vector<1x128xf32>
    %92 = vector.shape_cast %91 : vector<1x128xf32> to vector<1x1x128xf32>
    %93 = vector.broadcast %92 : vector<1x1x128xf32> to vector<4x16x128xf32>
    %94 = arith.addf %90, %93 : vector<4x16x128xf32>
    %cst_88 = arith.constant 0.000000e+00 : f32
    %95 = vector.broadcast %cst_88 : f32 to vector<4x16x128xf32>
    %96 = arith.maximumf %94, %95 : vector<4x16x128xf32>
    %97 = arith.truncf %96 : vector<4x16x128xf32> to vector<4x16x128xbf16>
    %98 = vector.extract_strided_slice %97 {offsets = [0, 0, 0], sizes = [1, 16, 128], strides = [1, 1, 1]} : vector<4x16x128xbf16> to vector<1x16x128xbf16>
    %99 = vector.shape_cast %98 : vector<1x16x128xbf16> to vector<16x128xbf16>
    %c0_89 = arith.constant 0 : index
    %c0_90 = arith.constant 0 : index
    %c0_91 = arith.constant 0 : index
    %100 = vector.load %arg6[%c0_89, %c0_90, %c0_91] : memref<4x128x50xbf16, #tpu.memory_space<vmem>>, vector<1x128x50xbf16>
    %101 = vector.shape_cast %100 : vector<1x128x50xbf16> to vector<128x50xbf16>
    %cst_92 = arith.constant dense<0.000000e+00> : vector<16x50xf32>
    %102 = tpu.matmul %99, %101, %cst_92 {dimension_numbers = #tpu.dot_dimension_numbers<[1], [0], [0], [1], [0, 0, 1, 1], [], []>} : vector<16x128xbf16>, vector<128x50xbf16>, vector<16x50xf32> -> vector<16x50xf32>
    %103 = vector.extract_strided_slice %97 {offsets = [1, 0, 0], sizes = [1, 16, 128], strides = [1, 1, 1]} : vector<4x16x128xbf16> to vector<1x16x128xbf16>
    %104 = vector.shape_cast %103 : vector<1x16x128xbf16> to vector<16x128xbf16>
    %c1_93 = arith.constant 1 : index
    %c0_94 = arith.constant 0 : index
    %c0_95 = arith.constant 0 : index
    %105 = vector.load %arg6[%c1_93, %c0_94, %c0_95] : memref<4x128x50xbf16, #tpu.memory_space<vmem>>, vector<1x128x50xbf16>
    %106 = vector.shape_cast %105 : vector<1x128x50xbf16> to vector<128x50xbf16>
    %cst_96 = arith.constant dense<0.000000e+00> : vector<16x50xf32>
    %107 = tpu.matmul %104, %106, %cst_96 {dimension_numbers = #tpu.dot_dimension_numbers<[1], [0], [0], [1], [0, 0, 1, 1], [], []>} : vector<16x128xbf16>, vector<128x50xbf16>, vector<16x50xf32> -> vector<16x50xf32>
    %108 = arith.addf %102, %107 : vector<16x50xf32>
    %109 = vector.extract_strided_slice %97 {offsets = [2, 0, 0], sizes = [1, 16, 128], strides = [1, 1, 1]} : vector<4x16x128xbf16> to vector<1x16x128xbf16>
    %110 = vector.shape_cast %109 : vector<1x16x128xbf16> to vector<16x128xbf16>
    %c2_97 = arith.constant 2 : index
    %c0_98 = arith.constant 0 : index
    %c0_99 = arith.constant 0 : index
    %111 = vector.load %arg6[%c2_97, %c0_98, %c0_99] : memref<4x128x50xbf16, #tpu.memory_space<vmem>>, vector<1x128x50xbf16>
    %112 = vector.shape_cast %111 : vector<1x128x50xbf16> to vector<128x50xbf16>
    %cst_100 = arith.constant dense<0.000000e+00> : vector<16x50xf32>
    %113 = tpu.matmul %110, %112, %cst_100 {dimension_numbers = #tpu.dot_dimension_numbers<[1], [0], [0], [1], [0, 0, 1, 1], [], []>} : vector<16x128xbf16>, vector<128x50xbf16>, vector<16x50xf32> -> vector<16x50xf32>
    %114 = arith.addf %108, %113 : vector<16x50xf32>
    %115 = vector.extract_strided_slice %97 {offsets = [3, 0, 0], sizes = [1, 16, 128], strides = [1, 1, 1]} : vector<4x16x128xbf16> to vector<1x16x128xbf16>
    %116 = vector.shape_cast %115 : vector<1x16x128xbf16> to vector<16x128xbf16>
    %c3_101 = arith.constant 3 : index
    %c0_102 = arith.constant 0 : index
    %c0_103 = arith.constant 0 : index
    %117 = vector.load %arg6[%c3_101, %c0_102, %c0_103] : memref<4x128x50xbf16, #tpu.memory_space<vmem>>, vector<1x128x50xbf16>
    %118 = vector.shape_cast %117 : vector<1x128x50xbf16> to vector<128x50xbf16>
    %cst_104 = arith.constant dense<0.000000e+00> : vector<16x50xf32>
    %119 = tpu.matmul %116, %118, %cst_104 {dimension_numbers = #tpu.dot_dimension_numbers<[1], [0], [0], [1], [0, 0, 1, 1], [], []>} : vector<16x128xbf16>, vector<128x50xbf16>, vector<16x50xf32> -> vector<16x50xf32>
    %120 = arith.addf %114, %119 : vector<16x50xf32>
    %c0_105 = arith.constant 0 : index
    %c0_106 = arith.constant 0 : index
    %121 = vector.load %arg7[%c0_105, %c0_106] : memref<1x50xf32, #tpu.memory_space<vmem>>, vector<1x50xf32>
    %122 = vector.broadcast %121 : vector<1x50xf32> to vector<16x50xf32>
    %123 = arith.addf %120, %122 : vector<16x50xf32>
    %cst_107 = arith.constant 0.000000e+00 : f32
    %124 = vector.broadcast %cst_107 : f32 to vector<16x50xf32>
    %125 = arith.maximumf %123, %124 : vector<16x50xf32>
    %c0_108 = arith.constant 0 : index
    %c0_109 = arith.constant 0 : index
    %126 = vector.load %arg8[%c0_108, %c0_109] : memref<50x10xf32, #tpu.memory_space<vmem>>, vector<50x10xf32>
    %cst_110 = arith.constant dense<0.000000e+00> : vector<16x10xf32>
    %127 = tpu.matmul %125, %126, %cst_110 {dimension_numbers = #tpu.dot_dimension_numbers<[1], [0], [0], [1], [0, 0, 1, 1], [], []>} : vector<16x50xf32>, vector<50x10xf32>, vector<16x10xf32> -> vector<16x10xf32>
    %c0_111 = arith.constant 0 : index
    %c0_112 = arith.constant 0 : index
    %128 = vector.load %arg9[%c0_111, %c0_112] : memref<1x10xf32, #tpu.memory_space<vmem>>, vector<1x10xf32>
    %129 = vector.broadcast %128 : vector<1x10xf32> to vector<16x10xf32>
    %130 = arith.addf %127, %129 : vector<16x10xf32>
    %cst_113 = arith.constant dense<0xFF800000> : vector<16xf32>
    %131 = vector.multi_reduction <maximumf>, %130, %cst_113 [1] : vector<16x10xf32> to vector<16xf32>
    %132 = vector.shape_cast %131 : vector<16xf32> to vector<16x1xf32>
    %133 = vector.broadcast %132 : vector<16x1xf32> to vector<16x10xf32>
    %134 = arith.subf %130, %133 : vector<16x10xf32>
    %135 = math.exp %134 : vector<16x10xf32>
    %cst_114 = arith.constant dense<0.000000e+00> : vector<16xf32>
    %136 = vector.multi_reduction <add>, %135, %cst_114 [1] : vector<16x10xf32> to vector<16xf32>
    %137 = vector.shape_cast %136 : vector<16xf32> to vector<16x1xf32>
    %138 = math.log %137 : vector<16x1xf32>
    %139 = vector.broadcast %138 : vector<16x1xf32> to vector<16x10xf32>
    %140 = arith.subf %134, %139 : vector<16x10xf32>
    %c0_115 = arith.constant 0 : index
    %c0_116 = arith.constant 0 : index
    %141 = vector.load %arg10[%c0_115, %c0_116] : memref<16x10xf32, #tpu.memory_space<vmem>>, vector<16x10xf32>
    tpu.vector_store %arg10[%c0_115, %c0_116], %140 {strides = array<i32>} : memref<16x10xf32, #tpu.memory_space<vmem>>, vector<16x10xf32>,
    return
  }
  func.func @transform_0(%arg0: i32) -> (i32, i32) {
    %c0_i32 = arith.constant 0 : i32
    %c0_i32_0 = arith.constant 0 : i32
    return %arg0, %c0_i32 : i32, i32
  }
  func.func @transform_1(%arg0: i32) -> (i32, i32, i32) {
    %c0_i32 = arith.constant 0 : i32
    %c0_i32_0 = arith.constant 0 : i32
    %c0_i32_1 = arith.constant 0 : i32
    %c0_i32_2 = arith.constant 0 : i32
    return %c0_i32, %c0_i32_0, %c0_i32_1 : i32, i32, i32
  }
  func.func @transform_2(%arg0: i32) -> (i32, i32) {
    %c0_i32 = arith.constant 0 : i32
    %c0_i32_0 = arith.constant 0 : i32
    %c0_i32_1 = arith.constant 0 : i32
    return %c0_i32, %c0_i32_0 : i32, i32
  }
  func.func @transform_3(%arg0: i32) -> (i32, i32, i32) {
    %c0_i32 = arith.constant 0 : i32
    %c0_i32_0 = arith.constant 0 : i32
    %c0_i32_1 = arith.constant 0 : i32
    %c0_i32_2 = arith.constant 0 : i32
    return %c0_i32, %c0_i32_0, %c0_i32_1 : i32, i32, i32
  }
  func.func @transform_4(%arg0: i32) -> (i32, i32) {
    %c0_i32 = arith.constant 0 : i32
    %c0_i32_0 = arith.constant 0 : i32
    %c0_i32_1 = arith.constant 0 : i32
    return %c0_i32, %c0_i32_0 : i32, i32
  }
  func.func @transform_5(%arg0: i32) -> (i32, i32, i32) {
    %c0_i32 = arith.constant 0 : i32
    %c0_i32_0 = arith.constant 0 : i32
    %c0_i32_1 = arith.constant 0 : i32
    %c0_i32_2 = arith.constant 0 : i32
    return %c0_i32, %c0_i32_0, %c0_i32_1 : i32, i32, i32
  }
  func.func @transform_6(%arg0: i32) -> (i32, i32) {
    %c0_i32 = arith.constant 0 : i32
    %c0_i32_0 = arith.constant 0 : i32
    %c0_i32_1 = arith.constant 0 : i32
    return %c0_i32, %c0_i32_0 : i32, i32
  }
  func.func @transform_7(%arg0: i32) -> (i32, i32) {
    %c0_i32 = arith.constant 0 : i32
    %c0_i32_0 = arith.constant 0 : i32
    %c0_i32_1 = arith.constant 0 : i32
    return %c0_i32, %c0_i32_0 : i32, i32
  }
  func.func @transform_8(%arg0: i32) -> (i32, i32) {
    %c0_i32 = arith.constant 0 : i32
    %c0_i32_0 = arith.constant 0 : i32
    %c0_i32_1 = arith.constant 0 : i32
    return %c0_i32, %c0_i32_0 : i32, i32
  }
  func.func @transform_9(%arg0: i32) -> (i32, i32) {
    %c0_i32 = arith.constant 0 : i32
    %c0_i32_0 = arith.constant 0 : i32
    return %arg0, %c0_i32 : i32, i32
  }
}

</mosaic_0001>

<bundles_post_ra>
// kernel: tile.13
= control target key start
LH: loop header
LB: loop body
LE: loop exit
PB: predicated region body
PF: predicated region fallthrough
CT: control target
= control target key end

     0   :  { %s28_s0 = inlined_call_operand.vmem [shape: f32[10], index: 0, kind: input, shape index: {}]   ;;  %s29_s1 = inlined_call_operand.vmem [shape: f32[12,10], index: 1, kind: output, shape index: {}]  }
   0x1   :  { %v4_v0 = vld [vmem:[%s28_s0] ss:$0 sm:$0xff] }
   0x2   :  { %5 = vst [vmem:[%s29_s1] sm:$0xff] %v4_v0  ;;  %8 = vst [vmem:[%s29_s1 + $0x8] sm:$0xff] %v4_v0 }

// kernel: tile.14
= control target key start
LH: loop header
LB: loop body
LE: loop exit
PB: predicated region body
PF: predicated region fallthrough
CT: control target
= control target key end

     0   :  { %s99_s10 = smov 110   ;;  %s100_s11 = smov 90   ;;  %vm3_vm0 = vcmask 80896   ;;  %vm9_vm1 = vcmask 982896   ;;  %vm15_vm2 = vcmask 900896   ;;  %vm21_vm3 = vcmask 818896   ;;  %s159_s0 = inlined_call_operand.vmem [shape: f32[12,10], index: 0, kind: input, shape index: {}]   ;;  %s160_s1 = inlined_call_operand.vmem [shape: f32[1,120], index: 1, kind: output, shape index: {}]  }
   0x1   :  { %v77_v0 = vld [vmem:[%s159_s0 + $0xb] sm:$0x1]   ;;  %v79_v1 = vld [vmem:[%s159_s0 + $0x9] sm:$0x1]   ;;  %v78_v2 = vld [vmem:[%s159_s0 + $0xa] sm:$0x1]  }
   0x2   :  { %7 = vrot.lane.b32.xlu0 %v77_v0, %s99_s10  ;;  %19 = vrot.lane.b32.xlu1 %v79_v1, %s100_s11  ;;  %v80_v3 = vld [vmem:[%s159_s0 + $0x8] sm:$0x1]   ;;  %s101_s16 = smov 100   ;;  %s102_s17 = smov 80   ;;  %v81_v4 = vld [vmem:[%s159_s0 + $0x7] sm:$0x1]  }
   0x3   :  { %v2_v5 = vld [vmem:[%s159_s0] sm:$0x1]   ;;  %v82_v6 = vld [vmem:[%s159_s0 + $0x6] sm:$0x1]   ;;  %s103_s24 = smov 70   ;;  %s104_s25 = smov 60  }
   0x4   :  { %4 = vst.msk [vmem:[#allocation0] sm:$0x1] %vm3_vm0, %v2_v5   ;;  %v83_v7 = vld [vmem:[%s159_s0 + $0x5] sm:$0x1]   ;;  %v84_v8 = vld [vmem:[%s159_s0 + $0x4] sm:$0x1]  }
   0x5   :  { %s105_s30 = smov 50   ;;  %s106_s2 = smov 40   ;;  %v85_v9 = vld [vmem:[%s159_s0 + $0x3] sm:$0x1]   ;;  %v86_v10 = vld [vmem:[%s159_s0 + $0x2] sm:$0x1]  }
   0x6   :  { %13 = vrot.lane.b32.xlu0 %v78_v2, %s101_s16  ;;  %25 = vrot.lane.b32.xlu1 %v80_v3, %s102_s17  ;;  %s107_s7 = smov 30   ;;  %s108_s8 = smov 20   ;;  %v87_v11 = vld [vmem:[%s159_s0 + $0x1] sm:$0x1]   ;;  %vm27_vm4 = vcmask 736896   ;;  %vm33_vm5 = vcmask 654896  }
   0x7   :  { %s109_s0 = smov 10   ;;  %vm39_vm6 = vcmask 572896   ;;  %vm45_vm7 = vcmask 490896   ;;  %vm51_vm8 = vcmask 408896   ;;  %vm57_vm9 = vcmask 326896  }
   0x8   :  { %vm63_vm10 = vcmask 244896   ;;  %vm69_vm11 = vcmask 162896  }
   0xa   :  { %31 = vrot.lane.b32.xlu0 %v81_v4, %s103_s24  ;;  %37 = vrot.lane.b32.xlu1 %v82_v6, %s104_s25 }
   0xe   :  { %43 = vrot.lane.b32.xlu0 %v83_v7, %s105_s30  ;;  %49 = vrot.lane.b32.xlu1 %v84_v8, %s106_s2 }
  0x12   :  { %55 = vrot.lane.b32.xlu0 %v85_v9, %s107_s7  ;;  %61 = vrot.lane.b32.xlu1 %v86_v10, %s108_s8 }
  0x16   :  { %67 = vrot.lane.b32.xlu0 %v87_v11, %s109_s0 }
  0x74   :  { %v8_v12 = vpop.permute.xlu0 %7   ;;  %v20_v13 = vpop.permute.xlu1 %19  }
  0x75   :  { %10 = vst.msk [vmem:[#allocation0] sm:$0x1] %vm9_vm1, %v8_v12  }
  0x78   :  { %v14_v14 = vpop.permute.xlu0 %13   ;;  %v26_v15 = vpop.permute.xlu1 %25  }
  0x79   :  { %16 = vst.msk [vmem:[#allocation0] sm:$0x1] %vm15_vm2, %v14_v14  }
  0x7a   :  { %22 = vst.msk [vmem:[#allocation0] sm:$0x1] %vm21_vm3, %v20_v13  }
  0x7b   :  { %28 = vst.msk [vmem:[#allocation0] sm:$0x1] %vm27_vm4, %v26_v15  }
  0x7c   :  { %v32_v16 = vpop.permute.xlu0 %31   ;;  %v38_v17 = vpop.permute.xlu1 %37  }
  0x7d   :  { %34 = vst.msk [vmem:[#allocation0] sm:$0x1] %vm33_vm5, %v32_v16  }
  0x7e   :  { %40 = vst.msk [vmem:[#allocation0] sm:$0x1] %vm39_vm6, %v38_v17  }
  0x80   :  { %v44_v18 = vpop.permute.xlu0 %43   ;;  %v50_v19 = vpop.permute.xlu1 %49  }
  0x81   :  { %46 = vst.msk [vmem:[#allocation0] sm:$0x1] %vm45_vm7, %v44_v18  }
  0x82   :  { %52 = vst.msk [vmem:[#allocation0] sm:$0x1] %vm51_vm8, %v50_v19  }
  0x84   :  { %v56_v20 = vpop.permute.xlu0 %55   ;;  %v62_v21 = vpop.permute.xlu1 %61  }
  0x85   :  { %58 = vst.msk [vmem:[#allocation0] sm:$0x1] %vm57_vm9, %v56_v20  }
  0x86   :  { %64 = vst.msk [vmem:[#allocation0] sm:$0x1] %vm63_vm10, %v62_v21  }
  0x88   :  { %v68_v22 = vpop.permute.xlu0 %67  }
  0x89   :  { %70 = vst.msk [vmem:[#allocation0] sm:$0x1] %vm69_vm11, %v68_v22  }
  0x90   :  { %v74_v23 = vld [vmem:[#allocation0] sm:$0x1] }
  0x91   :  { %76 = vst [vmem:[%s160_s1] sm:$0x1] %v74_v23 }

// kernel: tile.18
= control target key start
LH: loop header
LB: loop body
LE: loop exit
PB: predicated region body
PF: predicated region fallthrough
CT: control target
= control target key end

     0   :  { %s22_s0 = inlined_call_operand.vmem [shape: f32[20], index: 0, kind: input, shape index: {}]   ;;  %s23_s1 = inlined_call_operand.vmem [shape: f32[4,20], index: 1, kind: output, shape index: {}]  }
   0x1   :  { %v4_v0 = vld [vmem:[%s22_s0] ss:$0 sm:$0xff] }
   0x2   :  { %5 = vst [vmem:[%s23_s1] sm:$0xf] %v4_v0 }

// kernel: tile.19
= control target key start
LH: loop header
LB: loop body
LE: loop exit
PB: predicated region body
PF: predicated region fallthrough
CT: control target
= control target key end

     0   :  { %vm7_vm0 = vcmask 162816   ;;  %s37_s8 = smov 20   ;;  %s38_s9 = smov 40   ;;  %vm13_vm1 = vcmask 654816   ;;  %vm19_vm2 = vcmask 490816   ;;  %vm25_vm3 = vcmask 326816   ;;  %s55_s0 = inlined_call_operand.vmem [shape: f32[4,20], index: 0, kind: input, shape index: {}]   ;;  %s56_s1 = inlined_call_operand.vmem [shape: f32[1,80], index: 1, kind: output, shape index: {}]  }
   0x1   :  { %v4_v0 = vld [vmem:[%s55_s0] sm:$0xf]  ;;  %s36_s0 = smov 60  }
   0x2   :  { %5 = vst [vmem:[#allocation1] sm:$0xf] %v4_v0 }
   0x9   :  { %v10_v1 = vld [vmem:[#allocation1 + $0x3] sm:$0x1]   ;;  %v22_v2 = vld [vmem:[#allocation1 + $0x1] sm:$0x1]   ;;  %v6_v3 = vld [vmem:[#allocation1] sm:$0x1]  }
   0xa   :  { %11 = vrot.lane.b32.xlu0 %v10_v1, %s36_s0  ;;  %23 = vrot.lane.b32.xlu1 %v22_v2, %s37_s8  ;;  %v16_v4 = vld [vmem:[#allocation1 + $0x2] sm:$0x1]   ;;  %8 = vst.msk [vmem:[#allocation0] sm:$0x1] %vm7_vm0, %v6_v3  }
   0xe   :  { %17 = vrot.lane.b32.xlu0 %v16_v4, %s38_s9 }
  0x7c   :  { %v12_v5 = vpop.permute.xlu0 %11   ;;  %v24_v6 = vpop.permute.xlu1 %23  }
  0x7d   :  { %14 = vst.msk [vmem:[#allocation0] sm:$0x1] %vm13_vm1, %v12_v5  }
  0x80   :  { %v18_v7 = vpop.permute.xlu0 %17  }
  0x81   :  { %20 = vst.msk [vmem:[#allocation0] sm:$0x1] %vm19_vm2, %v18_v7  }
  0x82   :  { %26 = vst.msk [vmem:[#allocation0] sm:$0x1] %vm25_vm3, %v24_v6  }
  0x89   :  { %v30_v8 = vld [vmem:[#allocation0] sm:$0x1] }
  0x8a   :  { %32 = vst [vmem:[%s56_s1] sm:$0x1] %v30_v8 }

// kernel: net_forward.1
= control target key start
LH: loop header
LB: loop body
LE: loop exit
PB: predicated region body
PF: predicated region fallthrough
CT: control target
= control target key end

     0   :  { %s8277_s30 = smov 0   ;;  %s9587_s0 = inlined_call_operand.vmem [shape: bf16[896,28], index: 0, kind: input, shape index: {}]   ;;  %s9588_s1 = inlined_call_operand.vmem [shape: bf16[5,28,256], index: 1, kind: input, shape index: {}]   ;;  %s9589_s2 = inlined_call_operand.vmem [shape: f32[1,128], index: 2, kind: input, shape index: {}]   ;;  %s9590_s3 = inlined_call_operand.vmem [shape: bf16[5,128,256], index: 3, kind: input, shape index: {}]   ;;  %s9591_s4 = inlined_call_operand.vmem [shape: f32[1,128], index: 4, kind: input, shape index: {}]   ;;  %s9592_s5 = inlined_call_operand.vmem [shape: bf16[4,128,50], index: 5, kind: input, shape index: {}]   ;;  %s9593_s6 = inlined_call_operand.vmem [shape: f32[1,50], index: 6, kind: input, shape index: {}]   ;;  %s9594_s7 = inlined_call_operand.vmem [shape: f32[50,10], index: 7, kind: input, shape index: {}]   ;;  %s9595_s8 = inlined_call_operand.vmem [shape: f32[1,10], index: 8, kind: input, shape index: {}]   ;;  %s9596_s9 = inlined_call_operand.vmem [shape: f32[32,10], index: 9, kind: output, shape index: {}]  }
   0x1 LB: > { %s6700_s10 = sadd.s32 4294967295, %s8222_s30   ;;  %p6704_p0 = scmp.ge.s32.totalorder %s8222_s30, 1  ;;  %s8222_s30 = sphi %s8277_s30, %s19_s30  }
   0x2   : > { %p288_p1 = scmp.lt.s32.totalorder %s8222_s30, 3 }
   0x4   : > { %p289_p2 = pnand %p6704_p0, %p288_p1 }
   0x6   : > { %292 = sbr.rel (%p289_p2) target bundleno = 2183 (0x887), region = 56 }
   0xd   : > { %v7903_v0 = vld [vmem:[%s9588_s1 + $0x24] ss:$8 sps:$4 sm:$0xff]   ;;  %vm600_vm0 = vcmask 1045504   ;;  %v7905_v1 = vld [vmem:[%s9588_s1 + $0x20] ss:$8 sps:$4 sm:$0xff]   ;;  %v9597_v2 = vmov 0  }
   0xe   : > { %1277 = vmatprep.mubr.bf16.mxu0 %v9597_v2  ;;  %s324_s15 = smul.u32 56, %s6700_s10  ;;  %639 = vmatprep.mubr.bf16.mxu1 %v9597_v2  ;;  %v7906_v3 = vld [vmem:[%s9588_s1 + $0x34] ss:$8 sps:$4 sm:$0x3f]   ;;  %v7912_v6 = vld [vmem:[%s9588_s1 + $0x44] ss:$8 sps:$4 sm:$0xff]  }
   0xf   : > { %1245 = vmatprep.subr.bf16.mxu0 %v7903_v0  ;;  %v7908_v4 = vld [vmem:[%s9588_s1 + $0x30] ss:$8 sps:$4 sm:$0x3f]   ;;  %v7910_v7 = vld [vmem:[%s9588_s1 + $0x40] ss:$8 sps:$4 sm:$0xff]   ;;  %vm527_vm1 = vcmask 228352  }
  0x10   : > { %1246 = vmatpush1.bf16.msra.mxu0 %v7905_v1  ;;  %p325_p3 = scmp.lt.s32.totalorder %s324_s15, 111  ;;  %v8303_v5 = vsel %vm600_vm0, %v7908_v4, 0  ;;  %v7921_v8 = vld [vmem:[%s9588_s1 + $0x54] ss:$8 sps:$4 sm:$0x3f]   ;;  %vm8226_vm2 = vmmov 0  }
  0x11   : > { %6793 = vmatprep.subr.msk.bf16.mxu0 %vm600_vm0, %v7906_v3  ;;  %v7923_v9 = vld [vmem:[%s9588_s1 + $0x50] ss:$8 sps:$4 sm:$0x3f]   ;;  %v7934_v14 = vld [vmem:[%s9588_s1 + $0x64] ss:$8 sps:$4 sm:$0xff]   ;;  %vm6538_vm3 = vcmask 1041408  }
  0x12   : > { %s9661_s15 = smov (!%p325_p3, %s324_s15), 111  ;;  %v2070_v11 = vsel %vm600_vm0, %v7923_v9, 0  ;;  %v7932_v29 = vld [vmem:[%s9588_s1 + $0x60] ss:$8 sps:$4 sm:$0xff]   ;;  %v7964_v41 = vld [vmem:[%s9588_s1 + $0x84] ss:$8 sps:$4 sm:$0xff]  }
  0x13   : > { %s6705_s24 = sshll.u32 %s9661_s15, 2  ;;  %v7949_v30 = vld [vmem:[%s9588_s1 + $0x70] ss:$8 sps:$4 sm:$0x3f]   ;;  %v7980_v54 = vld [vmem:[%s9588_s1 + $0x4] ss:$8 sps:$4 sm:$0xff]  }
  0x14   : > { %1248 = vmatpush1.bf16.msra.mxu0 %v8303_v5  ;;  %s8321_s12 = scalar_lea.vmem %s9587_s0, %s6705_s24  ;;  %v7947_v31 = vld [vmem:[%s9588_s1 + $0x74] ss:$8 sps:$4 sm:$0x3f]   ;;  %v2900_v32 = vsel %vm600_vm0, %v7949_v30, 0  ;;  %v7982_v55 = vld [vmem:[%s9588_s1] ss:$8 sps:$4 sm:$0xff]   ;;  %607 = vmatprep.subr.bf16.mxu1 %v7980_v54 }
  0x15   : > { %2075 = vmatprep.subr.bf16.mxu0 %v7912_v6  ;;  %v7909_v10 = vld [vmem:[%s8321_s12 + $0x8] sm:$0xff]   ;;  %v7913_v12 = vld [vmem:[%s8321_s12 + $0x10] sm:$0xff]   ;;  %v7914_v13 = vld [vmem:[%s8321_s12 + $0x18] sm:$0xff]   ;;  %608 = vmatpush1.bf16.msra.mxu1 %v7982_v55  ;;  %vm6531_vm4 = vcmask 408576   ;;  %vm6617_vm5 = vcmask 80896   ;;  %s6706_s25 = sshll.u32 %s6700_s10, 1 }
  0x16   : > { %v7915_v15 = vld [vmem:[%s8321_s12 + $0x20] sm:$0xff]   ;;  %v7916_v16 = vld [vmem:[%s8321_s12 + $0x28] sm:$0xff]   ;;  %v7917_v17 = vld [vmem:[%s8321_s12 + $0x30] sm:$0xff]   ;;  %p331_p4 = scmp.lt.s32.totalorder %s6706_s25, 3 }
  0x17   : > { %6794 = vmatmul.mubr.msk.bf16.vlgmr.msra.gmra.mrb[0].mxu0 %vm527_vm1, %v7909_v10  ;;  %v7918_v18 = vld [vmem:[%s8321_s12 + $0x38] sm:$0xff]   ;;  %v7919_v19 = vld [vmem:[%s8321_s12 + $0x40] sm:$0xff]   ;;  %v7920_v20 = vld [vmem:[%s8321_s12 + $0x48] sm:$0xff]  }
  0x18   : > { %2076 = vmatpush1.bf16.msra.mxu0 %v7910_v7  ;;  %1287 = vmatprep.mubr.bf16.mxu0 %v9597_v2  ;;  %v7924_v21 = vld [vmem:[%s8321_s12 + $0x50] sm:$0xff]   ;;  %v7925_v22 = vld [vmem:[%s8321_s12 + $0x58] sm:$0xff]   ;;  %v7926_v23 = vld [vmem:[%s8321_s12 + $0x60] sm:$0xff]   ;;  %s9663_s25 = smov (!%p331_p4, %s6706_s25), 3 }
  0x19   : > { %6850 = vmatprep.subr.msk.bf16.mxu0 %vm600_vm0, %v7921_v8  ;;  %v7927_v24 = vld [vmem:[%s8321_s12 + $0x68] sm:$0xff]   ;;  %v7928_v25 = vld [vmem:[%s8321_s12 + $0x70] sm:$0xff]   ;;  %v7929_v26 = vld [vmem:[%s8321_s12 + $0x78] sm:$0xff]   ;;  %s6707_s26 = sshll.u32 %s9663_s25, 3 }
  0x1a   : > { %v7930_v27 = vld [vmem:[%s8321_s12 + $0x80] sm:$0xff]   ;;  %v7931_v28 = vld [vmem:[%s8321_s12 + $0x10] sm:$0xff]   ;;  %v7935_v33 = vld [vmem:[%s8321_s12 + $0x18] sm:$0xff]   ;;  %s334_s29 = scalar_lea.vmem %s9596_s9, %s6707_s26 }
  0x1b   : > { %v7936_v34 = vld [vmem:[%s8321_s12 + $0x20] sm:$0xff]   ;;  %v7937_v35 = vld [vmem:[%s8321_s12 + $0x28] sm:$0xff]   ;;  %v7938_v36 = vld [vmem:[%s8321_s12 + $0x30] sm:$0xff]  }
  0x1c   : > { %2078 = vmatpush1.bf16.msra.mxu0 %v2070_v11  ;;  %v7939_v37 = vld [vmem:[%s8321_s12 + $0x38] sm:$0xff]   ;;  %v7940_v38 = vld [vmem:[%s8321_s12 + $0x40] sm:$0xff]   ;;  %v7941_v39 = vld [vmem:[%s8321_s12 + $0x48] sm:$0xff]  }
  0x1d   : > { %2905 = vmatprep.subr.bf16.mxu0 %v7934_v14  ;;  %v7942_v40 = vld [vmem:[%s8321_s12 + $0x50] sm:$0xff]   ;;  %v7943_v42 = vld [vmem:[%s8321_s12 + $0x58] sm:$0xff]   ;;  %v7944_v43 = vld [vmem:[%s8321_s12 + $0x60] sm:$0xff]  }
  0x1e   : > { %v7945_v44 = vld [vmem:[%s8321_s12 + $0x68] sm:$0xff]   ;;  %v7946_v45 = vld [vmem:[%s8321_s12 + $0x70] sm:$0xff]   ;;  %v7950_v46 = vld [vmem:[%s8321_s12 + $0x78] sm:$0xff]  }
  0x1f   : > { %6795 = vmatmul.mubr.msk.bf16.gmra.mrb[4].mxu0 %vm527_vm1, %v7913_v12  ;;  %v7951_v47 = vld [vmem:[%s8321_s12 + $0x80] sm:$0xff]   ;;  %v7952_v48 = vld [vmem:[%s8321_s12 + $0x88] sm:$0xff]   ;;  %v7953_v49 = vld [vmem:[%s8321_s12 + $0x90] sm:$0xff]  }
  0x20   : > { %1297 = vmatprep.mubr.bf16.mxu0 %v9597_v2  ;;  %v7954_v50 = vld [vmem:[%s8321_s12 + $0x98] sm:$0xff]   ;;  %v7955_v51 = vld [vmem:[%s8321_s12 + $0xa0] sm:$0xff]   ;;  %v7956_v52 = vld [vmem:[%s8321_s12 + $0xa8] sm:$0xff]  }
  0x21   : > { %v7957_v53 = vld [vmem:[%s8321_s12 + $0xb0] sm:$0xff]   ;;  %v7958_v56 = vld [vmem:[%s8321_s12 + $0xb8] sm:$0xff]   ;;  %v7987_v60 = vld [vmem:[%s8321_s12] sm:$0xff]  }
  0x22   : > { %v7984_v57 = vld [vmem:[%s9588_s1 + $0x14] ss:$8 sps:$4 sm:$0x3f]   ;;  %v7986_v58 = vld [vmem:[%s9588_s1 + $0x10] ss:$8 sps:$4 sm:$0x3f]  }
  0x23   : > { %6736 = vmatprep.subr.msk.bf16.mxu1 %vm600_vm0, %v7984_v57  ;;  %v602_v59 = vsel %vm600_vm0, %v7986_v58, 0  ;;  %v8213_v61 = vld [vmem:[%s9588_s1 + $0x24] ss:$8 sps:$4 sm:$0xff]   ;;  %v8214_v63 = vld [vmem:[%s9588_s1 + $0x20] ss:$8 sps:$4 sm:$0xff]   ;;  %v7991_v4 = vld [vmem:[%s8321_s12 + $0x10] sm:$0xff]  }
  0x24   : > { %610 = vmatpush1.bf16.msra.mxu1 %v602_v59  ;;  %v7959_v62 = vld [vmem:[%s8321_s12 + $0xc0] sm:$0xff]   ;;  %v8215_v0 = vld [vmem:[%s9588_s1 + $0x34] ss:$8 sps:$4 sm:$0x3f]   ;;  %v7989_v1 = vld [vmem:[%s8321_s12 + $0x8] sm:$0xff]  }
  0x25   : > { %7376 = vmatprep.subr.bf16.mxu1 %v8213_v61  ;;  %v7960_v3 = vld [vmem:[%s8321_s12 + $0xc8] sm:$0xff]   ;;  %v7961_v6 = vld [vmem:[%s8321_s12 + $0x18] sm:$0xff]   ;;  %v7965_v11 = vld [vmem:[%s8321_s12 + $0x20] sm:$0xff]  }
  0x26   : > { %v7962_v7 = vld [vmem:[%s9588_s1 + $0x80] ss:$8 sps:$4 sm:$0xff]   ;;  %v7979_v8 = vld [vmem:[%s9588_s1 + $0x90] ss:$8 sps:$4 sm:$0x3f]  }
  0x27   : > { %6796 = vmatmul.mubr.msk.bf16.gmra.mrb[8].mxu0 %vm527_vm1, %v7914_v13  ;;  %6737 = vmatmul.mubr.msk.bf16.vlgmr.msra.gmra.mrb[0].mxu1 %vm527_vm1, %v7987_v60  ;;  %v7993_v9 = vld [vmem:[%s8321_s12 + $0x18] sm:$0xff]   ;;  %v3730_v10 = vsel %vm600_vm0, %v7979_v8, 0  ;;  %v7995_v12 = vld [vmem:[%s8321_s12 + $0x20] sm:$0xff]   ;;  %v7966_v13 = vld [vmem:[%s8321_s12 + $0x28] sm:$0xff]  }
  0x28   : > { %1307 = vmatprep.mubr.bf16.mxu0 %v9597_v2  ;;  %649 = vmatprep.mubr.bf16.mxu1 %v9597_v2  ;;  %v7997_v14 = vld [vmem:[%s8321_s12 + $0x28] sm:$0xff]   ;;  %v8037_v54 = vld [vmem:[%s8321_s12 + $0x90] sm:$0xff]   ;;  %v8008_v57 = vld [vmem:[%s8321_s12 + $0x20] sm:$0xff]  }
  0x29   : > { %7378 = vmatpush1.bf16.msra.mxu1 %v8214_v63  ;;  %v8013_v30 = vld [vmem:[%s8321_s12 + $0x68] sm:$0xff]   ;;  %v8006_v55 = vld [vmem:[%s8321_s12 + $0xd0] sm:$0xff]   ;;  %v8041_v58 = vld [vmem:[%s8321_s12 + $0xa0] sm:$0xff]  }
  0x2a   : > { %7377 = vmatprep.subr.msk.bf16.mxu1 %vm600_vm0, %v8215_v0  ;;  %v8010_v59 = vld [vmem:[%s8321_s12 + $0x28] sm:$0xff]   ;;  %v8012_v61 = vld [vmem:[%s8321_s12 + $0x30] sm:$0xff]   ;;  %v8014_v63 = vld [vmem:[%s8321_s12 + $0x38] sm:$0xff]  }
  0x2b   : > { %v8043_v60 = vld [vmem:[%s8321_s12 + $0xa8] sm:$0xff]   ;;  %v8047_v0 = vld [vmem:[%s8321_s12 + $0xb8] sm:$0xff]  }
  0x2c   : > { %v8053_v8 = vld [vmem:[%s9590_s3] ss:$8 sps:$4 sm:$0xff]  }
  0x2d   : > { %7379 = vmatpush1.bf16.msra.mxu1 %v8303_v5  ;;  %v7977_v5 = vld [vmem:[%s9588_s1 + $0x94] ss:$8 sps:$4 sm:$0x3f]  }
  0x2f   : > { %6797 = vmatmul.mubr.msk.bf16.gmra.mrb[12].mxu0 %vm527_vm1, %v7915_v15  ;;  %6738 = vmatmul.mubr.msk.bf16.gmra.mrb[4].mxu1 %vm527_vm1, %v7989_v1  ;;  %v7967_v15 = vld [vmem:[%s8321_s12 + $0x30] sm:$0xff]   ;;  %v8016_v1 = vld [vmem:[%s8321_s12 + $0x40] sm:$0xff]  }
  0x30   : > { %1317 = vmatprep.mubr.bf16.mxu0 %v9597_v2  ;;  %659 = vmatprep.mubr.bf16.mxu1 %v9597_v2 }
  0x37   : > { %6798 = vmatmul.mubr.msk.bf16.gmra.mrb[16].mxu0 %vm527_vm1, %v7916_v16  ;;  %6739 = vmatmul.mubr.msk.bf16.gmra.mrb[8].mxu1 %vm527_vm1, %v7991_v4  ;;  %v7999_v16 = vld [vmem:[%s8321_s12 + $0x30] sm:$0xff]   ;;  %v8018_v4 = vld [vmem:[%s8321_s12 + $0x48] sm:$0xff]  }
  0x38   : > { %1327 = vmatprep.mubr.bf16.mxu0 %v9597_v2  ;;  %669 = vmatprep.mubr.bf16.mxu1 %v9597_v2 }
  0x3f   : > { %6799 = vmatmul.mubr.msk.bf16.gmra.mrb[20].mxu0 %vm527_vm1, %v7917_v17  ;;  %6740 = vmatmul.mubr.msk.bf16.gmra.mrb[12].mxu1 %vm527_vm1, %v7993_v9  ;;  %v7968_v17 = vld [vmem:[%s8321_s12 + $0x38] sm:$0xff]   ;;  %v8055_v9 = vld [vmem:[%s9590_s3 + $0x4] ss:$8 sps:$4 sm:$0xff]  }
  0x40   : > { %1337 = vmatprep.mubr.bf16.mxu0 %v9597_v2  ;;  %679 = vmatprep.mubr.bf16.mxu1 %v9597_v2 }
  0x41   : > { %4627 = vmatprep.subr.bf16.mxu1 %v8055_v9 }
  0x47   : > { %6800 = vmatmul.mubr.msk.bf16.gmra.mrb[24].mxu0 %vm527_vm1, %v7918_v18  ;;  %6741 = vmatmul.mubr.msk.bf16.gmra.mrb[16].mxu1 %vm527_vm1, %v7995_v12  ;;  %v8001_v18 = vld [vmem:[%s8321_s12 + $0x38] sm:$0xff]  }
  0x48   : > { %1347 = vmatprep.mubr.bf16.mxu0 %v9597_v2  ;;  %689 = vmatprep.mubr.bf16.mxu1 %v9597_v2 }
  0x4f   : > { %6801 = vmatmul.mubr.msk.bf16.gmra.mrb[28].mxu0 %vm527_vm1, %v7919_v19  ;;  %6742 = vmatmul.mubr.msk.bf16.gmra.mrb[20].mxu1 %vm527_vm1, %v7997_v14  ;;  %v7969_v19 = vld [vmem:[%s8321_s12 + $0x40] sm:$0xff]   ;;  %v8056_v14 = vld [vmem:[%s9590_s3 + $0x10] ss:$8 sps:$4 sm:$0xff]  }
  0x50   : > { %1357 = vmatprep.mubr.bf16.mxu0 %v9597_v2  ;;  %699 = vmatprep.mubr.bf16.mxu1 %v9597_v2 }
  0x57   : > { %6802 = vmatmul.mubr.msk.bf16.gmra.mrb[32].mxu0 %vm527_vm1, %v7920_v20  ;;  %6743 = vmatmul.mubr.msk.bf16.gmra.mrb[24].mxu1 %vm527_vm1, %v7999_v16  ;;  %v8003_v20 = vld [vmem:[%s8321_s12 + $0x40] sm:$0xff]  }
  0x58   : > { %1367 = vmatprep.mubr.bf16.mxu0 %v9597_v2  ;;  %709 = vmatprep.mubr.bf16.mxu1 %v9597_v2 }
  0x5f   : > { %6803 = vmatmul.mubr.msk.bf16.gmra.mrb[36].mxu0 %vm527_vm1, %v7924_v21  ;;  %6744 = vmatmul.mubr.msk.bf16.gmra.mrb[28].mxu1 %vm527_vm1, %v8001_v18  ;;  %v7970_v21 = vld [vmem:[%s8321_s12 + $0x48] sm:$0xff]  }
  0x60   : > { %1377 = vmatprep.mubr.bf16.mxu0 %v9597_v2  ;;  %719 = vmatprep.mubr.bf16.mxu1 %v9597_v2 }
  0x67   : > { %6804 = vmatmul.mubr.msk.bf16.gmra.mrb[40].mxu0 %vm527_vm1, %v7925_v22  ;;  %6745 = vmatmul.mubr.msk.bf16.gmra.mrb[32].mxu1 %vm527_vm1, %v8003_v20  ;;  %v8005_v22 = vld [vmem:[%s8321_s12 + $0x48] sm:$0xff]  }
  0x68   : > { %1387 = vmatprep.mubr.bf16.mxu0 %v9597_v2  ;;  %729 = vmatprep.mubr.bf16.mxu1 %v9597_v2 }
  0x6f   : > { %6805 = vmatmul.mubr.msk.bf16.gmra.mrb[44].mxu0 %vm527_vm1, %v7926_v23  ;;  %v7971_v23 = vld [vmem:[%s8321_s12 + $0x50] sm:$0xff]   ;;  %6746 = vmatmul.mubr.msk.bf16.gmra.mrb[36].mxu1 %vm527_vm1, %v8005_v22 }
  0x70   : > { %1397 = vmatprep.mubr.bf16.mxu0 %v9597_v2  ;;  %739 = vmatprep.mubr.bf16.mxu1 %v9597_v2 }
  0x77   : > { %6806 = vmatmul.mubr.msk.bf16.gmra.mrb[48].mxu0 %vm527_vm1, %v7927_v24  ;;  %v8007_v24 = vld [vmem:[%s8321_s12 + $0x50] sm:$0xff]  }
  0x78   : > { %1407 = vmatprep.mubr.bf16.mxu0 %v9597_v2  ;;  %6747 = vmatmul.mubr.msk.bf16.gmra.mrb[40].mxu1 %vm527_vm1, %v8007_v24  ;;  %v8028_v24 = vld [vmem:[%s8321_s12 + $0x70] sm:$0xff]  }
  0x79   : > { %749 = vmatprep.mubr.bf16.mxu1 %v9597_v2 }
  0x7f   : > { %6807 = vmatmul.mubr.msk.bf16.gmra.mrb[52].mxu0 %vm527_vm1, %v7928_v25  ;;  %v7972_v25 = vld [vmem:[%s8321_s12 + $0x58] sm:$0xff]  }
  0x80   : > { %1417 = vmatprep.mubr.bf16.mxu0 %v9597_v2 }
  0x87   : > { %6808 = vmatmul.mubr.msk.bf16.gmra.mrb[56].mxu0 %vm527_vm1, %v7929_v26  ;;  %v8009_v26 = vld [vmem:[%s8321_s12 + $0x58] sm:$0xff]  }
  0x88   : > { %1427 = vmatprep.mubr.bf16.mxu0 %v9597_v2  ;;  %6748 = vmatmul.mubr.msk.bf16.gmra.mrb[44].mxu1 %vm527_vm1, %v8009_v26  ;;  %v8059_v26 = vld [vmem:[%s9590_s3 + $0x20] ss:$8 sps:$4 sm:$0xff]  }
  0x89   : > { %759 = vmatprep.mubr.bf16.mxu1 %v9597_v2 }
  0x8f   : > { %6809 = vmatmul.mubr.msk.bf16.gmra.mrb[60].mxu0 %vm527_vm1, %v7930_v27  ;;  %v7973_v27 = vld [vmem:[%s8321_s12 + $0x60] sm:$0xff]  }
  0x90   : > { %2107 = vmatprep.mubr.bf16.mxu0 %v9597_v2 }
  0x97   : > { %6851 = vmatmul.mubr.msk.bf16.vlgmr.msra.gmra.mrb[0].mxu0 %vm527_vm1, %v7931_v28  ;;  %v8011_v28 = vld [vmem:[%s8321_s12 + $0x60] sm:$0xff]  }
  0x98   : > { %2906 = vmatpush1.bf16.msra.mxu0 %v7932_v29  ;;  %2117 = vmatprep.mubr.bf16.mxu0 %v9597_v2  ;;  %v7974_v29 = vld [vmem:[%s8321_s12 + $0x68] sm:$0xff]  }
  0x99   : > { %6907 = vmatprep.subr.msk.bf16.mxu0 %vm600_vm0, %v7947_v31  ;;  %6749 = vmatmul.mubr.msk.bf16.gmra.mrb[48].mxu1 %vm527_vm1, %v8011_v28  ;;  %v7975_v31 = vld [vmem:[%s8321_s12 + $0x70] sm:$0xff]   ;;  %v8030_v28 = vld [vmem:[%s8321_s12 + $0x78] sm:$0xff]  }
  0x9a   : > { %769 = vmatprep.mubr.bf16.mxu1 %v9597_v2 }
  0x9c   : > { %2908 = vmatpush1.bf16.msra.mxu0 %v2900_v32  ;;  %v8015_v32 = vld [vmem:[%s8321_s12 + $0x70] sm:$0xff]  }
  0x9d   : > { %3735 = vmatprep.subr.bf16.mxu0 %v7964_v41  ;;  %v7992_v41 = vld [vmem:[%s8321_s12 + $0x98] sm:$0xff]  }
  0x9f   : > { %6852 = vmatmul.mubr.msk.bf16.gmra.mrb[4].mxu0 %vm527_vm1, %v7935_v33  ;;  %v7976_v33 = vld [vmem:[%s8321_s12 + $0x78] sm:$0xff]  }
  0xa0   : > { %2127 = vmatprep.mubr.bf16.mxu0 %v9597_v2 }
  0xa1   : > { %6750 = vmatmul.mubr.msk.bf16.gmra.mrb[52].mxu1 %vm527_vm1, %v8013_v30  ;;  %v8062_v30 = vld [vmem:[%s9590_s3 + $0x30] ss:$8 sps:$4 sm:$0xff]  }
  0xa2   : > { %779 = vmatprep.mubr.bf16.mxu1 %v9597_v2 }
  0xa7   : > { %6853 = vmatmul.mubr.msk.bf16.gmra.mrb[8].mxu0 %vm527_vm1, %v7936_v34  ;;  %v8017_v34 = vld [vmem:[%s8321_s12 + $0x78] sm:$0xff]  }
  0xa8   : > { %2137 = vmatprep.mubr.bf16.mxu0 %v9597_v2 }
  0xa9   : > { %6751 = vmatmul.mubr.msk.bf16.gmra.mrb[56].mxu1 %vm527_vm1, %v8015_v32 }
  0xaa   : > { %789 = vmatprep.mubr.bf16.mxu1 %v9597_v2 }
  0xaf   : > { %6854 = vmatmul.mubr.msk.bf16.gmra.mrb[12].mxu0 %vm527_vm1, %v7937_v35  ;;  %v7983_v35 = vld [vmem:[%s8321_s12 + $0x80] sm:$0xff]  }
  0xb0   : > { %2147 = vmatprep.mubr.bf16.mxu0 %v9597_v2 }
  0xb1   : > { %6752 = vmatmul.mubr.msk.bf16.gmra.mrb[60].mxu1 %vm527_vm1, %v8017_v34 }
  0xb2   : > { %799 = vmatprep.mubr.bf16.mxu1 %v9597_v2 }
  0xb7   : > { %6855 = vmatmul.mubr.msk.bf16.gmra.mrb[16].mxu0 %vm527_vm1, %v7938_v36  ;;  %v8019_v36 = vld [vmem:[%s8321_s12 + $0x80] sm:$0xff]  }
  0xb8   : > { %2157 = vmatprep.mubr.bf16.mxu0 %v9597_v2 }
  0xb9   : > { %6753 = vmatmul.mubr.msk.bf16.gmra.mrb[64].mxu1 %vm527_vm1, %v8019_v36 }
  0xba   : > { %809 = vmatprep.mubr.bf16.mxu1 %v9597_v2 }
  0xbf   : > { %6856 = vmatmul.mubr.msk.bf16.gmra.mrb[20].mxu0 %vm527_vm1, %v7939_v37  ;;  %v7988_v37 = vld [vmem:[%s8321_s12 + $0x88] sm:$0xff]  }
  0xc0   : > { %2167 = vmatprep.mubr.bf16.mxu0 %v9597_v2 }
  0xc7   : > { %6857 = vmatmul.mubr.msk.bf16.gmra.mrb[24].mxu0 %vm527_vm1, %v7940_v38  ;;  %v8021_v38 = vld [vmem:[%s8321_s12 + $0x88] sm:$0xff]  }
  0xc8   : > { %2177 = vmatprep.mubr.bf16.mxu0 %v9597_v2  ;;  %6754 = vmatmul.mubr.msk.bf16.gmra.mrb[68].mxu1 %vm527_vm1, %v8021_v38  ;;  %v8070_v38 = vld [vmem:[%s9590_s3 + $0x54] ss:$8 sps:$4 sm:$0xff]  }
  0xc9   : > { %819 = vmatprep.mubr.bf16.mxu1 %v9597_v2 }
  0xcf   : > { %6858 = vmatmul.mubr.msk.bf16.gmra.mrb[28].mxu0 %vm527_vm1, %v7941_v39  ;;  %v7990_v39 = vld [vmem:[%s8321_s12 + $0x90] sm:$0xff]  }
  0xd0   : > { %2187 = vmatprep.mubr.bf16.mxu0 %v9597_v2 }
  0xd7   : > { %6859 = vmatmul.mubr.msk.bf16.gmra.mrb[32].mxu0 %vm527_vm1, %v7942_v40  ;;  %v8023_v40 = vld [vmem:[%s8321_s12 + $0x90] sm:$0xff]  }
  0xd8   : > { %2197 = vmatprep.mubr.bf16.mxu0 %v9597_v2  ;;  %6755 = vmatmul.mubr.msk.bf16.gmra.mrb[72].mxu1 %vm527_vm1, %v8023_v40 }
  0xd9   : > { %829 = vmatprep.mubr.bf16.mxu1 %v9597_v2 }
  0xdf   : > { %6860 = vmatmul.mubr.msk.bf16.gmra.mrb[36].mxu0 %vm527_vm1, %v7943_v42  ;;  %v8025_v42 = vld [vmem:[%s8321_s12 + $0x98] sm:$0xff]  }
  0xe0   : > { %2207 = vmatprep.mubr.bf16.mxu0 %v9597_v2  ;;  %6756 = vmatmul.mubr.msk.bf16.gmra.mrb[76].mxu1 %vm527_vm1, %v8025_v42  ;;  %v8073_v42 = vld [vmem:[%s9590_s3 + $0x64] ss:$8 sps:$4 sm:$0xff]  }
  0xe1   : > { %839 = vmatprep.mubr.bf16.mxu1 %v9597_v2 }
  0xe7   : > { %6861 = vmatmul.mubr.msk.bf16.gmra.mrb[40].mxu0 %vm527_vm1, %v7944_v43  ;;  %v7994_v43 = vld [vmem:[%s8321_s12 + $0xa0] sm:$0xff]  }
  0xe8   : > { %2217 = vmatprep.mubr.bf16.mxu0 %v9597_v2 }
  0xef   : > { %6862 = vmatmul.mubr.msk.bf16.gmra.mrb[44].mxu0 %vm527_vm1, %v7945_v44  ;;  %v8027_v44 = vld [vmem:[%s8321_s12 + $0xa0] sm:$0xff]  }
  0xf0   : > { %2227 = vmatprep.mubr.bf16.mxu0 %v9597_v2  ;;  %6757 = vmatmul.mubr.msk.bf16.gmra.mrb[80].mxu1 %vm527_vm1, %v8027_v44  ;;  %v8071_v44 = vld [vmem:[%s9590_s3 + $0x60] ss:$8 sps:$4 sm:$0xff]  }
  0xf1   : > { %849 = vmatprep.mubr.bf16.mxu1 %v9597_v2 }
  0xf7   : > { %6863 = vmatmul.mubr.msk.bf16.gmra.mrb[48].mxu0 %vm527_vm1, %v7946_v45  ;;  %v7996_v45 = vld [vmem:[%s8321_s12 + $0xa8] sm:$0xff]  }
  0xf8   : > { %2237 = vmatprep.mubr.bf16.mxu0 %v9597_v2 }
  0xff   : > { %6864 = vmatmul.mubr.msk.bf16.gmra.mrb[52].mxu0 %vm527_vm1, %v7950_v46  ;;  %v8029_v46 = vld [vmem:[%s8321_s12 + $0xa8] sm:$0xff]  }
 0x100   : > { %2247 = vmatprep.mubr.bf16.mxu0 %v9597_v2  ;;  %6758 = vmatmul.mubr.msk.bf16.gmra.mrb[84].mxu1 %vm527_vm1, %v8029_v46  ;;  %v8034_v46 = vld [vmem:[%s8321_s12 + $0x88] sm:$0xff]  }
 0x101   : > { %859 = vmatprep.mubr.bf16.mxu1 %v9597_v2 }
 0x107   : > { %6865 = vmatmul.mubr.msk.bf16.gmra.mrb[56].mxu0 %vm527_vm1, %v7951_v47  ;;  %v7998_v47 = vld [vmem:[%s8321_s12 + $0xb0] sm:$0xff]  }
 0x108   : > { %2257 = vmatprep.mubr.bf16.mxu0 %v9597_v2 }
 0x10f   : > { %6866 = vmatmul.mubr.msk.bf16.gmra.mrb[60].mxu0 %vm527_vm1, %v7952_v48  ;;  %v8031_v48 = vld [vmem:[%s8321_s12 + $0xb0] sm:$0xff]  }
 0x110   : > { %2267 = vmatprep.mubr.bf16.mxu0 %v9597_v2  ;;  %6759 = vmatmul.mubr.msk.bf16.gmra.mrb[88].mxu1 %vm527_vm1, %v8031_v48  ;;  %v8074_v48 = vld [vmem:[%s9590_s3 + $0x70] ss:$8 sps:$4 sm:$0xff]  }
 0x111   : > { %869 = vmatprep.mubr.bf16.mxu1 %v9597_v2 }
 0x117   : > { %6867 = vmatmul.mubr.msk.bf16.gmra.mrb[64].mxu0 %vm527_vm1, %v7953_v49  ;;  %v8000_v49 = vld [vmem:[%s8321_s12 + $0xb8] sm:$0xff]  }
 0x118   : > { %2277 = vmatprep.mubr.bf16.mxu0 %v9597_v2 }
 0x11f   : > { %6868 = vmatmul.mubr.msk.bf16.gmra.mrb[68].mxu0 %vm527_vm1, %v7954_v50  ;;  %v8033_v50 = vld [vmem:[%s8321_s12 + $0xb8] sm:$0xff]  }
 0x120   : > { %2287 = vmatprep.mubr.bf16.mxu0 %v9597_v2  ;;  %6760 = vmatmul.mubr.msk.bf16.gmra.mrb[92].mxu1 %vm527_vm1, %v8033_v50 }
 0x121   : > { %1437 = vmatprep.mubr.bf16.mxu1 %v9597_v2 }
 0x127   : > { %6869 = vmatmul.mubr.msk.bf16.gmra.mrb[72].mxu0 %vm527_vm1, %v7955_v51  ;;  %v8002_v51 = vld [vmem:[%s8321_s12 + $0xc0] sm:$0xff]  }
 0x128   : > { %2297 = vmatprep.mubr.bf16.mxu0 %v9597_v2 }
 0x12f   : > { %6870 = vmatmul.mubr.msk.bf16.gmra.mrb[76].mxu0 %vm527_vm1, %v7956_v52  ;;  %v8035_v52 = vld [vmem:[%s8321_s12 + $0x88] sm:$0xff]  }
 0x130   : > { %2307 = vmatprep.mubr.bf16.mxu0 %v9597_v2  ;;  %6810 = vmatmul.mubr.msk.bf16.vlgmr.msra.gmra.mrb[64].mxu1 %vm527_vm1, %v8035_v52 }
 0x131   : > { %1447 = vmatprep.mubr.bf16.mxu1 %v9597_v2  ;;  %4628 = vmatpush1.bf16.msra.mxu1 %v8053_v8 }
 0x137   : > { %6871 = vmatmul.mubr.msk.bf16.gmra.mrb[80].mxu0 %vm527_vm1, %v7957_v53  ;;  %v8004_v53 = vld [vmem:[%s8321_s12 + $0xc8] sm:$0xff]  }
 0x138   : > { %2317 = vmatprep.mubr.bf16.mxu0 %v9597_v2  ;;  %6811 = vmatmul.mubr.msk.bf16.gmra.mrb[68].mxu1 %vm527_vm1, %v8037_v54 }
 0x139   : > { %1457 = vmatprep.mubr.bf16.mxu1 %v9597_v2 }
 0x13f   : > { %6872 = vmatmul.mubr.msk.bf16.gmra.mrb[84].mxu0 %vm527_vm1, %v7958_v56  ;;  %v8039_v56 = vld [vmem:[%s8321_s12 + $0x98] sm:$0xff]  }
 0x140   : > { %2327 = vmatprep.mubr.bf16.mxu0 %v9597_v2  ;;  %6812 = vmatmul.mubr.msk.bf16.gmra.mrb[72].mxu1 %vm527_vm1, %v8039_v56 }
 0x141   : > { %1467 = vmatprep.mubr.bf16.mxu1 %v9597_v2 }
 0x147   : > { %6873 = vmatmul.mubr.msk.bf16.gmra.mrb[88].mxu0 %vm527_vm1, %v7959_v62  ;;  %v8045_v62 = vld [vmem:[%s8321_s12 + $0xb0] sm:$0xff]  }
 0x148   : > { %2337 = vmatprep.mubr.bf16.mxu0 %v9597_v2  ;;  %6813 = vmatmul.mubr.msk.bf16.gmra.mrb[76].mxu1 %vm527_vm1, %v8041_v58  ;;  %v8038_v58 = vld [vmem:[%s8321_s12 + $0x98] sm:$0xff]  }
 0x149   : > { %1477 = vmatprep.mubr.bf16.mxu1 %v9597_v2 }
 0x14f   : > { %6874 = vmatmul.mubr.msk.bf16.gmra.mrb[92].mxu0 %vm527_vm1, %v7960_v3  ;;  %v8049_v3 = vld [vmem:[%s8321_s12 + $0xc0] sm:$0xff]  }
 0x150   : > { %2937 = vmatprep.mubr.bf16.mxu0 %v9597_v2  ;;  %6814 = vmatmul.mubr.msk.bf16.gmra.mrb[80].mxu1 %vm527_vm1, %v8043_v60 }
 0x151   : > { %1487 = vmatprep.mubr.bf16.mxu1 %v9597_v2 }
 0x157   : > { %6908 = vmatmul.mubr.msk.bf16.vlgmr.msra.gmra.mrb[0].mxu0 %vm527_vm1, %v7961_v6  ;;  %v8020_v6 = vld [vmem:[%s8321_s12 + $0x50] sm:$0xff]  }
 0x158   : > { %3736 = vmatpush1.bf16.msra.mxu0 %v7962_v7  ;;  %2947 = vmatprep.mubr.bf16.mxu0 %v9597_v2  ;;  %v8022_v7 = vld [vmem:[%s8321_s12 + $0x58] sm:$0xff]  }
 0x159   : > { %6964 = vmatprep.subr.msk.bf16.mxu0 %vm600_vm0, %v7977_v5  ;;  %6815 = vmatmul.mubr.msk.bf16.gmra.mrb[84].mxu1 %vm527_vm1, %v8045_v62  ;;  %v8689_v5 = vpop.f32.mrb[0].mxu1 }
 0x15a   : > { %1497 = vmatprep.mubr.bf16.mxu1 %v9597_v2 }
 0x15c   : > { %3738 = vmatpush1.bf16.msra.mxu0 %v3730_v10  ;;  %v8698_v10 = vpop.f32.mrb[1].mxu1 }
 0x15d   : > { %v8703_v12 = vpop.f32.mrb[2].mxu1 }
 0x15f   : > { %6909 = vmatmul.mubr.msk.bf16.gmra.mrb[4].mxu0 %vm527_vm1, %v7965_v11  ;;  %v8058_v11 = vld [vmem:[%s9590_s3 + $0x14] ss:$8 sps:$4 sm:$0xff]  }
 0x160   : > { %2957 = vmatprep.mubr.bf16.mxu0 %v9597_v2  ;;  %4629 = vmatprep.subr.bf16.mxu1 %v8058_v11 }
 0x161   : > { %6816 = vmatmul.mubr.msk.bf16.gmra.mrb[88].mxu1 %vm527_vm1, %v8047_v0 }
 0x162   : > { %1507 = vmatprep.mubr.bf16.mxu1 %v9597_v2  ;;  %4630 = vmatpush1.bf16.msra.mxu1 %v8056_v14  ;;  %v8044_v14 = vld [vmem:[%s8321_s12 + $0xb0] sm:$0xff]  }
 0x167   : > { %6910 = vmatmul.mubr.msk.bf16.gmra.mrb[8].mxu0 %vm527_vm1, %v7966_v13  ;;  %v8705_v13 = vpop.f32.mrb[3].mxu1 }
 0x168   : > { %2967 = vmatprep.mubr.bf16.mxu0 %v9597_v2  ;;  %v8711_v16 = vpop.f32.mrb[4].mxu1 }
 0x169   : > { %6817 = vmatmul.mubr.msk.bf16.gmra.mrb[92].mxu1 %vm527_vm1, %v8049_v3 }
 0x16a   : > { %4659 = vmatprep.mubr.bf16.mxu1 %v9597_v2 }
 0x16f   : > { %6911 = vmatmul.mubr.msk.bf16.gmra.mrb[12].mxu0 %vm527_vm1, %v7967_v15  ;;  %v8024_v15 = vld [vmem:[%s8321_s12 + $0x60] sm:$0xff]  }
 0x170   : > { %2977 = vmatprep.mubr.bf16.mxu0 %v9597_v2 }
 0x177   : > { %6912 = vmatmul.mubr.msk.bf16.gmra.mrb[16].mxu0 %vm527_vm1, %v7968_v17  ;;  %v8713_v17 = vpop.f32.mrb[5].mxu1 }
 0x178   : > { %2987 = vmatprep.mubr.bf16.mxu0 %v9597_v2  ;;  %v8715_v18 = vpop.f32.mrb[6].mxu1 }
 0x17f   : > { %6913 = vmatmul.mubr.msk.bf16.gmra.mrb[20].mxu0 %vm527_vm1, %v7969_v19  ;;  %v8717_v19 = vpop.f32.mrb[7].mxu1 }
 0x180   : > { %2997 = vmatprep.mubr.bf16.mxu0 %v9597_v2  ;;  %v8720_v20 = vpop.f32.mrb[8].mxu1 }
 0x187   : > { %6914 = vmatmul.mubr.msk.bf16.gmra.mrb[24].mxu0 %vm527_vm1, %v7970_v21  ;;  %v8723_v21 = vpop.f32.mrb[9].mxu1 }
 0x188   : > { %3007 = vmatprep.mubr.bf16.mxu0 %v9597_v2  ;;  %v8725_v22 = vpop.f32.mrb[10].mxu1 }
 0x18f   : > { %6915 = vmatmul.mubr.msk.bf16.gmra.mrb[28].mxu0 %vm527_vm1, %v7971_v23  ;;  %v8026_v23 = vld [vmem:[%s8321_s12 + $0x68] sm:$0xff]  }
 0x190   : > { %3017 = vmatprep.mubr.bf16.mxu0 %v9597_v2 }
 0x197   : > { %6916 = vmatmul.mubr.msk.bf16.gmra.mrb[32].mxu0 %vm527_vm1, %v7972_v25  ;;  %v8061_v25 = vld [vmem:[%s9590_s3 + $0x24] ss:$8 sps:$4 sm:$0xff]  }
 0x198   : > { %3027 = vmatprep.mubr.bf16.mxu0 %v9597_v2  ;;  %4631 = vmatprep.subr.bf16.mxu1 %v8061_v25 }
 0x199   : > { %4632 = vmatpush1.bf16.msra.mxu1 %v8059_v26  ;;  %v8046_v26 = vld [vmem:[%s8321_s12 + $0xb8] sm:$0xff]  }
 0x19f   : > { %6917 = vmatmul.mubr.msk.bf16.gmra.mrb[36].mxu0 %vm527_vm1, %v7973_v27  ;;  %v8739_v27 = vpop.f32.mrb[11].mxu1 }
 0x1a0   : > { %3037 = vmatprep.mubr.bf16.mxu0 %v9597_v2 }
 0x1a7   : > { %6918 = vmatmul.mubr.msk.bf16.gmra.mrb[40].mxu0 %vm527_vm1, %v7974_v29  ;;  %v8064_v29 = vld [vmem:[%s9590_s3 + $0x34] ss:$8 sps:$4 sm:$0xff]  }
 0x1a8   : > { %3047 = vmatprep.mubr.bf16.mxu0 %v9597_v2  ;;  %4633 = vmatprep.subr.bf16.mxu1 %v8064_v29 }
 0x1a9   : > { %4634 = vmatpush1.bf16.msra.mxu1 %v8062_v30 }
 0x1af   : > { %6919 = vmatmul.mubr.msk.bf16.gmra.mrb[44].mxu0 %vm527_vm1, %v7975_v31  ;;  %v8749_v31 = vpop.f32.mrb[12].mxu1 }
 0x1b0   : > { %3057 = vmatprep.mubr.bf16.mxu0 %v9597_v2  ;;  %v8752_v32 = vpop.f32.mrb[13].mxu1 }
 0x1b1   : > { %v8757_v34 = vpop.f32.mrb[14].mxu1 }
 0x1b2   : > { %v8762_v36 = vpop.f32.mrb[15].mxu1 }
 0x1b3   : > { %v8772_v40 = vpop.f32.mrb[16].mxu1 }
 0x1b7   : > { %6920 = vmatmul.mubr.msk.bf16.gmra.mrb[48].mxu0 %vm527_vm1, %v7976_v33  ;;  %v8067_v33 = vld [vmem:[%s9590_s3 + $0x44] ss:$8 sps:$4 sm:$0xff]  }
 0x1b8   : > { %3067 = vmatprep.mubr.bf16.mxu0 %v9597_v2  ;;  %4635 = vmatprep.subr.bf16.mxu1 %v8067_v33 }
 0x1bf   : > { %6921 = vmatmul.mubr.msk.bf16.gmra.mrb[52].mxu0 %vm527_vm1, %v7983_v35  ;;  %v8065_v35 = vld [vmem:[%s9590_s3 + $0x40] ss:$8 sps:$4 sm:$0xff]  }
 0x1c0   : > { %3077 = vmatprep.mubr.bf16.mxu0 %v9597_v2  ;;  %4636 = vmatpush1.bf16.msra.mxu1 %v8065_v35  ;;  %v8048_v35 = vld [vmem:[%s8321_s12 + $0xc0] sm:$0xff]  }
 0x1c1   : > { %4637 = vmatprep.subr.bf16.mxu1 %v8070_v38 }
 0x1c7   : > { %6922 = vmatmul.mubr.msk.bf16.gmra.mrb[56].mxu0 %vm527_vm1, %v7988_v37  ;;  %v8032_v37 = vld [vmem:[%s8321_s12 + $0x80] sm:$0xff]  }
 0x1c8   : > { %3087 = vmatprep.mubr.bf16.mxu0 %v9597_v2 }
 0x1cf   : > { %6923 = vmatmul.mubr.msk.bf16.gmra.mrb[60].mxu0 %vm527_vm1, %v7990_v39  ;;  %v8068_v39 = vld [vmem:[%s9590_s3 + $0x50] ss:$8 sps:$4 sm:$0xff]  }
 0x1d0   : > { %3097 = vmatprep.mubr.bf16.mxu0 %v9597_v2  ;;  %4638 = vmatpush1.bf16.msra.mxu1 %v8068_v39 }
 0x1d1   : > { %4639 = vmatprep.subr.bf16.mxu1 %v8073_v42 }
 0x1d4   : > { %4640 = vmatpush1.bf16.msra.mxu1 %v8071_v44  ;;  %v8050_v44 = vld [vmem:[%s8321_s12 + $0xc8] sm:$0xff]  }
 0x1d7   : > { %6924 = vmatmul.mubr.msk.bf16.gmra.mrb[64].mxu0 %vm527_vm1, %v7992_v41  ;;  %v8775_v41 = vpop.f32.mrb[17].mxu1 }
 0x1d8   : > { %3107 = vmatprep.mubr.bf16.mxu0 %v9597_v2 }
 0x1df   : > { %6925 = vmatmul.mubr.msk.bf16.gmra.mrb[68].mxu0 %vm527_vm1, %v7994_v43  ;;  %v8780_v43 = vpop.f32.mrb[18].mxu1 }
 0x1e0   : > { %3117 = vmatprep.mubr.bf16.mxu0 %v9597_v2 }
 0x1e7   : > { %6926 = vmatmul.mubr.msk.bf16.gmra.mrb[72].mxu0 %vm527_vm1, %v7996_v45  ;;  %v8785_v45 = vpop.f32.mrb[19].mxu1 }
 0x1e8   : > { %3127 = vmatprep.mubr.bf16.mxu0 %v9597_v2 }
 0x1ef   : > { %6927 = vmatmul.mubr.msk.bf16.gmra.mrb[76].mxu0 %vm527_vm1, %v7998_v47  ;;  %v8076_v47 = vld [vmem:[%s9590_s3 + $0x74] ss:$8 sps:$4 sm:$0xff]  }
 0x1f0   : > { %3137 = vmatprep.mubr.bf16.mxu0 %v9597_v2  ;;  %4641 = vmatprep.subr.bf16.mxu1 %v8076_v47  ;;  %v8079_v47 = vld [vmem:[%s9590_s3 + $0x84] ss:$8 sps:$4 sm:$0xff]  }
 0x1f1   : > { %4642 = vmatpush1.bf16.msra.mxu1 %v8074_v48 }
 0x1f2   : > { %4869 = vmatprep.subr.bf16.mxu1 %v8079_v47 }
 0x1f7   : > { %6928 = vmatmul.mubr.msk.bf16.gmra.mrb[80].mxu0 %vm527_vm1, %v8000_v49  ;;  %v8795_v49 = vpop.f32.mrb[20].mxu1 }
 0x1f8   : > { %3147 = vmatprep.mubr.bf16.mxu0 %v9597_v2  ;;  %v8798_v50 = vpop.f32.mrb[21].mxu1 }
 0x1ff   : > { %6929 = vmatmul.mubr.msk.bf16.gmra.mrb[84].mxu0 %vm527_vm1, %v8002_v51  ;;  %v8800_v51 = vpop.f32.mrb[22].mxu1 }
 0x200   : > { %3157 = vmatprep.mubr.bf16.mxu0 %v9597_v2  ;;  %v8802_v52 = vpop.f32.mrb[23].mxu1 }
 0x201   : > { %v8806_v54 = vpop.f32.mrb[24].mxu1 }
 0x207   : > { %6930 = vmatmul.mubr.msk.bf16.gmra.mrb[88].mxu0 %vm527_vm1, %v8004_v53  ;;  %v8036_v53 = vld [vmem:[%s8321_s12 + $0x90] sm:$0xff]  }
 0x208   : > { %3167 = vmatprep.mubr.bf16.mxu0 %v9597_v2 }
 0x20f   : > { %6931 = vmatmul.mubr.msk.bf16.gmra.mrb[92].mxu0 %vm527_vm1, %v8006_v55  ;;  %v8809_v55 = vpop.f32.mrb[25].mxu1 }
 0x210   : > { %3767 = vmatprep.mubr.bf16.mxu0 %v9597_v2  ;;  %v8811_v56 = vpop.f32.mrb[26].mxu1 }
 0x217   : > { %6965 = vmatmul.mubr.msk.bf16.vlgmr.msra.gmra.mrb[0].mxu0 %vm527_vm1, %v8008_v57  ;;  %v8813_v57 = vpop.f32.mrb[27].mxu1 }
 0x218   : > { %3777 = vmatprep.mubr.bf16.mxu0 %v9597_v2 }
 0x21f   : > { %6966 = vmatmul.mubr.msk.bf16.gmra.mrb[4].mxu0 %vm527_vm1, %v8010_v59  ;;  %v8817_v59 = vpop.f32.mrb[28].mxu1 }
 0x220   : > { %3787 = vmatprep.mubr.bf16.mxu0 %v9597_v2  ;;  %v8820_v60 = vpop.f32.mrb[29].mxu1 }
 0x227   : > { %6967 = vmatmul.mubr.msk.bf16.gmra.mrb[8].mxu0 %vm527_vm1, %v8012_v61  ;;  %v8822_v61 = vpop.f32.mrb[30].mxu1 }
 0x228   : > { %3797 = vmatprep.mubr.bf16.mxu0 %v9597_v2  ;;  %v8824_v62 = vpop.f32.mrb[31].mxu1 }
 0x229   : > { %v8828_v0 = vpop.f32.mrb[32].mxu1 }
 0x22f   : > { %6968 = vmatmul.mubr.msk.bf16.gmra.mrb[12].mxu0 %vm527_vm1, %v8014_v63  ;;  %v8040_v63 = vld [vmem:[%s8321_s12 + $0xa0] sm:$0xff]  }
 0x230   : > { %3807 = vmatprep.mubr.bf16.mxu0 %v9597_v2 }
 0x237   : > { %6969 = vmatmul.mubr.msk.bf16.gmra.mrb[16].mxu0 %vm527_vm1, %v8016_v1  ;;  %v8831_v1 = vpop.f32.mrb[33].mxu1 }
 0x238   : > { %3817 = vmatprep.mubr.bf16.mxu0 %v9597_v2  ;;  %v8833_v3 = vpop.f32.mrb[34].mxu1 }
 0x23f   : > { %6970 = vmatmul.mubr.msk.bf16.gmra.mrb[20].mxu0 %vm527_vm1, %v8018_v4  ;;  %v8835_v4 = vpop.f32.mrb[35].mxu1 }
 0x240   : > { %3827 = vmatprep.mubr.bf16.mxu0 %v9597_v2 }
 0x247   : > { %6971 = vmatmul.mubr.msk.bf16.gmra.mrb[24].mxu0 %vm527_vm1, %v8020_v6  ;;  %v8042_v6 = vld [vmem:[%s8321_s12 + $0xa8] sm:$0xff]  }
 0x248   : > { %3837 = vmatprep.mubr.bf16.mxu0 %v9597_v2 }
 0x24f   : > { %6972 = vmatmul.mubr.msk.bf16.gmra.mrb[28].mxu0 %vm527_vm1, %v8022_v7  ;;  %v8839_v7 = vpop.f32.mrb[36].mxu1 }
 0x250   : > { %3847 = vmatprep.mubr.bf16.mxu0 %v9597_v2  ;;  %v8842_v8 = vpop.f32.mrb[37].mxu1 }
 0x251   : > { %v8844_v9 = vpop.f32.mrb[38].mxu1 }
 0x252   : > { %v8846_v11 = vpop.f32.mrb[39].mxu1 }
 0x257   : > { %6973 = vmatmul.mubr.msk.bf16.gmra.mrb[32].mxu0 %vm527_vm1, %v8024_v15  ;;  %v8850_v15 = vpop.f32.mrb[40].mxu1 }
 0x258   : > { %3857 = vmatprep.mubr.bf16.mxu0 %v9597_v2 }
 0x25f   : > { %6974 = vmatmul.mubr.msk.bf16.gmra.mrb[36].mxu0 %vm527_vm1, %v8026_v23  ;;  %v8853_v23 = vpop.f32.mrb[41].mxu1 }
 0x260   : > { %3867 = vmatprep.mubr.bf16.mxu0 %v9597_v2 }
 0x267   : > { %6975 = vmatmul.mubr.msk.bf16.gmra.mrb[40].mxu0 %vm527_vm1, %v8028_v24  ;;  %v8855_v24 = vpop.f32.mrb[42].mxu1 }
 0x268   : > { %3877 = vmatprep.mubr.bf16.mxu0 %v9597_v2  ;;  %v8857_v25 = vpop.f32.mrb[43].mxu1 }
 0x26f   : > { %6976 = vmatmul.mubr.msk.bf16.gmra.mrb[44].mxu0 %vm527_vm1, %v8030_v28  ;;  %v8861_v28 = vpop.f32.mrb[44].mxu1 }
 0x270   : > { %3887 = vmatprep.mubr.bf16.mxu0 %v9597_v2  ;;  %v8864_v29 = vpop.f32.mrb[45].mxu1 }
 0x271   : > { %v8866_v30 = vpop.f32.mrb[46].mxu1 }
 0x272   : > { %v8868_v33 = vpop.f32.mrb[47].mxu1 }
 0x277   : > { %6977 = vmatmul.mubr.msk.bf16.gmra.mrb[48].mxu0 %vm527_vm1, %v8032_v37  ;;  %v8872_v37 = vpop.f32.mrb[48].mxu1 }
 0x278   : > { %3897 = vmatprep.mubr.bf16.mxu0 %v9597_v2  ;;  %v8875_v38 = vpop.f32.mrb[49].mxu1 }
 0x279   : > { %9599 = vst [vmem:[#allocation4_spill] sm:$0xff] %v8875_v38  ;;  %v8877_v39 = vpop.f32.mrb[50].mxu1 }
 0x27a   : > { %9600 = vst [vmem:[#allocation5_spill] sm:$0xff] %v8877_v39  ;;  %v8879_v42 = vpop.f32.mrb[51].mxu1 }
 0x27b   : > { %9601 = vst [vmem:[#allocation6_spill] sm:$0xff] %v8879_v42 }
 0x27f   : > { %6978 = vmatmul.mubr.msk.bf16.gmra.mrb[52].mxu0 %vm527_vm1, %v8034_v46  ;;  %v8883_v46 = vpop.f32.mrb[52].mxu1 }
 0x280   : > { %3907 = vmatprep.mubr.bf16.mxu0 %v9597_v2  ;;  %9602 = vst [vmem:[#allocation7_spill] sm:$0xff] %v8883_v46  ;;  %v8889_v48 = vpop.f32.mrb[53].mxu1 }
 0x281   : > { %9603 = vst [vmem:[#allocation8_spill] sm:$0xff] %v8889_v48 }
 0x287   : > { %6979 = vmatmul.mubr.msk.bf16.gmra.mrb[56].mxu0 %vm527_vm1, %v8036_v53  ;;  %v8891_v53 = vpop.f32.mrb[54].mxu1 }
 0x288   : > { %3917 = vmatprep.mubr.bf16.mxu0 %v9597_v2  ;;  %9604 = vst [vmem:[#allocation9_spill] sm:$0xff] %v8891_v53 }
 0x28f   : > { %6980 = vmatmul.mubr.msk.bf16.gmra.mrb[60].mxu0 %vm527_vm1, %v8038_v58  ;;  %v8893_v58 = vpop.f32.mrb[55].mxu1 }
 0x290   : > { %3927 = vmatprep.mubr.bf16.mxu0 %v9597_v2  ;;  %9605 = vst [vmem:[#allocation10_spill] sm:$0xff] %v8893_v58 }
 0x297   : > { %6981 = vmatmul.mubr.msk.bf16.gmra.mrb[64].mxu0 %vm527_vm1, %v8040_v63  ;;  %v8051_v63 = vld [vmem:[%s8321_s12 + $0xd0] sm:$0xff]  }
 0x298   : > { %3937 = vmatprep.mubr.bf16.mxu0 %v9597_v2 }
 0x29f   : > { %6982 = vmatmul.mubr.msk.bf16.gmra.mrb[68].mxu0 %vm527_vm1, %v8042_v6  ;;  %v8897_v6 = vpop.f32.mrb[56].mxu1 }
 0x2a0   : > { %3947 = vmatprep.mubr.bf16.mxu0 %v9597_v2  ;;  %9606 = vst [vmem:[#allocation11_spill] sm:$0xff] %v8897_v6 }
 0x2a7   : > { %6983 = vmatmul.mubr.msk.bf16.gmra.mrb[72].mxu0 %vm527_vm1, %v8044_v14  ;;  %v8900_v14 = vpop.f32.mrb[57].mxu1 }
 0x2a8   : > { %3957 = vmatprep.mubr.bf16.mxu0 %v9597_v2  ;;  %9607 = vst [vmem:[#allocation12_spill] sm:$0xff] %v8900_v14 }
 0x2af   : > { %6984 = vmatmul.mubr.msk.bf16.gmra.mrb[76].mxu0 %vm527_vm1, %v8046_v26  ;;  %v8902_v26 = vpop.f32.mrb[58].mxu1 }
 0x2b0   : > { %3967 = vmatprep.mubr.bf16.mxu0 %v9597_v2  ;;  %9608 = vst [vmem:[#allocation13_spill] sm:$0xff] %v8902_v26 }
 0x2b7   : > { %6985 = vmatmul.mubr.msk.bf16.gmra.mrb[80].mxu0 %vm527_vm1, %v8048_v35  ;;  %v8904_v35 = vpop.f32.mrb[59].mxu1 }
 0x2b8   : > { %3977 = vmatprep.mubr.bf16.mxu0 %v9597_v2  ;;  %9609 = vst [vmem:[#allocation14_spill] sm:$0xff] %v8904_v35  ;;  %v8908_v53 = vpop.f32.mrb[60].mxu1 }
 0x2b9   : > { %9610 = vst [vmem:[#allocation15_spill] sm:$0xff] %v8908_v53  ;;  %v8910_v47 = vpop.f32.mrb[61].mxu1 }
 0x2ba   : > { %9611 = vst [vmem:[#allocation16_spill] sm:$0xff] %v8910_v47  ;;  %v8912_v58 = vpop.f32.mrb[62].mxu1 }
 0x2bb   : > { %9612 = vst [vmem:[#allocation17_spill] sm:$0xff] %v8912_v58 }
 0x2bf   : > { %6986 = vmatmul.mubr.msk.bf16.gmra.mrb[84].mxu0 %vm527_vm1, %v8050_v44  ;;  %v8052_v44 = vld [vmem:[%s8321_s12 + $0xd8] sm:$0xff]  }
 0x2c0   : > { %3987 = vmatprep.mubr.bf16.mxu0 %v9597_v2 }
 0x2c7   : > { %6987 = vmatmul.mubr.msk.bf16.gmra.mrb[88].mxu0 %vm527_vm1, %v8051_v63  ;;  %v8914_v63 = vpop.f32.mrb[63].mxu1 }
 0x2c8   : > { %3997 = vmatprep.mubr.bf16.mxu0 %v9597_v2  ;;  %9613 = vst [vmem:[#allocation18_spill] sm:$0xff] %v8914_v63  ;;  %v8916_v6 = vpop.f32.mrb[64].mxu1 }
 0x2c9   : > { %9614 = vst [vmem:[#allocation19_spill] sm:$0xff] %v8916_v6  ;;  %v8918_v2 = vpop.f32.mrb[65].mxu1 }
 0x2ca   : > { %9615 = vst [vmem:[#allocation20_spill] sm:$0xff] %v8918_v2  ;;  %v8920_v14 = vpop.f32.mrb[66].mxu1 }
 0x2cb   : > { %9616 = vst [vmem:[#allocation21_spill] sm:$0xff] %v8920_v14  ;;  %v8922_v26 = vpop.f32.mrb[67].mxu1 }
 0x2cc   : > { %9617 = vst [vmem:[#allocation22_spill] sm:$0xff] %v8922_v26  ;;  %v8924_v35 = vpop.f32.mrb[68].mxu1 }
 0x2cd   : > { %9618 = vst [vmem:[#allocation23_spill] sm:$0xff] %v8924_v35  ;;  %v8926_v48 = vpop.f32.mrb[69].mxu1 }
 0x2ce   : > { %9619 = vst [vmem:[#allocation24_spill] sm:$0xff] %v8926_v48 }
 0x2cf   : > { %6988 = vmatmul.mubr.msk.bf16.gmra.mrb[92].mxu0 %vm527_vm1, %v8052_v44  ;;  %v8928_v44 = vpop.f32.mrb[70].mxu1 }
 0x2d0   : > { %9620 = vst [vmem:[#allocation25_spill] sm:$0xff] %v8928_v44  ;;  %v8930_v53 = vpop.f32.mrb[71].mxu1 }
 0x2d1   : > { %9621 = vst [vmem:[#allocation26_spill] sm:$0xff] %v8930_v53  ;;  %v8932_v47 = vpop.f32.mrb[72].mxu1 }
 0x2d2   : > { %9622 = vst [vmem:[#allocation27_spill] sm:$0xff] %v8932_v47  ;;  %v8934_v58 = vpop.f32.mrb[73].mxu1 }
 0x2d3   : > { %9623 = vst [vmem:[#allocation28_spill] sm:$0xff] %v8934_v58  ;;  %v8936_v63 = vpop.f32.mrb[74].mxu1 }
 0x2d4   : > { %9624 = vst [vmem:[#allocation29_spill] sm:$0xff] %v8936_v63  ;;  %v8938_v2 = vpop.f32.mrb[75].mxu1 }
 0x2d5   : > { %9625 = vst [vmem:[#allocation30_spill] sm:$0xff] %v8938_v2  ;;  %v8944_v47 = vpop.f32.mrb[76].mxu1 }
 0x2d6   : > { %v8946_v39 = vpop.f32.mrb[77].mxu1 }
 0x2d7   : > { %v8948_v63 = vpop.f32.mrb[78].mxu1 }
 0x2d8   : > { %v8950_v38 = vpop.f32.mrb[79].mxu1 }
 0x2ea   : > { %v3769_v6 = vpop.f32.mrb[0].mxu0 }
 0x2eb   : > { %v7380_v14 = vadd.f32 %v3769_v6, %v8689_v5  ;;  %v3771_v26 = vpop.f32.mrb[1].mxu0 }
 0x2ec   : > { %v7381_v35 = vadd.f32 %v3771_v26, %v8698_v10  ;;  %v3773_v46 = vpop.f32.mrb[2].mxu0 }
 0x2ed   : > { %v7382_v48 = vadd.f32 %v3773_v46, %v8703_v12  ;;  %v3775_v44 = vpop.f32.mrb[3].mxu0 }
 0x2ee   : > { %v4392_v42 = vmax.f32 %v7380_v14, %v7381_v35  ;;  %v7383_v53 = vadd.f32 %v3775_v44, %v8705_v13 }
 0x2f0   : > { %v4393_v58 = vmax.f32 %v7382_v48, %v7383_v53  ;;  %v8959_v48 = vld [vmem:[%s9589_s2] ss:$0 sm:$0xff]  ;;  %v8961_v53 = vpop.f32.mrb[80].mxu1 }
 0x2f1   : > { %9626 = vst [vmem:[#allocation31_spill] sm:$0xff] %v8961_v53 }
 0x2f2   : > { %v3779_v2 = vpop.f32.mrb[4].mxu0 }
 0x2f3   : > { %v7384_v5 = vadd.f32 %v3779_v2, %v8711_v16  ;;  %v3781_v10 = vpop.f32.mrb[5].mxu0  ;;  %v8963_v2 = vpop.f32.mrb[81].mxu1 }
 0x2f4   : > { %v7385_v6 = vadd.f32 %v3781_v10, %v8713_v17  ;;  %v3783_v12 = vpop.f32.mrb[6].mxu0  ;;  %v8965_v16 = vpop.f32.mrb[82].mxu1 }
 0x2f5   : > { %v7386_v46 = vadd.f32 %v3783_v12, %v8715_v18  ;;  %v3785_v14 = vpop.f32.mrb[7].mxu0  ;;  %9627 = vst [vmem:[#allocation32_spill] sm:$0xff] %v8965_v16 }
 0x2f6   : > { %v4394_v13 = vmax.f32 %v7384_v5, %v7385_v6  ;;  %v7387_v26 = vadd.f32 %v3785_v14, %v8717_v19  ;;  %v8968_v5 = vpop.f32.mrb[83].mxu1 }
 0x2f8   : > { %v4440_v35 = vmax.f32 %v4392_v42, %v4394_v13  ;;  %v4395_v44 = vmax.f32 %v7386_v46, %v7387_v26 }
 0x2fa   : > { %v4471_v17 = vadd.f32 %v8959_v48, %v4440_v35  ;;  %v4441_v18 = vmax.f32 %v4393_v58, %v4395_v44  ;;  %v3789_v10 = vpop.f32.mrb[8].mxu0  ;;  %v8077_v58 = vld [vmem:[%s9590_s3 + $0x80] ss:$8 sps:$4 sm:$0xff]   ;;  %v8978_v44 = vpop.f32.mrb[84].mxu1 }
 0x2fb   : > { %v7388_v19 = vadd.f32 %v3789_v10, %v8720_v20  ;;  %v3791_v6 = vpop.f32.mrb[9].mxu0 }
 0x2fc   : > { %v4472_v12 = vadd.f32 %v8959_v48, %v4441_v18  ;;  %v7389_v14 = vadd.f32 %v3791_v6, %v8723_v21  ;;  %v3793_v53 = vpop.f32.mrb[10].mxu0  ;;  %v4495_v13 = vmax.f32 %v4471_v17, 0.0  ;;  %v8082_v21 = vld [vmem:[%s9590_s3 + $0x94] ss:$8 sps:$4 sm:$0xff]   ;;  %v8983_v18 = vpop.f32.mrb[85].mxu1  ;;  %v9628_v6 = vmov 0  }
 0x2fd   : > { %v7390_v42 = vadd.f32 %v3793_v53, %v8725_v22  ;;  %v3795_v46 = vpop.f32.mrb[11].mxu0  ;;  %v8985_v22 = vpop.f32.mrb[86].mxu1 }
 0x2fe   : > { %v4496_v26 = vmax.f32 %v4472_v12, 0.0  ;;  %v4396_v16 = vmax.f32 %v7388_v19, %v7389_v14  ;;  %v7391_v35 = vadd.f32 %v3795_v46, %v8739_v27  ;;  %v8987_v17 = vpop.f32.mrb[87].mxu1  ;;  %v8080_v12 = vld [vmem:[%s9590_s3 + $0x90] ss:$8 sps:$4 sm:$0xff]   ;;  %v8085_v46 = vld [vmem:[%s9590_s3 + $0xa4] ss:$8 sps:$4 sm:$0xff]  }
 0x300   : > { %v4519_v20 = vpack.c.bf16 %v4496_v26, %v4495_v13  ;;  %v4397_v10 = vmax.f32 %v7390_v42, %v7391_v35 }
 0x302   : > { %v3799_v53 = vpop.f32.mrb[12].mxu0  ;;  %4660 = vmatmul.mubr.bf16.vlgmr.msra.gmra.mrb[96].mxu1 %v4519_v20  ;;  %v9003_v20 = vpop.f32.mrb[88].mxu1 }
 0x303   : > { %v7392_v27 = vadd.f32 %v3799_v53, %v8749_v31  ;;  %v3801_v19 = vpop.f32.mrb[13].mxu0  ;;  %4669 = vmatprep.mubr.bf16.mxu1 %v9628_v6  ;;  %4870 = vmatpush1.bf16.msra.mxu1 %v8077_v58  ;;  %v8083_v58 = vld [vmem:[%s9590_s3 + $0xa0] ss:$8 sps:$4 sm:$0xff]  }
 0x304   : > { %v7393_v14 = vadd.f32 %v3801_v19, %v8752_v32  ;;  %v3803_v42 = vpop.f32.mrb[14].mxu0  ;;  %4871 = vmatprep.subr.bf16.mxu1 %v8082_v21  ;;  %v8088_v21 = vld [vmem:[%s9590_s3 + $0xb4] ss:$8 sps:$4 sm:$0xff]   ;;  %v9008_v19 = vpop.f32.mrb[89].mxu1 }
 0x305   : > { %v7394_v13 = vadd.f32 %v3803_v42, %v8757_v34  ;;  %v3805_v26 = vpop.f32.mrb[15].mxu0  ;;  %v9010_v34 = vpop.f32.mrb[90].mxu1 }
 0x306   : > { %v4398_v31 = vmax.f32 %v7392_v27, %v7393_v14  ;;  %v7395_v35 = vadd.f32 %v3805_v26, %v8762_v36  ;;  %v9013_v14 = vpop.f32.mrb[91].mxu1 }
 0x307   : > { %4872 = vmatpush1.bf16.msra.mxu1 %v8080_v12 }
 0x308   : > { %v4442_v32 = vmax.f32 %v4396_v16, %v4398_v31  ;;  %v4399_v53 = vmax.f32 %v7394_v13, %v7395_v35  ;;  %4873 = vmatprep.subr.bf16.mxu1 %v8085_v46  ;;  %v8086_v16 = vld [vmem:[%s9590_s3 + $0xb0] ss:$8 sps:$4 sm:$0xff]  }
 0x30a   : > { %v4443_v27 = vmax.f32 %v4397_v10, %v4399_v53  ;;  %v3809_v36 = vpop.f32.mrb[16].mxu0  ;;  %v4473_v12 = vadd.f32 %v8959_v48, %v4442_v32  ;;  %v8091_v10 = vld [vmem:[%s9590_s3 + $0xc4] ss:$8 sps:$4 sm:$0xff]  }
 0x30b   : > { %v7396_v42 = vadd.f32 %v3809_v36, %v8772_v40  ;;  %v3811_v26 = vpop.f32.mrb[17].mxu0  ;;  %4874 = vmatpush1.bf16.msra.mxu1 %v8083_v58 }
 0x30c   : > { %v7397_v46 = vadd.f32 %v3811_v26, %v8775_v41  ;;  %v3813_v13 = vpop.f32.mrb[18].mxu0  ;;  %v4474_v31 = vadd.f32 %v8959_v48, %v4443_v27  ;;  %4875 = vmatprep.subr.bf16.mxu1 %v8088_v21  ;;  %v4497_v53 = vmax.f32 %v4473_v12, 0.0  ;;  %v8089_v41 = vld [vmem:[%s9590_s3 + $0xc0] ss:$8 sps:$4 sm:$0xff]   ;;  %v9029_v26 = vpop.f32.mrb[92].mxu1 }
 0x30d   : > { %v7398_v35 = vadd.f32 %v3813_v13, %v8780_v43  ;;  %v3815_v32 = vpop.f32.mrb[19].mxu0  ;;  %v8094_v43 = vld [vmem:[%s9590_s3 + $0xd4] ss:$8 sps:$4 sm:$0xff]  }
 0x30e   : > { %v4400_v40 = vmax.f32 %v7396_v42, %v7397_v46  ;;  %v7399_v58 = vadd.f32 %v3815_v32, %v8785_v45  ;;  %v4498_v36 = vmax.f32 %v4474_v31, 0.0  ;;  %v9036_v42 = vpop.f32.mrb[93].mxu1  ;;  %v8092_v31 = vld [vmem:[%s9590_s3 + $0xd0] ss:$8 sps:$4 sm:$0xff]   ;;  %v8097_v32 = vld [vmem:[%s9590_s3 + $0xe4] ss:$8 sps:$4 sm:$0xff]  }
 0x30f   : > { %4876 = vmatpush1.bf16.msra.mxu1 %v8086_v16  ;;  %v9038_v45 = vpop.f32.mrb[94].mxu1 }
 0x310   : > { %v4401_v21 = vmax.f32 %v7398_v35, %v7399_v58  ;;  %v9031_v27 = vpack.c.bf16 %v4498_v36, %v4497_v53  ;;  %4877 = vmatprep.subr.bf16.mxu1 %v8091_v10  ;;  %v9041_v16 = vpop.f32.mrb[95].mxu1 }
 0x311   : > { %9629 = vst [vmem:[#allocation33_spill] sm:$0xff] %v9041_v16 }
 0x312   : > { %v3819_v12 = vpop.f32.mrb[20].mxu0  ;;  %4670 = vmatmul.mubr.bf16.gmra.mrb[100].mxu1 %v9031_v27 }
 0x313   : > { %v7400_v46 = vadd.f32 %v3819_v12, %v8795_v49  ;;  %v3821_v13 = vpop.f32.mrb[21].mxu0  ;;  %4679 = vmatprep.mubr.bf16.mxu1 %v9628_v6  ;;  %4878 = vmatpush1.bf16.msra.mxu1 %v8089_v41  ;;  %v8095_v41 = vld [vmem:[%s9590_s3 + $0xe0] ss:$8 sps:$4 sm:$0xff]  }
 0x314   : > { %v7401_v10 = vadd.f32 %v3821_v13, %v8798_v50  ;;  %v3823_v35 = vpop.f32.mrb[22].mxu0  ;;  %4879 = vmatprep.subr.bf16.mxu1 %v8094_v43  ;;  %v8100_v50 = vld [vmem:[%s9590_s3 + $0xf4] ss:$8 sps:$4 sm:$0xff]  }
 0x315   : > { %v7402_v58 = vadd.f32 %v3823_v35, %v8800_v51  ;;  %v3825_v53 = vpop.f32.mrb[23].mxu0 }
 0x316   : > { %v4402_v49 = vmax.f32 %v7400_v46, %v7401_v10  ;;  %v7403_v36 = vadd.f32 %v3825_v53, %v8802_v52  ;;  %v8098_v52 = vld [vmem:[%s9590_s3 + $0xf0] ss:$8 sps:$4 sm:$0xff]  }
 0x317   : > { %4880 = vmatpush1.bf16.msra.mxu1 %v8092_v31 }
 0x318   : > { %v4444_v12 = vmax.f32 %v4400_v40, %v4402_v49  ;;  %v4403_v16 = vmax.f32 %v7402_v58, %v7403_v36  ;;  %4881 = vmatprep.subr.bf16.mxu1 %v8097_v32 }
 0x31a   : > { %v4445_v43 = vmax.f32 %v4401_v21, %v4403_v16  ;;  %v3829_v13 = vpop.f32.mrb[24].mxu0  ;;  %v4475_v51 = vadd.f32 %v8959_v48, %v4444_v12  ;;  %v8103_v21 = vld [vmem:[%s9590_s3 + $0x104] ss:$8 sps:$4 sm:$0xff]  }
 0x31b   : > { %v7404_v46 = vadd.f32 %v3829_v13, %v8806_v54  ;;  %v3831_v10 = vpop.f32.mrb[25].mxu0  ;;  %4882 = vmatpush1.bf16.msra.mxu1 %v8095_v41 }
 0x31c   : > { %v7405_v40 = vadd.f32 %v3831_v10, %v8809_v55  ;;  %v3833_v31 = vpop.f32.mrb[26].mxu0  ;;  %v4476_v35 = vadd.f32 %v8959_v48, %v4445_v43  ;;  %4883 = vmatprep.subr.bf16.mxu1 %v8100_v50  ;;  %v4499_v53 = vmax.f32 %v4475_v51, 0.0 }
 0x31d   : > { %v7406_v16 = vadd.f32 %v3833_v31, %v8811_v56  ;;  %v3835_v32 = vpop.f32.mrb[27].mxu0 }
 0x31e   : > { %v4404_v54 = vmax.f32 %v7404_v46, %v7405_v40  ;;  %v7407_v58 = vadd.f32 %v3835_v32, %v8813_v57  ;;  %v4500_v49 = vmax.f32 %v4476_v35, 0.0 }
 0x31f   : > { %4884 = vmatpush1.bf16.msra.mxu1 %v8098_v52 }
 0x320   : > { %v4405_v36 = vmax.f32 %v7406_v16, %v7407_v58  ;;  %v9072_v41 = vpack.c.bf16 %v4500_v49, %v4499_v53  ;;  %5175 = vmatprep.subr.bf16.mxu1 %v8103_v21 }
 0x322   : > { %v3839_v55 = vpop.f32.mrb[28].mxu0  ;;  %4680 = vmatmul.mubr.bf16.gmra.mrb[104].mxu1 %v9072_v41 }
 0x323   : > { %v7408_v12 = vadd.f32 %v3839_v55, %v8817_v59  ;;  %v3841_v50 = vpop.f32.mrb[29].mxu0  ;;  %4689 = vmatprep.mubr.bf16.mxu1 %v9628_v6 }
 0x324   : > { %v7409_v56 = vadd.f32 %v3841_v50, %v8820_v60  ;;  %v3843_v43 = vpop.f32.mrb[30].mxu0 }
 0x325   : > { %v7410_v57 = vadd.f32 %v3843_v43, %v8822_v61  ;;  %v3845_v13 = vpop.f32.mrb[31].mxu0 }
 0x326   : > { %v4406_v51 = vmax.f32 %v7408_v12, %v7409_v56  ;;  %v7411_v46 = vadd.f32 %v3845_v13, %v8824_v62 }
 0x328   : > { %v4446_v10 = vmax.f32 %v4404_v54, %v4406_v51  ;;  %v4407_v52 = vmax.f32 %v7410_v57, %v7411_v46 }
 0x32a   : > { %v4477_v40 = vadd.f32 %v8959_v48, %v4446_v10  ;;  %v4447_v31 = vmax.f32 %v4405_v36, %v4407_v52  ;;  %v3849_v35 = vpop.f32.mrb[32].mxu0 }
 0x32b   : > { %v7412_v59 = vadd.f32 %v3849_v35, %v8828_v0  ;;  %v3851_v21 = vpop.f32.mrb[33].mxu0 }
 0x32c   : > { %v4478_v16 = vadd.f32 %v8959_v48, %v4447_v31  ;;  %v7413_v60 = vadd.f32 %v3851_v21, %v8831_v1  ;;  %v3853_v32 = vpop.f32.mrb[34].mxu0  ;;  %v4501_v53 = vmax.f32 %v4477_v40, 0.0 }
 0x32d   : > { %v7414_v61 = vadd.f32 %v3853_v32, %v8833_v3  ;;  %v3855_v58 = vpop.f32.mrb[35].mxu0 }
 0x32e   : > { %v4502_v49 = vmax.f32 %v4478_v16, 0.0  ;;  %v4408_v62 = vmax.f32 %v7412_v59, %v7413_v60  ;;  %v7415_v54 = vadd.f32 %v3855_v58, %v8835_v4 }
 0x330   : > { %v4409_v55 = vmax.f32 %v7414_v61, %v7415_v54  ;;  %v9086_v12 = vpack.c.bf16 %v4502_v49, %v4501_v53 }
 0x332   : > { %v3859_v36 = vpop.f32.mrb[36].mxu0  ;;  %4690 = vmatmul.mubr.bf16.gmra.mrb[108].mxu1 %v9086_v12 }
 0x333   : > { %v7416_v0 = vadd.f32 %v3859_v36, %v8839_v7  ;;  %v3861_v50 = vpop.f32.mrb[37].mxu0  ;;  %4699 = vmatprep.mubr.bf16.mxu1 %v9628_v6 }
 0x334   : > { %v7417_v1 = vadd.f32 %v3861_v50, %v8842_v8  ;;  %v3863_v3 = vpop.f32.mrb[38].mxu0 }
 0x335   : > { %v7418_v56 = vadd.f32 %v3863_v3, %v8844_v9  ;;  %v3865_v43 = vpop.f32.mrb[39].mxu0 }
 0x336   : > { %v4410_v57 = vmax.f32 %v7416_v0, %v7417_v1  ;;  %v7419_v4 = vadd.f32 %v3865_v43, %v8846_v11  ;;  %v9630_v43 = vld [vmem:[#allocation4_spill] sm:$0xff] }
 0x338   : > { %v4448_v13 = vmax.f32 %v4408_v62, %v4410_v57  ;;  %v4411_v51 = vmax.f32 %v7418_v56, %v7419_v4  ;;  %v9631_v4 = vld [vmem:[#allocation5_spill] sm:$0xff] }
 0x33a   : > { %v4479_v46 = vadd.f32 %v8959_v48, %v4448_v13  ;;  %v4449_v10 = vmax.f32 %v4409_v55, %v4411_v51  ;;  %v3869_v52 = vpop.f32.mrb[40].mxu0 }
 0x33b   : > { %v7420_v7 = vadd.f32 %v3869_v52, %v8850_v15  ;;  %v3871_v40 = vpop.f32.mrb[41].mxu0 }
 0x33c   : > { %v4480_v31 = vadd.f32 %v8959_v48, %v4449_v10  ;;  %v7421_v8 = vadd.f32 %v3871_v40, %v8853_v23  ;;  %v3873_v35 = vpop.f32.mrb[42].mxu0  ;;  %v4503_v21 = vmax.f32 %v4479_v46, 0.0  ;;  %v9632_v10 = vld [vmem:[#allocation6_spill] sm:$0xff] }
 0x33d   : > { %v7422_v9 = vadd.f32 %v3873_v35, %v8855_v24  ;;  %v3875_v59 = vpop.f32.mrb[43].mxu0 }
 0x33e   : > { %v4504_v16 = vmax.f32 %v4480_v31, 0.0  ;;  %v4412_v11 = vmax.f32 %v7420_v7, %v7421_v8  ;;  %v7423_v60 = vadd.f32 %v3875_v59, %v8857_v25 }
 0x340   : > { %v9100_v32 = vpack.c.bf16 %v4504_v16, %v4503_v21  ;;  %v4413_v61 = vmax.f32 %v7422_v9, %v7423_v60  ;;  %v9634_v9 = vld [vmem:[#allocation8_spill] sm:$0xff]  ;;  %v9635_v16 = vld [vmem:[#allocation9_spill] sm:$0xff] }
 0x342   : > { %v3879_v58 = vpop.f32.mrb[44].mxu0  ;;  %4700 = vmatmul.mubr.bf16.gmra.mrb[112].mxu1 %v9100_v32 }
 0x343   : > { %v7424_v15 = vadd.f32 %v3879_v58, %v8861_v28  ;;  %v3881_v53 = vpop.f32.mrb[45].mxu0  ;;  %4709 = vmatprep.mubr.bf16.mxu1 %v9628_v6  ;;  %v9636_v58 = vld [vmem:[#allocation10_spill] sm:$0xff] }
 0x344   : > { %v7425_v23 = vadd.f32 %v3881_v53, %v8864_v29  ;;  %v3883_v24 = vpop.f32.mrb[46].mxu0 }
 0x345   : > { %v7426_v49 = vadd.f32 %v3883_v24, %v8866_v30  ;;  %v3885_v62 = vpop.f32.mrb[47].mxu0 }
 0x346   : > { %v4414_v54 = vmax.f32 %v7424_v15, %v7425_v23  ;;  %v7427_v25 = vadd.f32 %v3885_v62, %v8868_v33 }
 0x348   : > { %v4450_v55 = vmax.f32 %v4412_v11, %v4414_v54  ;;  %v4415_v36 = vmax.f32 %v7426_v49, %v7427_v25  ;;  %v9637_v54 = vld [vmem:[#allocation11_spill] sm:$0xff] }
 0x34a   : > { %v4481_v0 = vadd.f32 %v8959_v48, %v4450_v55  ;;  %v4451_v50 = vmax.f32 %v4413_v61, %v4415_v36  ;;  %v3889_v1 = vpop.f32.mrb[48].mxu0 }
 0x34b   : > { %v7428_v28 = vadd.f32 %v3889_v1, %v8872_v37  ;;  %v3891_v3 = vpop.f32.mrb[49].mxu0  ;;  %v9633_v37 = vld [vmem:[#allocation7_spill] sm:$0xff] }
 0x34c   : > { %v4482_v56 = vadd.f32 %v8959_v48, %v4451_v50  ;;  %v7429_v29 = vadd.f32 %v3891_v3, %v9630_v43  ;;  %v3893_v57 = vpop.f32.mrb[50].mxu0  ;;  %v4505_v51 = vmax.f32 %v4481_v0, 0.0  ;;  %v9638_v0 = vld [vmem:[#allocation12_spill] sm:$0xff] }
 0x34d   : > { %v7430_v30 = vadd.f32 %v3893_v57, %v9631_v4  ;;  %v3895_v13 = vpop.f32.mrb[51].mxu0  ;;  %v9640_v4 = vld [vmem:[#allocation14_spill] sm:$0xff] }
 0x34e   : > { %v4506_v46 = vmax.f32 %v4482_v56, 0.0  ;;  %v4416_v33 = vmax.f32 %v7428_v28, %v7429_v29  ;;  %v7431_v52 = vadd.f32 %v3895_v13, %v9632_v10  ;;  %v9639_v28 = vld [vmem:[#allocation13_spill] sm:$0xff] }
 0x350   : > { %v9114_v7 = vpack.c.bf16 %v4506_v46, %v4505_v51  ;;  %v4417_v40 = vmax.f32 %v7430_v30, %v7431_v52 }
 0x352   : > { %v3899_v31 = vpop.f32.mrb[52].mxu0  ;;  %4710 = vmatmul.mubr.bf16.gmra.mrb[116].mxu1 %v9114_v7 }
 0x353   : > { %v7432_v8 = vadd.f32 %v3899_v31, %v9633_v37  ;;  %v3901_v35 = vpop.f32.mrb[53].mxu0  ;;  %4719 = vmatprep.mubr.bf16.mxu1 %v9628_v6 }
 0x354   : > { %v7433_v59 = vadd.f32 %v3901_v35, %v9634_v9  ;;  %v3903_v21 = vpop.f32.mrb[54].mxu0 }
 0x355   : > { %v7434_v11 = vadd.f32 %v3903_v21, %v9635_v16  ;;  %v3905_v60 = vpop.f32.mrb[55].mxu0  ;;  %v9644_v21 = vld [vmem:[#allocation18_spill] sm:$0xff] }
 0x356   : > { %v4418_v61 = vmax.f32 %v7432_v8, %v7433_v59  ;;  %v7435_v15 = vadd.f32 %v3905_v60, %v9636_v58  ;;  %v9643_v8 = vld [vmem:[#allocation17_spill] sm:$0xff] }
 0x358   : > { %v4452_v53 = vmax.f32 %v4416_v33, %v4418_v61  ;;  %v4419_v23 = vmax.f32 %v7434_v11, %v7435_v15  ;;  %v9641_v33 = vld [vmem:[#allocation15_spill] sm:$0xff] }
 0x35a   : > { %v4483_v24 = vadd.f32 %v8959_v48, %v4452_v53  ;;  %v4453_v49 = vmax.f32 %v4417_v40, %v4419_v23  ;;  %v3909_v62 = vpop.f32.mrb[56].mxu0  ;;  %v9642_v40 = vld [vmem:[#allocation16_spill] sm:$0xff]  ;;  %v9645_v53 = vld [vmem:[#allocation19_spill] sm:$0xff] }
 0x35b   : > { %v7436_v25 = vadd.f32 %v3909_v62, %v9637_v54  ;;  %v3911_v55 = vpop.f32.mrb[57].mxu0  ;;  %v9646_v62 = vld [vmem:[#allocation20_spill] sm:$0xff] }
 0x35c   : > { %v4484_v36 = vadd.f32 %v8959_v48, %v4453_v49  ;;  %v7437_v50 = vadd.f32 %v3911_v55, %v9638_v0  ;;  %v3913_v1 = vpop.f32.mrb[58].mxu0  ;;  %v4507_v43 = vmax.f32 %v4483_v24, 0.0  ;;  %v9647_v55 = vld [vmem:[#allocation21_spill] sm:$0xff] }
 0x35d   : > { %v7438_v3 = vadd.f32 %v3913_v1, %v9639_v28  ;;  %v3915_v56 = vpop.f32.mrb[59].mxu0 }
 0x35e   : > { %v4508_v29 = vmax.f32 %v4484_v36, 0.0  ;;  %v4420_v57 = vmax.f32 %v7436_v25, %v7437_v50  ;;  %v7439_v30 = vadd.f32 %v3915_v56, %v9640_v4  ;;  %v9649_v4 = vld [vmem:[#allocation23_spill] sm:$0xff] }
 0x360   : > { %v9128_v13 = vpack.c.bf16 %v4508_v29, %v4507_v43  ;;  %v4421_v51 = vmax.f32 %v7438_v3, %v7439_v30  ;;  %v9648_v3 = vld [vmem:[#allocation22_spill] sm:$0xff] }
 0x362   : > { %v3919_v46 = vpop.f32.mrb[60].mxu0  ;;  %4720 = vmatmul.mubr.bf16.gmra.mrb[120].mxu1 %v9128_v13 }
 0x363   : > { %v7440_v10 = vadd.f32 %v3919_v46, %v9641_v33  ;;  %v3921_v52 = vpop.f32.mrb[61].mxu0  ;;  %4729 = vmatprep.mubr.bf16.mxu1 %v9628_v6  ;;  %v9650_v46 = vld [vmem:[#allocation24_spill] sm:$0xff] }
 0x364   : > { %v7441_v31 = vadd.f32 %v3921_v52, %v9642_v40  ;;  %v3923_v37 = vpop.f32.mrb[62].mxu0  ;;  %v9651_v52 = vld [vmem:[#allocation25_spill] sm:$0xff] }
 0x365   : > { %v7442_v35 = vadd.f32 %v3923_v37, %v9643_v8  ;;  %v3925_v9 = vpop.f32.mrb[63].mxu0  ;;  %v9652_v8 = vld [vmem:[#allocation26_spill] sm:$0xff] }
 0x366   : > { %v4422_v59 = vmax.f32 %v7440_v10, %v7441_v31  ;;  %v7443_v16 = vadd.f32 %v3925_v9, %v9644_v21  ;;  %v8101_v9 = vld [vmem:[%s9590_s3 + $0x100] ss:$8 sps:$4 sm:$0xff]  }
 0x368   : > { %v4454_v11 = vmax.f32 %v4420_v57, %v4422_v59  ;;  %v4423_v60 = vmax.f32 %v7442_v35, %v7443_v16  ;;  %v8106_v16 = vld [vmem:[%s9590_s3 + $0x114] ss:$8 sps:$4 sm:$0xff]  }
 0x36a   : > { %v4485_v61 = vadd.f32 %v8959_v48, %v4454_v11  ;;  %v4455_v58 = vmax.f32 %v4421_v51, %v4423_v60  ;;  %v3929_v15 = vpop.f32.mrb[64].mxu0 }
 0x36b   : > { %v7444_v23 = vadd.f32 %v3929_v15, %v9645_v53  ;;  %v3931_v24 = vpop.f32.mrb[65].mxu0 }
 0x36c   : > { %v4486_v49 = vadd.f32 %v8959_v48, %v4455_v58  ;;  %v7445_v54 = vadd.f32 %v3931_v24, %v9646_v62  ;;  %v3933_v25 = vpop.f32.mrb[66].mxu0  ;;  %v4509_v50 = vmax.f32 %v4485_v61, 0.0  ;;  %v9653_v58 = vld [vmem:[#allocation27_spill] sm:$0xff] }
 0x36d   : > { %v7446_v36 = vadd.f32 %v3933_v25, %v9647_v55  ;;  %v3935_v0 = vpop.f32.mrb[67].mxu0  ;;  %v9655_v25 = vld [vmem:[#allocation29_spill] sm:$0xff] }
 0x36e   : > { %v4510_v1 = vmax.f32 %v4486_v49, 0.0  ;;  %v4424_v28 = vmax.f32 %v7444_v23, %v7445_v54  ;;  %v7447_v56 = vadd.f32 %v3935_v0, %v9648_v3  ;;  %v8104_v23 = vld [vmem:[%s9590_s3 + $0x110] ss:$8 sps:$4 sm:$0xff]   ;;  %v9654_v49 = vld [vmem:[#allocation28_spill] sm:$0xff] }
 0x370   : > { %v9142_v43 = vpack.c.bf16 %v4510_v1, %v4509_v50  ;;  %v4425_v29 = vmax.f32 %v7446_v36, %v7447_v56  ;;  %v8107_v56 = vld [vmem:[%s9590_s3 + $0x120] ss:$8 sps:$4 sm:$0xff]  }
 0x372   : > { %v3939_v57 = vpop.f32.mrb[68].mxu0  ;;  %4730 = vmatmul.mubr.bf16.gmra.mrb[124].mxu1 %v9142_v43 }
 0x373   : > { %v7448_v30 = vadd.f32 %v3939_v57, %v9649_v4  ;;  %v3941_v51 = vpop.f32.mrb[69].mxu0  ;;  %4901 = vmatprep.mubr.bf16.mxu1 %v9628_v6  ;;  %v8112_v57 = vld [vmem:[%s9590_s3 + $0x134] ss:$8 sps:$4 sm:$0xff]  }
 0x374   : > { %v7449_v33 = vadd.f32 %v3941_v51, %v9650_v46  ;;  %v3943_v10 = vpop.f32.mrb[70].mxu0 }
 0x375   : > { %v7450_v40 = vadd.f32 %v3943_v10, %v9651_v52  ;;  %v3945_v31 = vpop.f32.mrb[71].mxu0 }
 0x376   : > { %v4426_v37 = vmax.f32 %v7448_v30, %v7449_v33  ;;  %v7451_v35 = vadd.f32 %v3945_v31, %v9652_v8  ;;  %v8110_v33 = vld [vmem:[%s9590_s3 + $0x130] ss:$8 sps:$4 sm:$0xff]  }
 0x378   : > { %v4456_v59 = vmax.f32 %v4424_v28, %v4426_v37  ;;  %v4427_v21 = vmax.f32 %v7450_v40, %v7451_v35  ;;  %v9656_v28 = vld [vmem:[#allocation30_spill] sm:$0xff]  ;;  %v8115_v40 = vld [vmem:[%s9590_s3 + $0x144] ss:$8 sps:$4 sm:$0xff]   ;;  %v8113_v35 = vld [vmem:[%s9590_s3 + $0x140] ss:$8 sps:$4 sm:$0xff]  }
 0x37a   : > { %v4487_v11 = vadd.f32 %v8959_v48, %v4456_v59  ;;  %v4457_v60 = vmax.f32 %v4425_v29, %v4427_v21  ;;  %v3949_v61 = vpop.f32.mrb[72].mxu0  ;;  %4902 = vmatmul.mubr.bf16.vlgmr.msra.gmra.mrb[96].mxu1 %v9031_v27  ;;  %v8109_v27 = vld [vmem:[%s9590_s3 + $0x124] ss:$8 sps:$4 sm:$0xff]  }
 0x37b   : > { %v7452_v15 = vadd.f32 %v3949_v61, %v9653_v58  ;;  %v3951_v53 = vpop.f32.mrb[73].mxu0  ;;  %5176 = vmatpush1.bf16.msra.mxu1 %v8101_v9  ;;  %4911 = vmatprep.mubr.bf16.mxu1 %v9628_v6  ;;  %v8116_v61 = vld [vmem:[%s9590_s3 + $0x150] ss:$8 sps:$4 sm:$0xff]  }
 0x37c   : > { %v4488_v24 = vadd.f32 %v8959_v48, %v4457_v60  ;;  %v7453_v62 = vadd.f32 %v3951_v53, %v9654_v49  ;;  %v3953_v54 = vpop.f32.mrb[74].mxu0  ;;  %5177 = vmatprep.subr.bf16.mxu1 %v8106_v16  ;;  %v4511_v0 = vmax.f32 %v4487_v11, 0.0  ;;  %v9657_v11 = vld [vmem:[#allocation31_spill] sm:$0xff]  ;;  %v8121_v53 = vld [vmem:[%s9590_s3 + $0x164] ss:$8 sps:$4 sm:$0xff]  }
 0x37d   : > { %v7454_v55 = vadd.f32 %v3953_v54, %v9655_v25  ;;  %v3955_v36 = vpop.f32.mrb[75].mxu0 }
 0x37e   : > { %v4512_v50 = vmax.f32 %v4488_v24, 0.0  ;;  %v4428_v1 = vmax.f32 %v7452_v15, %v7453_v62  ;;  %v7455_v3 = vadd.f32 %v3955_v36, %v9656_v28  ;;  %v9658_v24 = vld [vmem:[#allocation32_spill] sm:$0xff] }
 0x37f   : > { %5178 = vmatpush1.bf16.msra.mxu1 %v8104_v23 }
 0x380   : > { %v4429_v29 = vmax.f32 %v7454_v55, %v7455_v3  ;;  %5179 = vmatprep.subr.bf16.mxu1 %v8109_v27  ;;  %v9176_v4 = vpack.c.bf16 %v4512_v50, %v4511_v0  ;;  %v8124_v0 = vld [vmem:[%s9590_s3 + $0x174] ss:$8 sps:$4 sm:$0xff]   ;;  %v8122_v3 = vld [vmem:[%s9590_s3 + $0x170] ss:$8 sps:$4 sm:$0xff]  }
 0x382   : > { %v3959_v30 = vpop.f32.mrb[76].mxu0  ;;  %4912 = vmatmul.mubr.bf16.gmra.mrb[100].mxu1 %v9072_v41 }
 0x383   : > { %v7456_v51 = vadd.f32 %v3959_v30, %v8944_v47  ;;  %v3961_v46 = vpop.f32.mrb[77].mxu0  ;;  %4921 = vmatprep.mubr.bf16.mxu1 %v9628_v6  ;;  %5180 = vmatpush1.bf16.msra.mxu1 %v8107_v56 }
 0x384   : > { %v7457_v10 = vadd.f32 %v3961_v46, %v8946_v39  ;;  %v3963_v52 = vpop.f32.mrb[78].mxu0  ;;  %5181 = vmatprep.subr.bf16.mxu1 %v8112_v57  ;;  %v8118_v39 = vld [vmem:[%s9590_s3 + $0x154] ss:$8 sps:$4 sm:$0xff]   ;;  %v8127_v57 = vld [vmem:[%s9590_s3 + $0x184] ss:$8 sps:$4 sm:$0xff]  }
 0x385   : > { %v7458_v31 = vadd.f32 %v3963_v52, %v8948_v63  ;;  %v3965_v37 = vpop.f32.mrb[79].mxu0 }
 0x386   : > { %v4430_v47 = vmax.f32 %v7456_v51, %v7457_v10  ;;  %v7459_v8 = vadd.f32 %v3965_v37, %v8950_v38 }
 0x387   : > { %5182 = vmatpush1.bf16.msra.mxu1 %v8110_v33 }
 0x388   : > { %v4458_v9 = vmax.f32 %v4428_v1, %v4430_v47  ;;  %v4431_v59 = vmax.f32 %v7458_v31, %v7459_v8  ;;  %5183 = vmatprep.subr.bf16.mxu1 %v8115_v40 }
 0x38a   : > { %v4459_v21 = vmax.f32 %v4429_v29, %v4431_v59  ;;  %v3969_v16 = vpop.f32.mrb[80].mxu0  ;;  %4922 = vmatmul.mubr.bf16.gmra.mrb[104].mxu1 %v9086_v12  ;;  %v4489_v63 = vadd.f32 %v8959_v48, %v4458_v9 }
 0x38b   : > { %v7460_v38 = vadd.f32 %v3969_v16, %v9657_v11  ;;  %v3971_v60 = vpop.f32.mrb[81].mxu0  ;;  %4931 = vmatprep.mubr.bf16.mxu1 %v9628_v6  ;;  %5184 = vmatpush1.bf16.msra.mxu1 %v8113_v35 }
 0x38c   : > { %v7461_v58 = vadd.f32 %v3971_v60, %v8963_v2  ;;  %v3973_v15 = vpop.f32.mrb[82].mxu0  ;;  %5185 = vmatprep.subr.bf16.mxu1 %v8118_v39  ;;  %v4490_v23 = vadd.f32 %v8959_v48, %v4459_v21  ;;  %v4513_v25 = vmax.f32 %v4489_v63, 0.0  ;;  %v8119_v2 = vld [vmem:[%s9590_s3 + $0x160] ss:$8 sps:$4 sm:$0xff]  }
 0x38d   : > { %v7462_v49 = vadd.f32 %v3973_v15, %v9658_v24  ;;  %v3975_v62 = vpop.f32.mrb[83].mxu0 }
 0x38e   : > { %v4432_v54 = vmax.f32 %v7460_v38, %v7461_v58  ;;  %v7463_v27 = vadd.f32 %v3975_v62, %v8968_v5  ;;  %v4514_v55 = vmax.f32 %v4490_v23, 0.0  ;;  %v9659_v58 = vld [vmem:[#allocation33_spill] sm:$0xff] }
 0x38f   : > { %5186 = vmatpush1.bf16.msra.mxu1 %v8116_v61 }
 0x390   : > { %v4433_v36 = vmax.f32 %v7462_v49, %v7463_v27  ;;  %5187 = vmatprep.subr.bf16.mxu1 %v8121_v53  ;;  %v9216_v50 = vpack.c.bf16 %v4514_v55, %v4513_v25  ;;  %v8130_v27 = vld [vmem:[%s9590_s3 + $0x194] ss:$8 sps:$4 sm:$0xff]   ;;  %v8133_v25 = vld [vmem:[%s9590_s3 + $0x1a4] ss:$8 sps:$4 sm:$0xff]   ;;  %v8131_v55 = vld [vmem:[%s9590_s3 + $0x1a0] ss:$8 sps:$4 sm:$0xff]  }
 0x392   : > { %v3979_v1 = vpop.f32.mrb[84].mxu0  ;;  %4932 = vmatmul.mubr.bf16.gmra.mrb[108].mxu1 %v9100_v32 }
 0x393   : > { %v7464_v5 = vadd.f32 %v3979_v1, %v8978_v44  ;;  %v3981_v28 = vpop.f32.mrb[85].mxu0  ;;  %4941 = vmatprep.mubr.bf16.mxu1 %v9628_v6  ;;  %5188 = vmatpush1.bf16.msra.mxu1 %v8119_v2  ;;  %v8134_v2 = vld [vmem:[%s9590_s3 + $0x1b0] ss:$8 sps:$4 sm:$0xff]   ;;  %v8142_v1 = vld [vmem:[%s9590_s3 + $0x1d4] ss:$8 sps:$4 sm:$0xff]  }
 0x394   : > { %v7465_v56 = vadd.f32 %v3981_v28, %v8983_v18  ;;  %v3983_v29 = vpop.f32.mrb[86].mxu0  ;;  %5189 = vmatprep.subr.bf16.mxu1 %v8124_v0  ;;  %v8137_v0 = vld [vmem:[%s9590_s3 + $0x1c0] ss:$8 sps:$4 sm:$0xff]   ;;  %v8145_v28 = vld [vmem:[%s9590_s3 + $0x1e4] ss:$8 sps:$4 sm:$0xff]  }
 0x395   : > { %v7466_v30 = vadd.f32 %v3983_v29, %v8985_v22  ;;  %v3985_v51 = vpop.f32.mrb[87].mxu0  ;;  %v8146_v29 = vld [vmem:[%s9590_s3 + $0x1f0] ss:$8 sps:$4 sm:$0xff]  }
 0x396   : > { %v4434_v44 = vmax.f32 %v7464_v5, %v7465_v56  ;;  %v7467_v46 = vadd.f32 %v3985_v51, %v8987_v17  ;;  %v8140_v5 = vld [vmem:[%s9590_s3 + $0x1d0] ss:$8 sps:$4 sm:$0xff]   ;;  %v8148_v56 = vld [vmem:[%s9590_s3 + $0x1f4] ss:$8 sps:$4 sm:$0xff]  }
 0x397   : > { %5190 = vmatpush1.bf16.msra.mxu1 %v8122_v3  ;;  %v8143_v3 = vld [vmem:[%s9590_s3 + $0x1e0] ss:$8 sps:$4 sm:$0xff]   ;;  %v8154_v51 = vld [vmem:[%s9590_s3 + $0x214] ss:$8 sps:$4 sm:$0xff]  }
 0x398   : > { %v4460_v33 = vmax.f32 %v4432_v54, %v4434_v44  ;;  %v4435_v10 = vmax.f32 %v7466_v30, %v7467_v46  ;;  %5481 = vmatprep.subr.bf16.mxu1 %v8127_v57  ;;  %v8151_v57 = vld [vmem:[%s9590_s3 + $0x204] ss:$8 sps:$4 sm:$0xff]   ;;  %v8149_v30 = vld [vmem:[%s9590_s3 + $0x200] ss:$8 sps:$4 sm:$0xff]   ;;  %v8152_v44 = vld [vmem:[%s9590_s3 + $0x210] ss:$8 sps:$4 sm:$0xff]  }
 0x399   : > { %v8157_v46 = vld [vmem:[%s9590_s3 + $0x224] ss:$8 sps:$4 sm:$0xff]  }
 0x39a   : > { %v4461_v52 = vmax.f32 %v4433_v36, %v4435_v10  ;;  %v3989_v40 = vpop.f32.mrb[88].mxu0  ;;  %4942 = vmatmul.mubr.bf16.gmra.mrb[112].mxu1 %v9114_v7  ;;  %v4491_v18 = vadd.f32 %v8959_v48, %v4460_v33  ;;  %v8139_v36 = vld [vmem:[%s9590_s3 + $0x1c4] ss:$8 sps:$4 sm:$0xff]   ;;  %v8155_v33 = vld [vmem:[%s9590_s3 + $0x220] ss:$8 sps:$4 sm:$0xff]  }
 0x39b   : > { %v7468_v31 = vadd.f32 %v3989_v40, %v9003_v20  ;;  %v3991_v37 = vpop.f32.mrb[89].mxu0  ;;  %4951 = vmatprep.mubr.bf16.mxu1 %v9628_v6  ;;  %v8158_v10 = vld [vmem:[%s9590_s3 + $0x230] ss:$8 sps:$4 sm:$0xff]   ;;  %v8161_v40 = vld [vmem:[%s9590_s3 + $0x240] ss:$8 sps:$4 sm:$0xff]  }
 0x39c   : > { %v7469_v22 = vadd.f32 %v3991_v37, %v9008_v19  ;;  %v3993_v47 = vpop.f32.mrb[90].mxu0  ;;  %v4492_v17 = vadd.f32 %v8959_v48, %v4461_v52  ;;  %v4515_v39 = vmax.f32 %v4491_v18, 0.0  ;;  %v8163_v52 = vld [vmem:[%s9590_s3 + $0x244] ss:$8 sps:$4 sm:$0xff]   ;;  %v8166_v18 = vld [vmem:[%s9590_s3 + $0x254] ss:$8 sps:$4 sm:$0xff]  }
 0x39d   : > { %v7470_v8 = vadd.f32 %v3993_v47, %v9010_v34  ;;  %v3995_v35 = vpop.f32.mrb[91].mxu0  ;;  %v8169_v37 = vld [vmem:[%s9590_s3 + $0x264] ss:$8 sps:$4 sm:$0xff]   ;;  %v8172_v47 = vld [vmem:[%s9590_s3 + $0x274] ss:$8 sps:$4 sm:$0xff]  }
 0x39e   : > { %v4436_v9 = vmax.f32 %v7468_v31, %v7469_v22  ;;  %v7471_v59 = vadd.f32 %v3995_v35, %v9013_v14  ;;  %v4516_v21 = vmax.f32 %v4492_v17, 0.0  ;;  %v8164_v31 = vld [vmem:[%s9590_s3 + $0x250] ss:$8 sps:$4 sm:$0xff]   ;;  %v8167_v22 = vld [vmem:[%s9590_s3 + $0x260] ss:$8 sps:$4 sm:$0xff]  }
 0x39f   : > { %v8170_v17 = vld [vmem:[%s9590_s3 + $0x270] ss:$8 sps:$4 sm:$0xff]   ;;  %v8173_v35 = vld [vmem:[%s9592_s5 + $0x40] sm:$0xff]  }
 0x3a0   : > { %v4437_v16 = vmax.f32 %v7470_v8, %v7471_v59  ;;  %v9238_v63 = vpack.c.bf16 %v4516_v21, %v4515_v39  ;;  %v8225_v8 = vmov 0.0   ;;  %v8175_v59 = vld [vmem:[%s9592_s5 + $0x50] sm:$0xff]  }
 0x3a2   : > { %v3999_v20 = vpop.f32.mrb[92].mxu0  ;;  %4952 = vmatmul.mubr.bf16.gmra.mrb[116].mxu1 %v9128_v13 }
 0x3a3   : > { %v7472_v11 = vadd.f32 %v3999_v20, %v9029_v26  ;;  %v4001_v19 = vpop.f32.mrb[93].mxu0  ;;  %4961 = vmatprep.mubr.bf16.mxu1 %v9628_v6 }
 0x3a4   : > { %v7473_v38 = vadd.f32 %v4001_v19, %v9036_v42  ;;  %v4003_v34 = vpop.f32.mrb[94].mxu0 }
 0x3a5   : > { %v7474_v60 = vadd.f32 %v4003_v34, %v9038_v45  ;;  %v4005_v61 = vpop.f32.mrb[95].mxu0  ;;  %v8125_v45 = vld [vmem:[%s9590_s3 + $0x180] ss:$8 sps:$4 sm:$0xff]  }
 0x3a6   : > { %v4438_v14 = vmax.f32 %v7472_v11, %v7473_v38  ;;  %v7475_v15 = vadd.f32 %v4005_v61, %v9659_v58  ;;  %v9432_v34 = vld [vmem:[%s9591_s4] ss:$0 sm:$0xff] }
 0x3a8   : > { %v4462_v53 = vmax.f32 %v4436_v9, %v4438_v14  ;;  %v4439_v23 = vmax.f32 %v7474_v60, %v7475_v15  ;;  %v8174_v9 = vld [vmem:[%s9592_s5 + $0x48] sm:$0xff]  }
 0x3aa   : > { %v4463_v24 = vmax.f32 %v4437_v16, %v4439_v23  ;;  %4962 = vmatmul.mubr.bf16.gmra.mrb[120].mxu1 %v9142_v43  ;;  %v4493_v49 = vadd.f32 %v8959_v48, %v4462_v53 }
 0x3ab   : > { %4971 = vmatprep.mubr.bf16.mxu1 %v9628_v6 }
 0x3ac   : > { %v4494_v26 = vadd.f32 %v8959_v48, %v4463_v24  ;;  %v4517_v62 = vmax.f32 %v4493_v49, 0.0  ;;  %v8128_v48 = vld [vmem:[%s9590_s3 + $0x190] ss:$8 sps:$4 sm:$0xff]  }
 0x3ae   : > { %v4518_v42 = vmax.f32 %v4494_v26, 0.0 }
 0x3b0   : > { %v9250_v54 = vpack.c.bf16 %v4518_v42, %v4517_v62 }
 0x3b2   : > { %4972 = vmatmul.mubr.bf16.gmra.mrb[124].mxu1 %v9176_v4 }
 0x3b3   : > { %5207 = vmatprep.mubr.bf16.mxu1 %v9628_v6 }
 0x3ba   : > { %5208 = vmatmul.mubr.bf16.vlgmr.msra.gmra.mrb[96].mxu1 %v9072_v41  ;;  %v8136_v41 = vld [vmem:[%s9590_s3 + $0x1b4] ss:$8 sps:$4 sm:$0xff]  }
 0x3bb   : > { %5482 = vmatpush1.bf16.msra.mxu1 %v8125_v45  ;;  %5217 = vmatprep.mubr.bf16.mxu1 %v9628_v6 }
 0x3bc   : > { %5483 = vmatprep.subr.bf16.mxu1 %v8130_v27 }
 0x3bf   : > { %5484 = vmatpush1.bf16.msra.mxu1 %v8128_v48 }
 0x3c0   : > { %5485 = vmatprep.subr.bf16.mxu1 %v8133_v25 }
 0x3c2   : > { %5218 = vmatmul.mubr.bf16.gmra.mrb[100].mxu1 %v9086_v12 }
 0x3c3   : > { %5227 = vmatprep.mubr.bf16.mxu1 %v9628_v6  ;;  %5486 = vmatpush1.bf16.msra.mxu1 %v8131_v55 }
 0x3c4   : > { %5487 = vmatprep.subr.bf16.mxu1 %v8136_v41 }
 0x3c7   : > { %5488 = vmatpush1.bf16.msra.mxu1 %v8134_v2 }
 0x3c8   : > { %5489 = vmatprep.subr.bf16.mxu1 %v8139_v36 }
 0x3ca   : > { %5228 = vmatmul.mubr.bf16.gmra.mrb[104].mxu1 %v9100_v32 }
 0x3cb   : > { %5237 = vmatprep.mubr.bf16.mxu1 %v9628_v6  ;;  %5490 = vmatpush1.bf16.msra.mxu1 %v8137_v0 }
 0x3cc   : > { %5491 = vmatprep.subr.bf16.mxu1 %v8142_v1 }
 0x3cf   : > { %5492 = vmatpush1.bf16.msra.mxu1 %v8140_v5 }
 0x3d0   : > { %5493 = vmatprep.subr.bf16.mxu1 %v8145_v28 }
 0x3d2   : > { %5238 = vmatmul.mubr.bf16.gmra.mrb[108].mxu1 %v9114_v7 }
 0x3d3   : > { %5247 = vmatprep.mubr.bf16.mxu1 %v9628_v6  ;;  %5494 = vmatpush1.bf16.msra.mxu1 %v8143_v3 }
 0x3d4   : > { %5495 = vmatprep.subr.bf16.mxu1 %v8148_v56 }
 0x3d7   : > { %5496 = vmatpush1.bf16.msra.mxu1 %v8146_v29 }
 0x3d8   : > { %5787 = vmatprep.subr.bf16.mxu1 %v8151_v57 }
 0x3da   : > { %5248 = vmatmul.mubr.bf16.gmra.mrb[112].mxu1 %v9128_v13 }
 0x3db   : > { %5257 = vmatprep.mubr.bf16.mxu1 %v9628_v6 }
 0x3e2   : > { %5258 = vmatmul.mubr.bf16.gmra.mrb[116].mxu1 %v9142_v43 }
 0x3e3   : > { %5267 = vmatprep.mubr.bf16.mxu1 %v9628_v6 }
 0x3ea   : > { %5268 = vmatmul.mubr.bf16.gmra.mrb[120].mxu1 %v9176_v4 }
 0x3eb   : > { %5277 = vmatprep.mubr.bf16.mxu1 %v9628_v6 }
 0x3f2   : > { %5278 = vmatmul.mubr.bf16.gmra.mrb[124].mxu1 %v9216_v50 }
 0x3f3   : > { %5513 = vmatprep.mubr.bf16.mxu1 %v9628_v6 }
 0x3fa   : > { %5514 = vmatmul.mubr.bf16.vlgmr.msra.gmra.mrb[96].mxu1 %v9086_v12  ;;  %v8160_v12 = vld [vmem:[%s9590_s3 + $0x234] ss:$8 sps:$4 sm:$0xff]  }
 0x3fb   : > { %5788 = vmatpush1.bf16.msra.mxu1 %v8149_v30  ;;  %5523 = vmatprep.mubr.bf16.mxu1 %v9628_v6 }
 0x3fc   : > { %5789 = vmatprep.subr.bf16.mxu1 %v8154_v51 }
 0x3ff   : > { %5790 = vmatpush1.bf16.msra.mxu1 %v8152_v44 }
 0x400   : > { %5791 = vmatprep.subr.bf16.mxu1 %v8157_v46  ;;  %v8181_v46 = vld [vmem:[%s9592_s5] sm:$0xff]  }
 0x402   : > { %5524 = vmatmul.mubr.bf16.gmra.mrb[100].mxu1 %v9100_v32 }
 0x403   : > { %5533 = vmatprep.mubr.bf16.mxu1 %v9628_v6  ;;  %5792 = vmatpush1.bf16.msra.mxu1 %v8155_v33 }
 0x404   : > { %5793 = vmatprep.subr.bf16.mxu1 %v8160_v12 }
 0x407   : > { %5794 = vmatpush1.bf16.msra.mxu1 %v8158_v10  ;;  %v8182_v10 = vld [vmem:[%s9592_s5 + $0x8] sm:$0xff]  }
 0x408   : > { %5795 = vmatprep.subr.bf16.mxu1 %v8163_v52 }
 0x40a   : > { %5534 = vmatmul.mubr.bf16.gmra.mrb[104].mxu1 %v9114_v7 }
 0x40b   : > { %5543 = vmatprep.mubr.bf16.mxu1 %v9628_v6  ;;  %5796 = vmatpush1.bf16.msra.mxu1 %v8161_v40 }
 0x40c   : > { %5797 = vmatprep.subr.bf16.mxu1 %v8166_v18 }
 0x40f   : > { %5798 = vmatpush1.bf16.msra.mxu1 %v8164_v31 }
 0x410   : > { %5799 = vmatprep.subr.bf16.mxu1 %v8169_v37 }
 0x412   : > { %5544 = vmatmul.mubr.bf16.gmra.mrb[108].mxu1 %v9128_v13 }
 0x413   : > { %5553 = vmatprep.mubr.bf16.mxu1 %v9628_v6  ;;  %5800 = vmatpush1.bf16.msra.mxu1 %v8167_v22  ;;  %v8183_v22 = vld [vmem:[%s9592_s5 + $0x10] sm:$0xff]  }
 0x414   : > { %5801 = vmatprep.subr.bf16.mxu1 %v8172_v47 }
 0x417   : > { %5802 = vmatpush1.bf16.msra.mxu1 %v8170_v17 }
 0x418   : > { %7267 = vmatprep.subr.bf16.mxu1 %v8225_v8 }
 0x41a   : > { %5554 = vmatmul.mubr.bf16.gmra.mrb[112].mxu1 %v9142_v43 }
 0x41b   : > { %5563 = vmatprep.mubr.bf16.mxu1 %v9628_v6 }
 0x422   : > { %5564 = vmatmul.mubr.bf16.gmra.mrb[116].mxu1 %v9176_v4 }
 0x423   : > { %5573 = vmatprep.mubr.bf16.mxu1 %v9628_v6 }
 0x42a   : > { %5574 = vmatmul.mubr.bf16.gmra.mrb[120].mxu1 %v9216_v50 }
 0x42b   : > { %5583 = vmatprep.mubr.bf16.mxu1 %v9628_v6 }
 0x432   : > { %5584 = vmatmul.mubr.bf16.gmra.mrb[124].mxu1 %v9238_v63 }
 0x433   : > { %5819 = vmatprep.mubr.bf16.mxu1 %v9628_v6 }
 0x43a   : > { %5820 = vmatmul.mubr.bf16.vlgmr.msra.gmra.mrb[96].mxu1 %v9100_v32  ;;  %v8176_v32 = vld [vmem:[%s9592_s5 + $0x58] sm:$0xff]  }
 0x43b   : > { %5829 = vmatprep.mubr.bf16.mxu1 %v9628_v6  ;;  %7268 = vmatpush3.bf16.msra.mxu1 %v8173_v35 }
 0x43c   : > { %7269 = vmatprep.subr.bf16.mxu1 %v8225_v8 }
 0x43f   : > { %7270 = vmatpush3.bf16.msra.mxu1 %v8174_v9 }
 0x440   : > { %7271 = vmatprep.subr.bf16.mxu1 %v8225_v8 }
 0x442   : > { %5830 = vmatmul.mubr.bf16.gmra.mrb[100].mxu1 %v9114_v7  ;;  %v8177_v7 = vld [vmem:[%s9592_s5 + $0x60] sm:$0xff]  }
 0x443   : > { %5839 = vmatprep.mubr.bf16.mxu1 %v9628_v6  ;;  %7272 = vmatpush3.bf16.msra.mxu1 %v8175_v59  ;;  %v8184_v59 = vld [vmem:[%s9592_s5 + $0x18] sm:$0xff]  }
 0x444   : > { %7273 = vmatprep.subr.bf16.mxu1 %v8225_v8 }
 0x447   : > { %7274 = vmatpush3.bf16.msra.mxu1 %v8176_v32 }
 0x448   : > { %7275 = vmatprep.subr.bf16.mxu1 %v8225_v8 }
 0x44a   : > { %5840 = vmatmul.mubr.bf16.gmra.mrb[104].mxu1 %v9128_v13  ;;  %v8178_v13 = vld [vmem:[%s9592_s5 + $0x68] sm:$0xff]  }
 0x44b   : > { %5849 = vmatprep.mubr.bf16.mxu1 %v9628_v6  ;;  %7276 = vmatpush3.bf16.msra.mxu1 %v8177_v7 }
 0x44c   : > { %7277 = vmatprep.subr.bf16.mxu1 %v8225_v8 }
 0x44f   : > { %7278 = vmatpush3.bf16.msra.mxu1 %v8178_v13 }
 0x450   : > { %7279 = vmatprep.subr.bf16.mxu1 %v8225_v8 }
 0x452   : > { %5850 = vmatmul.mubr.bf16.gmra.mrb[108].mxu1 %v9142_v43  ;;  %v8179_v43 = vld [vmem:[%s9592_s5 + $0x70] sm:$0xff]  }
 0x453   : > { %5859 = vmatprep.mubr.bf16.mxu1 %v9628_v6  ;;  %7280 = vmatpush3.bf16.msra.mxu1 %v8179_v43 }
 0x454   : > { %7281 = vmatprep.subr.bf16.mxu1 %v8225_v8 }
 0x45a   : > { %5860 = vmatmul.mubr.bf16.gmra.mrb[112].mxu1 %v9176_v4 }
 0x45b   : > { %5869 = vmatprep.mubr.bf16.mxu1 %v9628_v6 }
 0x462   : > { %5870 = vmatmul.mubr.bf16.gmra.mrb[116].mxu1 %v9216_v50 }
 0x463   : > { %5879 = vmatprep.mubr.bf16.mxu1 %v9628_v6 }
 0x46a   : > { %5880 = vmatmul.mubr.bf16.gmra.mrb[120].mxu1 %v9238_v63 }
 0x46b   : > { %5889 = vmatprep.mubr.bf16.mxu1 %v9628_v6  ;;  %v8180_v6 = vld [vmem:[%s9592_s5 + $0x78] sm:$0xff]  }
 0x46c   : > { %7282 = vmatpush3.bf16.msra.mxu1 %v8180_v6 }
 0x46d   : > { %7287 = vmatprep.subr.bf16.mxu1 %v8225_v8 }
 0x472   : > { %5890 = vmatmul.mubr.bf16.gmra.mrb[124].mxu1 %v9250_v54 }
 0x473   : > { %7283 = vmatprep.mubr.msk.bf16.mxu1 %vm8226_vm2, %v8225_v8 }
 0x50d   : > { %v5821_v4 = vpop.f32.mrb[96].mxu1 }
 0x50e   : > { %v5823_v50 = vpop.f32.mrb[97].mxu1 }
 0x50f   : > { %v6028_v39 = vmax.f32 %v5821_v4, %v5823_v50  ;;  %v5825_v21 = vpop.f32.mrb[98].mxu1 }
 0x510   : > { %v5827_v16 = vpop.f32.mrb[99].mxu1 }
 0x511   : > { %v6029_v63 = vmax.f32 %v5825_v21, %v5827_v16  ;;  %v8185_v21 = vld [vmem:[%s9592_s5 + $0x20] sm:$0xff]  }
 0x515   : > { %v5831_v20 = vpop.f32.mrb[100].mxu1 }
 0x516   : > { %v5833_v11 = vpop.f32.mrb[101].mxu1 }
 0x517   : > { %v6030_v19 = vmax.f32 %v5831_v20, %v5833_v11  ;;  %v5835_v38 = vpop.f32.mrb[102].mxu1  ;;  %v8186_v20 = vld [vmem:[%s9592_s5 + $0x28] sm:$0xff]  }
 0x518   : > { %v5837_v60 = vpop.f32.mrb[103].mxu1 }
 0x519   : > { %v6044_v61 = vmax.f32 %v6028_v39, %v6030_v19  ;;  %v6031_v14 = vmax.f32 %v5835_v38, %v5837_v60 }
 0x51b   : > { %v6059_v58 = vadd.f32 %v9432_v34, %v6044_v61  ;;  %v6045_v15 = vmax.f32 %v6029_v63, %v6031_v14  ;;  %v8187_v14 = vld [vmem:[%s9592_s5 + $0x30] sm:$0xff]  }
 0x51d   : > { %v6060_v53 = vadd.f32 %v9432_v34, %v6045_v15  ;;  %v5841_v23 = vpop.f32.mrb[104].mxu1  ;;  %v6067_v49 = vmax.f32 %v6059_v58, 0.0 }
 0x51e   : > { %v5843_v24 = vpop.f32.mrb[105].mxu1 }
 0x51f   : > { %v6068_v26 = vmax.f32 %v6060_v53, 0.0  ;;  %v6032_v62 = vmax.f32 %v5841_v23, %v5843_v24  ;;  %v5845_v42 = vpop.f32.mrb[106].mxu1  ;;  %v8188_v24 = vld [vmem:[%s9592_s5 + $0x38] sm:$0xff]  }
 0x520   : > { %v5847_v54 = vpop.f32.mrb[107].mxu1 }
 0x521   : > { %v9436_v45 = vpack.c.bf16 %v6068_v26, %v6067_v49  ;;  %v6033_v27 = vmax.f32 %v5845_v42, %v5847_v54  ;;  %v8189_v42 = vld [vmem:[%s9592_s5 + $0x80] sm:$0xff]  }
 0x525   : > { %v5851_v48 = vpop.f32.mrb[108].mxu1 }
 0x526   : > { %v5853_v25 = vpop.f32.mrb[109].mxu1 }
 0x527   : > { %v6034_v55 = vmax.f32 %v5851_v48, %v5853_v25  ;;  %v5855_v41 = vpop.f32.mrb[110].mxu1  ;;  %v8193_v48 = vld [vmem:[%s9592_s5 + $0xa0] sm:$0xff]   ;;  %v8194_v25 = vld [vmem:[%s9592_s5 + $0xa8] sm:$0xff]  }
 0x528   : > { %v5857_v2 = vpop.f32.mrb[111].mxu1 }
 0x529   : > { %v6046_v36 = vmax.f32 %v6032_v62, %v6034_v55  ;;  %v6035_v0 = vmax.f32 %v5855_v41, %v5857_v2  ;;  %v8195_v55 = vld [vmem:[%s9592_s5 + $0xb0] sm:$0xff]   ;;  %v8196_v41 = vld [vmem:[%s9592_s5 + $0xb8] sm:$0xff]   ;;  %v8197_v2 = vld [vmem:[%s9592_s5 + $0xc0] sm:$0xff]  }
 0x52b   : > { %v6061_v1 = vadd.f32 %v9432_v34, %v6046_v36  ;;  %v6047_v5 = vmax.f32 %v6033_v27, %v6035_v0  ;;  %v8190_v27 = vld [vmem:[%s9592_s5 + $0x88] sm:$0xff]   ;;  %v8199_v0 = vld [vmem:[%s9592_s5 + $0xd0] sm:$0xff]  }
 0x52c   : > { %v8198_v36 = vld [vmem:[%s9592_s5 + $0xc8] sm:$0xff]  }
 0x52d   : > { %v6062_v28 = vadd.f32 %v9432_v34, %v6047_v5  ;;  %v5861_v3 = vpop.f32.mrb[112].mxu1  ;;  %v6069_v29 = vmax.f32 %v6061_v1, 0.0  ;;  %v8200_v1 = vld [vmem:[%s9592_s5 + $0xd8] sm:$0xff]   ;;  %v8201_v5 = vld [vmem:[%s9592_s5 + $0xe0] sm:$0xff]  }
 0x52e   : > { %v5863_v56 = vpop.f32.mrb[113].mxu1 }
 0x52f   : > { %v6070_v57 = vmax.f32 %v6062_v28, 0.0  ;;  %v6036_v30 = vmax.f32 %v5861_v3, %v5863_v56  ;;  %v5865_v51 = vpop.f32.mrb[114].mxu1  ;;  %v8202_v28 = vld [vmem:[%s9592_s5 + $0xe8] sm:$0xff]   ;;  %v8203_v3 = vld [vmem:[%s9592_s5 + $0xf0] sm:$0xff]   ;;  %v8204_v56 = vld [vmem:[%s9592_s5 + $0xf8] sm:$0xff]  }
 0x530   : > { %v5867_v44 = vpop.f32.mrb[115].mxu1 }
 0x531   : > { %v6076_v33 = vpack.c.bf16 %v6070_v57, %v6069_v29  ;;  %v6037_v12 = vmax.f32 %v5865_v51, %v5867_v44  ;;  %v6517_v29 = vld [vmem:[%s9594_s7] sm:$0xff]  ;;  %v6518_v57 = vld [vmem:[%s9594_s7 + $0x8] sm:$0xff]  ;;  %v6520_v44 = vld [vmem:[%s9594_s7 + $0x18] sm:$0xff] }
 0x532   : > { %v7364_v51 = vpack.c.bf16 %v6518_v57, %v6517_v29 }
 0x533   : > { %7284 = vmatmul.mubr.bf16.vlgmr.msra.gmra.mrb[128].mxu1 %v6076_v33  ;;  %v6522_v33 = vld [vmem:[%s9594_s7 + $0x28] sm:$0xff] }
 0x534   : > { %7288 = vmatpush3.bf16.msra.mxu1 %v8181_v46  ;;  %7303 = vmatprep.mubr.msk.bf16.mxu1 %vm8226_vm2, %v8225_v8  ;;  %v6521_v46 = vld [vmem:[%s9594_s7 + $0x20] sm:$0xff] }
 0x535   : > { %v5871_v52 = vpop.f32.mrb[116].mxu1  ;;  %7289 = vmatprep.subr.bf16.mxu1 %v8225_v8 }
 0x536   : > { %v5873_v40 = vpop.f32.mrb[117].mxu1 }
 0x537   : > { %v6038_v18 = vmax.f32 %v5871_v52, %v5873_v40  ;;  %v5875_v31 = vpop.f32.mrb[118].mxu1 }
 0x538   : > { %7290 = vmatpush3.bf16.msra.mxu1 %v8182_v10  ;;  %v5877_v37 = vpop.f32.mrb[119].mxu1  ;;  %v6523_v10 = vld [vmem:[%s9594_s7 + $0x30] sm:$0x3] }
 0x539   : > { %v6048_v47 = vmax.f32 %v6036_v30, %v6038_v18  ;;  %v6039_v17 = vmax.f32 %v5875_v31, %v5877_v37  ;;  %7291 = vmatprep.subr.bf16.mxu1 %v8225_v8  ;;  %v6519_v30 = vld [vmem:[%s9594_s7 + $0x10] sm:$0xff] }
 0x53b   : > { %v6063_v35 = vadd.f32 %v9432_v34, %v6048_v47  ;;  %v6049_v9 = vmax.f32 %v6037_v12, %v6039_v17  ;;  %v7372_v12 = vpack.c.bf16 %v6522_v33, %v6521_v46 }
 0x53c   : > { %7292 = vmatpush3.bf16.msra.mxu1 %v8183_v22 }
 0x53d   : > { %v6064_v32 = vadd.f32 %v9432_v34, %v6049_v9  ;;  %v5881_v7 = vpop.f32.mrb[120].mxu1  ;;  %7293 = vmatprep.subr.bf16.mxu1 %v8225_v8  ;;  %v6071_v43 = vmax.f32 %v6063_v35, 0.0 }
 0x53e   : > { %v5883_v13 = vpop.f32.mrb[121].mxu1 }
 0x53f   : > { %v6072_v6 = vmax.f32 %v6064_v32, 0.0  ;;  %v6040_v4 = vmax.f32 %v5881_v7, %v5883_v13  ;;  %v5885_v50 = vpop.f32.mrb[122].mxu1 }
 0x540   : > { %7294 = vmatpush3.bf16.msra.mxu1 %v8184_v59  ;;  %v5887_v39 = vpop.f32.mrb[123].mxu1 }
 0x541   : > { %v6077_v16 = vpack.c.bf16 %v6072_v6, %v6071_v43  ;;  %v6041_v63 = vmax.f32 %v5885_v50, %v5887_v39  ;;  %7295 = vmatprep.subr.bf16.mxu1 %v8225_v8  ;;  %v7215_v50 = vld [vmem:[%s9593_s6] ss:$0 sm:$0xff] }
 0x544   : > { %7296 = vmatpush3.bf16.msra.mxu1 %v8185_v21 }
 0x545   : > { %v5891_v11 = vpop.f32.mrb[124].mxu1  ;;  %7297 = vmatprep.subr.bf16.mxu1 %v8225_v8 }
 0x546   : > { %v5893_v19 = vpop.f32.mrb[125].mxu1 }
 0x547   : > { %v6042_v38 = vmax.f32 %v5891_v11, %v5893_v19  ;;  %v5895_v60 = vpop.f32.mrb[126].mxu1 }
 0x548   : > { %7298 = vmatpush3.bf16.msra.mxu1 %v8186_v20  ;;  %v5897_v61 = vpop.f32.mrb[127].mxu1 }
 0x549   : > { %v6050_v58 = vmax.f32 %v6040_v4, %v6042_v38  ;;  %v6043_v15 = vmax.f32 %v5895_v60, %v5897_v61  ;;  %7299 = vmatprep.subr.bf16.mxu1 %v8225_v8  ;;  %v7216_v61 = vld [vmem:[%s9595_s8] ss:$0 sm:$0xff] }
 0x54b   : > { %v6065_v53 = vadd.f32 %v9432_v34, %v6050_v58  ;;  %v6051_v23 = vmax.f32 %v6041_v63, %v6043_v15 }
 0x54c   : > { %7300 = vmatpush3.bf16.msra.mxu1 %v8187_v14 }
 0x54d   : > { %v6066_v49 = vadd.f32 %v9432_v34, %v6051_v23  ;;  %7301 = vmatprep.subr.bf16.mxu1 %v8225_v8  ;;  %v6073_v26 = vmax.f32 %v6065_v53, 0.0  ;;  %v8191_v34 = vld [vmem:[%s9592_s5 + $0x90] sm:$0xff]  }
 0x54f   : > { %v6074_v62 = vmax.f32 %v6066_v49, 0.0 }
 0x550   : > { %7302 = vmatpush3.bf16.msra.mxu1 %v8188_v24 }
 0x551   : > { %v6078_v54 = vpack.c.bf16 %v6074_v62, %v6073_v26  ;;  %7307 = vmatprep.subr.bf16.mxu1 %v8225_v8 }
 0x553   : > { %7304 = vmatmul.mubr.bf16.vlgmr.msra.gmra.mrb[132].mxu1 %v9436_v45  ;;  %v8192_v45 = vld [vmem:[%s9592_s5 + $0x98] sm:$0xff]  }
 0x554   : > { %7308 = vmatpush3.bf16.msra.mxu1 %v8189_v42  ;;  %7323 = vmatprep.mubr.msk.bf16.mxu1 %vm8226_vm2, %v8225_v8 }
 0x555   : > { %7309 = vmatprep.subr.bf16.mxu1 %v8225_v8 }
 0x558   : > { %7310 = vmatpush3.bf16.msra.mxu1 %v8190_v27 }
 0x559   : > { %7311 = vmatprep.subr.bf16.mxu1 %v8225_v8 }
 0x55c   : > { %7312 = vmatpush3.bf16.msra.mxu1 %v8191_v34 }
 0x55d   : > { %7313 = vmatprep.subr.bf16.mxu1 %v8225_v8 }
 0x560   : > { %7314 = vmatpush3.bf16.msra.mxu1 %v8192_v45 }
 0x561   : > { %7315 = vmatprep.subr.bf16.mxu1 %v8225_v8 }
 0x564   : > { %7316 = vmatpush3.bf16.msra.mxu1 %v8193_v48 }
 0x565   : > { %7317 = vmatprep.subr.bf16.mxu1 %v8225_v8 }
 0x568   : > { %7318 = vmatpush3.bf16.msra.mxu1 %v8194_v25 }
 0x569   : > { %7319 = vmatprep.subr.bf16.mxu1 %v8225_v8 }
 0x56c   : > { %7320 = vmatpush3.bf16.msra.mxu1 %v8195_v55 }
 0x56d   : > { %7321 = vmatprep.subr.bf16.mxu1 %v8225_v8 }
 0x570   : > { %7322 = vmatpush3.bf16.msra.mxu1 %v8196_v41 }
 0x571   : > { %7327 = vmatprep.subr.bf16.mxu1 %v8225_v8 }
 0x573   : > { %7324 = vmatmul.mubr.bf16.vlgmr.msra.gmra.mrb[136].mxu1 %v6077_v16 }
 0x574   : > { %7328 = vmatpush3.bf16.msra.mxu1 %v8197_v2  ;;  %7343 = vmatprep.mubr.msk.bf16.mxu1 %vm8226_vm2, %v8225_v8 }
 0x575   : > { %7329 = vmatprep.subr.bf16.mxu1 %v8225_v8 }
 0x578   : > { %7330 = vmatpush3.bf16.msra.mxu1 %v8198_v36 }
 0x579   : > { %7331 = vmatprep.subr.bf16.mxu1 %v8225_v8 }
 0x57c   : > { %7332 = vmatpush3.bf16.msra.mxu1 %v8199_v0 }
 0x57d   : > { %7333 = vmatprep.subr.bf16.mxu1 %v8225_v8 }
 0x580   : > { %7334 = vmatpush3.bf16.msra.mxu1 %v8200_v1 }
 0x581   : > { %7335 = vmatprep.subr.bf16.mxu1 %v8225_v8 }
 0x584   : > { %7336 = vmatpush3.bf16.msra.mxu1 %v8201_v5 }
 0x585   : > { %7337 = vmatprep.subr.bf16.mxu1 %v8225_v8 }
 0x588   : > { %7338 = vmatpush3.bf16.msra.mxu1 %v8202_v28 }
 0x589   : > { %7339 = vmatprep.subr.bf16.mxu1 %v8225_v8 }
 0x58c   : > { %7340 = vmatpush3.bf16.msra.mxu1 %v8203_v3 }
 0x58d   : > { %7341 = vmatprep.subr.bf16.mxu1 %v8225_v8  ;;  %v7368_v8 = vpack.c.bf16 %v6520_v44, %v6519_v30 }
 0x590   : > { %7342 = vmatpush3.bf16.msra.mxu1 %v8204_v56 }
 0x591   : > { %7365 = vmatprep.subr.bf16.mxu1 %v7364_v51 }
 0x593   : > { %7344 = vmatmul.mubr.bf16.vlgmr.msra.gmra.mrb[140].mxu1 %v6078_v54 }
 0x594   : > { %7367 = vmatpush3.bf16.msra.mxu1 %v7364_v51 }
 0x595   : > { %7369 = vmatprep.subr.bf16.mxu1 %v7368_v8 }
 0x598   : > { %7371 = vmatpush3.bf16.msra.mxu1 %v7368_v8 }
 0x599   : > { %7373 = vmatprep.subr.bf16.mxu1 %v7372_v12 }
 0x59c   : > { %7375 = vmatpush3.bf16.msra.mxu1 %v7372_v12 }
 0x59d   : > { %7359 = vmatprep.subr.msk.mxu1 %vm6538_vm3, %v6523_v10 }
 0x5a0   : > { %7360 = vmatpush3.msk.msra.mxu1 %vm6538_vm3, %v6523_v10 }
 0x606   : > { %v6194_v52 = vpop.f32.mrb[128].mxu1 }
 0x607   : > { %v7285_v40 = vpop.f32.mrb[129].mxu1 }
 0x608   : > { %v6197_v18 = vpop.f32.mrb[130].mxu1 }
 0x609   : > { %v7286_v31 = vpop.f32.mrb[131].mxu1 }
 0x626   : > { %v6283_v37 = vpop.f32.mrb[132].mxu1 }
 0x627   : > { %v6284_v22 = vadd.f32 %v6283_v37, %v6194_v52  ;;  %v7305_v47 = vpop.f32.mrb[133].mxu1 }
 0x628   : > { %v6286_v17 = vpop.f32.mrb[134].mxu1 }
 0x629   : > { %v6287_v35 = vadd.f32 %v6286_v17, %v6197_v18  ;;  %v7306_v9 = vpop.f32.mrb[135].mxu1 }
 0x646   : > { %v6389_v59 = vpop.f32.mrb[136].mxu1 }
 0x647   : > { %v6396_v32 = vadd.f32 %v6389_v59, %v6284_v22  ;;  %v7325_v7 = vpop.f32.mrb[137].mxu1 }
 0x648   : > { %v6392_v13 = vpop.f32.mrb[138].mxu1 }
 0x649   : > { %v6397_v43 = vadd.f32 %v6392_v13, %v6287_v35  ;;  %v7326_v6 = vpop.f32.mrb[139].mxu1 }
 0x666   : > { %v6497_v4 = vpop.f32.mrb[140].mxu1 }
 0x667   : > { %v6504_v39 = vadd.f32 %v6497_v4, %v6396_v32  ;;  %v7345_v21 = vpop.f32.mrb[141].mxu1 }
 0x668   : > { %v6500_v16 = vpop.f32.mrb[142].mxu1 }
 0x669   : > { %v6513_v63 = vadd.f32 %v7215_v50, %v6504_v39  ;;  %v6505_v20 = vadd.f32 %v6500_v16, %v6397_v43  ;;  %v7346_v11 = vpop.f32.mrb[143].mxu1 }
 0x66b   : > { %v6515_v19 = vmax.f32 %v6513_v63, 0.0  ;;  %v6514_v38 = vadd.f32 %v7215_v50, %v6505_v20 }
 0x66d   : > { %v6516_v60 = vmax.f32 %v6514_v38, 0.0  ;;  %7361 = vmatprep.mubr.msk.f32.mxu1 %vm6531_vm4, %v6515_v19 }
 0x66f   : > { %7362 = vmatmul.mubr.msk.f32.vlgmr.msra.gmra.mrb[144].mxu1 %vm6531_vm4, %v6516_v60 }
 0x742   : > { %v7363_v14 = vpop.f32.mrb[144].mxu1 }
 0x743   : > { %v6608_v58 = vpop.f32.mrb[145].mxu1  ;;  %v6614_v53 = vadd.f32 %v7363_v14, %v7216_v61 }
 0x744   : > { %v6609_v15 = vadd.f32 %v7216_v61, %v6608_v58 }
 0x745   : > { %v6621_v24 = vsel %vm6617_vm5, %v6614_v53, -inf }
 0x746   : > { %v6618_v23 = vsel %vm6617_vm5, %v6609_v15, -inf }
 0x747   : > { %6619 = vmax.xlane.f32.xlu0 %v6618_v23 }
 0x74b   : > { %6622 = vmax.xlane.f32.xlu0 %v6621_v24 }
 0x7d4   : > { %v6620_v49 = vpop.xlane.xlu0 %6619 }
 0x7d5   : > { %v6624_v26 = vsub.f32 %v6609_v15, %v6620_v49 }
 0x7d7   : > { %v6626_v62 = vmul.f32 1.442695, %v6624_v26 }
 0x7d8   : > { %v6623_v42 = vpop.xlane.xlu0 %6622 }
 0x7d9   : > { %8205 = vpow2.f32 %v6626_v62  ;;  %v6625_v54 = vsub.f32 %v6614_v53, %v6623_v42 }
 0x7db   : > { %v6628_v27 = vmul.f32 1.442695, %v6625_v54 }
 0x7dd   : > { %8207 = vpow2.f32 %v6628_v27 }
 0x7e3   : > { %v8206_v34 = vpop.eup %8205 }
 0x7e4   : > { %v6630_v45 = vsel %vm6617_vm5, %v8206_v34, 0.0 }
 0x7e5   : > { %6631 = vadd.xlane.f32.xlu1 %v6630_v45 }
 0x7e7   : > { %v8208_v48 = vpop.eup %8207 }
 0x7e8   : > { %v6633_v25 = vsel %vm6617_vm5, %v8208_v48, 0.0 }
 0x7e9   : > { %6634 = vadd.xlane.f32.xlu1 %v6633_v25 }
 0x872   : > { %v6632_v55 = vpop.xlane.xlu1 %6631 }
 0x873   : > { %8209 = vlog2.f32 %v6632_v55 }
 0x876   : > { %v6635_v41 = vpop.xlane.xlu1 %6634 }
 0x877   : > { %8211 = vlog2.f32 %v6635_v41 }
 0x87d   : > { %v8210_v2 = vpop.eup %8209 }
 0x87e   : > { %v6637_v36 = vmul.f32 0.6931472, %v8210_v2 }
 0x880   : > { %v6640_v0 = vsub.f32 %v6624_v26, %v6637_v36 }
 0x881   : > { %v8212_v1 = vpop.eup %8211 }
 0x882   : > { %6642 = vst.msk [vmem:[%s334_s29] sm:$0xff] %vm6617_vm5, %v6640_v0  ;;  %v6639_v5 = vmul.f32 0.6931472, %v8212_v1 }
 0x884   : > { %v6641_v28 = vsub.f32 %v6625_v54, %v6639_v5 }
 0x886   : > { %6643 = vst.msk [vmem:[%s334_s29 + $0x8] sm:$0xff] %vm6617_vm5, %v6641_v28 }
 0x887 PF: > { %s19_s30 = sadd.s32 1, %s8222_s30  }
 0x888   : > { %p16_p5 = scmp.ge.s32.totalorder %s19_s30, 4  }
 0x88a   :  { %18 = sbr.rel (!%p16_p5) target bundleno = 1 (0x1), region = 97 }

</bundles_post_ra>
